<compile_context>
chip_gen: v5e
topology: v5e:2x2
jax: 0.10.0
libtpu: 0.0.40
codegen_flags: <defaults>
</compile_context>

<pallas_src>
import math
import functools

import jax
import jax.numpy as jnp
from jax.experimental import pallas as pl
from jax.experimental.pallas import tpu as pltpu


# ----------------------------- in-kernel helpers -----------------------------

def _layernorm(x, g, b, eps=1e-5):
    mu = jnp.mean(x, axis=-1, keepdims=True)
    var = jnp.mean((x - mu) ** 2, axis=-1, keepdims=True)
    return (x - mu) * jax.lax.rsqrt(var + eps) * g + b


def _gelu(x):
    # TODO(synk): PyTorch nn.GELU default is exact (erf-based); tanh approximation
    # used here (guaranteed Mosaic lowering), max abs diff ~1e-3.
    c = 0.7978845608028654
    return 0.5 * x * (1.0 + jnp.tanh(c * (x + 0.044715 * x * x * x)))


# ------------------------------ fused GT kernel --------------------------------

def _gt_kernel(x_ref, bias_ref, enc_w_ref, enc_b_ref, gtok_ref,
               lbw_ref, lbb_ref,
               ln1g_ref, ln1b_ref, wqkv_ref, bqkv_ref, wo_ref, bo_ref,
               ln2g_ref, ln2b_ref, w1_ref, b1_ref, w2_ref, b2_ref,
               lnfg_ref, lnfb_ref, outw_ref, outb_ref,
               o_ref,
               nf_ref,
               *, num_heads):
    b_block, n_node, _ = x_ref.shape
    _, A, N, _ = bias_ref.shape
    H = wqkv_ref.shape[0]
    hd = H // num_heads
    bf16 = jnp.bfloat16

    l = pl.program_id(1)
    n_layers = pl.num_programs(1)

    # ---- node encoder + graph-token rows (only at the first layer step) ----
    # nf_ref ([Bblk*N, H] f32, VMEM) is the layer-to-layer carry.
    @pl.when(l == 0)
    def _():
        for g in range(b_block):
            enc_g = (jnp.dot(x_ref[g].astype(bf16), enc_w_ref[...],
                             preferred_element_type=jnp.float32)
                     + enc_b_ref[...])                         # [n_node, H]
            nf_ref[g * N:g * N + n_node, :] = enc_g
            nf_ref[g * N + n_node:(g + 1) * N, :] = gtok_ref[...]

    x = nf_ref[...]                                            # [Bblk*N, H] f32

    # ---- layer l: pre-norm MHA (fused QKV / fused out-proj, batch-folded M) ----
    y = _layernorm(x, ln1g_ref[...], ln1b_ref[...])
    qkv = (jnp.dot(y.astype(bf16), wqkv_ref[...],
                   preferred_element_type=jnp.float32)
           + bqkv_ref[...])                                    # [Bblk*N, 3H]
    # NOTE: the 1/sqrt(hd) scale is folded into the Q columns of wqkv at init.

    ctx_rows = []
    for g in range(b_block):
        qkv_g = qkv[g * N:(g + 1) * N, :]                      # aligned sublane slice
        bias_g = [bias_ref[g, a] for a in range(A)]            # A x [N, N], loaded once
        head_ctx = []
        for h in range(num_heads):
            # fused linear_bias: contract the A channels with SMEM scalars
            ab = bias_g[0] * lbw_ref[(l * A + 0) * num_heads + h]
            for a in range(1, A):
                ab = ab + bias_g[a] * lbw_ref[(l * A + a) * num_heads + h]
            ab = ab + lbb_ref[l * num_heads + h]
            q = qkv_g[:, h * hd:(h + 1) * hd].astype(bf16)
            k = qkv_g[:, H + h * hd:H + (h + 1) * hd].astype(bf16)
            v = qkv_g[:, 2 * H + h * hd:2 * H + (h + 1) * hd].astype(bf16)
            s = jax.lax.dot_general(q, k, (((1,), (1,)), ((), ())),
                                    preferred_element_type=jnp.float32) + ab
            s = s - jnp.max(s, axis=-1, keepdims=True)
            p = jnp.exp(s)
            p = p / jnp.sum(p, axis=-1, keepdims=True)         # exact (parity)
            head_ctx.append(jnp.dot(p.astype(bf16), v,
                                    preferred_element_type=jnp.float32))
        ctx_rows.append(jnp.concatenate(head_ctx, axis=1))     # [N, H] lane-dense
    ctx = jnp.concatenate(ctx_rows, axis=0)                    # [Bblk*N, H]

    attn = (jnp.dot(ctx.astype(bf16), wo_ref[...],
                    preferred_element_type=jnp.float32) + bo_ref[...])
    x = x + attn                                               # residual (dropout=id)

    # ---- layer l: pre-norm FFN ----
    y = _layernorm(x, ln2g_ref[...], ln2b_ref[...])
    hid = _gelu(jnp.dot(y.astype(bf16), w1_ref[...],
                        preferred_element_type=jnp.float32) + b1_ref[...])
    x = x + (jnp.dot(hid.astype(bf16), w2_ref[...],
                     preferred_element_type=jnp.float32) + b2_ref[...])

    nf_ref[...] = x                                            # carry to layer l+1

    # ---- final LN + output projection + log_softmax at the last layer step ----
    @pl.when(l == n_layers - 1)
    def _():
        xf = _layernorm(x, lnfg_ref[...], lnfb_ref[...])       # [Bblk*N, H]
        logits = (jnp.dot(xf.astype(bf16), outw_ref[...],
                          preferred_element_type=jnp.float32) + outb_ref[...])
        z = logits - jnp.max(logits, axis=-1, keepdims=True)
        lsm = z - jnp.log(jnp.sum(jnp.exp(z), axis=-1, keepdims=True))
        for g in range(b_block):
            o_ref[g, :, :] = lsm[g * N:g * N + 1, :].astype(o_ref.dtype)


# ------------------------------ full GT forward -------------------------------

@jax.jit
def gt_forward(params, attn_bias, x):
    B, n_node, in_dim = x.shape
    G, A = params['graph_token_vd'].shape
    N = n_node + G
    L, H, _ = params['wqkv'].shape
    O = params['out_w'].shape[1]
    nh = params['lb_b'].shape[0] // L
    F = params['w1'].shape[2]

    # one-time input prep (XLA): extend attn bias with virtual-distance rows/cols
    # and transpose so the A channels lead (channel-sliced in-kernel).
    # TODO(synk): for very large N this padded [B, A, N, N] HBM round-trip could
    # be avoided by padding in-kernel from the G*A virtual-distance scalars.
    vd = params['graph_token_vd']                               # [G, A]
    rows = jnp.broadcast_to(vd[None, :, None, :], (B, G, n_node, A))
    gb = jnp.concatenate([attn_bias, rows], axis=1)             # [B, N, n_node, A]
    cols = jnp.broadcast_to(vd[None, None, :, :], (B, N, G, A))
    gb = jnp.concatenate([gb, cols], axis=2)                    # [B, N, N, A]
    bias_t = jnp.transpose(gb, (0, 3, 1, 2)).astype(jnp.float32)  # [B, A, N, N]

    # Whole batch per block on single-TC v5e/v6e; choose b_block = B // 2 on v7x
    # so both TensorCores get a batch block (axis 0 is "parallel").
    b_block = B
    grid = (B // b_block, L)

    def per_layer(shape):                       # [L, d0, d1] -> block for layer l
        blk = (None,) + tuple(shape[1:])
        return pl.BlockSpec(blk, lambda bb, l: (l, 0, 0))

    def const_w(shape):                         # whole array, constant block
        nd = len(shape)
        return pl.BlockSpec(tuple(shape), lambda bb, l, _nd=nd: (0,) * _nd)

    smem_spec = pl.BlockSpec(memory_space=pltpu.MemorySpace.SMEM)

    in_specs = [
        pl.BlockSpec((b_block, n_node, in_dim), lambda bb, l: (bb, 0, 0)),    # x
        pl.BlockSpec((b_block, A, N, N), lambda bb, l: (bb, 0, 0, 0)),        # bias
        const_w(params['enc_w'].shape), const_w(params['enc_b'].shape),
        const_w(params['graph_token'].shape),
        smem_spec, smem_spec,                                                 # lb_w, lb_b
        per_layer(params['ln1_g'].shape), per_layer(params['ln1_b'].shape),
        per_layer(params['wqkv'].shape), per_layer(params['bqkv'].shape),
        per_layer(params['wo'].shape), per_layer(params['bo'].shape),
        per_layer(params['ln2_g'].shape), per_layer(params['ln2_b'].shape),
        per_layer(params['w1'].shape), per_layer(params['b1'].shape),
        per_layer(params['w2'].shape), per_layer(params['b2'].shape),
        const_w(params['lnf_g'].shape), const_w(params['lnf_b'].shape),
        const_w(params['out_w'].shape), const_w(params['out_b'].shape),
    ]

    kernel = functools.partial(_gt_kernel, num_heads=nh)

    out = pl.pallas_call(
        kernel,
        out_shape=jax.ShapeDtypeStruct((B, 1, O), jnp.float32),
        grid=grid,
        in_specs=in_specs,
        out_specs=pl.BlockSpec((b_block, 1, O), lambda bb, l: (bb, 0, 0)),
        scratch_shapes=[pltpu.VMEM((b_block * N, H), jnp.float32)],  # carried features
        compiler_params=pltpu.CompilerParams(
            dimension_semantics=("parallel", "arbitrary"),
            vmem_limit_bytes=32 * 1024 * 1024),   # fits all chips incl. v7x 64MiB/TC
    )(x, bias_t,
      params['enc_w'], params['enc_b'], params['graph_token'],
      params['lb_w'], params['lb_b'],
      params['ln1_g'], params['ln1_b'], params['wqkv'], params['bqkv'],
      params['wo'], params['bo'], params['ln2_g'], params['ln2_b'],
      params['w1'], params['b1'], params['w2'], params['b2'],
      params['lnf_g'], params['lnf_b'], params['out_w'], params['out_b'])

    return out.reshape(B, O)


# ------------------------------ parameter init --------------------------------

def init_gt_params(key, *, n_layers, num_heads, input_dim, hidden_dim, output_dim,
                   attn_bias_dim, ffn_dim, num_global_node):
    std_lin = 0.02 / math.sqrt(n_layers)
    H, F, A, nh, L, G = (hidden_dim, ffn_dim, attn_bias_dim, num_heads,
                         n_layers, num_global_node)
    hd = H // nh
    scale = 1.0 / math.sqrt(hd)
    ks = jax.random.split(key, 4 + n_layers)

    def nrm(k, shape, std):
        return (std * jax.random.normal(k, shape)).astype(jnp.float32)

    params = {
        'enc_w': nrm(ks[0], (input_dim, H), std_lin).astype(jnp.bfloat16),
        'enc_b': jnp.zeros((1, H), jnp.float32),
        'graph_token': nrm(ks[1], (G, H), 0.02),
        'graph_token_vd': nrm(ks[2], (G, A), 0.02),
        'lnf_g': jnp.ones((1, H), jnp.float32),
        'lnf_b': jnp.zeros((1, H), jnp.float32),
        'out_w': nrm(ks[3], (H, output_dim), std_lin).astype(jnp.bfloat16),
        'out_b': jnp.zeros((1, output_dim), jnp.float32),
    }

    lb_w, lb_b = [], []
    ln1_g, ln1_b, ln2_g, ln2_b = [], [], [], []
    wqkv, bqkv, wo, bo = [], [], [], []
    w1, b1, w2, b2 = [], [], [], []
    for l in range(L):
        kl = jax.random.split(ks[4 + l], 8)
        lb_w.append(nrm(kl[0], (A, nh), std_lin))
        lb_b.append(jnp.zeros((nh,), jnp.float32))
        ln1_g.append(jnp.ones((1, H), jnp.float32))
        ln1_b.append(jnp.zeros((1, H), jnp.float32))
        # fused in-proj, columns = [Q | K | V]; per-head blocks of hd lanes each.
        # The attention scale 1/sqrt(hd) is folded into the Q columns (the Q bias
        # slice would be scaled too — it is zero here).
        wq = nrm(kl[1], (H, H), 0.02) * scale
        wk = nrm(kl[2], (H, H), 0.02)
        wv = nrm(kl[3], (H, H), 0.02)
        wqkv.append(jnp.concatenate([wq, wk, wv], axis=1).astype(jnp.bfloat16))
        bqkv.append(jnp.zeros((1, 3 * H), jnp.float32))
        wo.append(nrm(kl[4], (H, H), std_lin).astype(jnp.bfloat16))
        bo.append(jnp.zeros((1, H), jnp.float32))
        ln2_g.append(jnp.ones((1, H), jnp.float32))
        ln2_b.append(jnp.zeros((1, H), jnp.float32))
        w1.append(nrm(kl[5], (H, F), std_lin).astype(jnp.bfloat16))
        b1.append(jnp.zeros((1, F), jnp.float32))
        w2.append(nrm(kl[6], (F, H), std_lin).astype(jnp.bfloat16))
        b2.append(jnp.zeros((1, H), jnp.float32))

    params.update({
        'lb_w': jnp.stack(lb_w).reshape(-1),    # flat [L*A*nh] f32 (SMEM scalars)
        'lb_b': jnp.stack(lb_b).reshape(-1),    # flat [L*nh]
        'ln1_g': jnp.stack(ln1_g), 'ln1_b': jnp.stack(ln1_b),
        'wqkv': jnp.stack(wqkv), 'bqkv': jnp.stack(bqkv),
        'wo': jnp.stack(wo), 'bo': jnp.stack(bo),
        'ln2_g': jnp.stack(ln2_g), 'ln2_b': jnp.stack(ln2_b),
        'w1': jnp.stack(w1), 'b1': jnp.stack(b1),
        'w2': jnp.stack(w2), 'b2': jnp.stack(b2),
    })
    return params


# ----------------------------------- main --------------------------------------

if __name__ == "__main__":
    B, n_node = 2, 15
    n_layers, num_heads = 2, 4
    input_dim, hidden_dim, output_dim = 16, 32, 10
    attn_bias_dim, ffn_dim, num_global_node = 6, 64, 1

    key = jax.random.PRNGKey(0)
    kp, kx, kb = jax.random.split(key, 3)
    params = init_gt_params(
        kp, n_layers=n_layers, num_heads=num_heads, input_dim=input_dim,
        hidden_dim=hidden_dim, output_dim=output_dim, attn_bias_dim=attn_bias_dim,
        ffn_dim=ffn_dim, num_global_node=num_global_node)

    x = jax.random.normal(kx, (B, n_node, input_dim), jnp.float32)
    attn_bias = jax.random.normal(kb, (B, n_node, n_node, attn_bias_dim), jnp.float32)

    out = gt_forward(params, attn_bias, x)
    out = jax.block_until_ready(out)
    assert out.shape == (B, output_dim), out.shape
    assert bool(jnp.all(jnp.isfinite(out)))
    # log-softmax rows must exponentiate to ~1
    assert bool(jnp.allclose(jnp.sum(jnp.exp(out), axis=1), 1.0, atol=1e-3))
    print("KERNEL_OK")
</pallas_src>

<mosaic_0001>
module attributes {stable_mosaic.version = 11 : i64} {
  func.func @_gt_kernel(%arg0: i32, %arg1: i32, %arg2: memref<2x15x16xf32, #tpu.memory_space<vmem>>, %arg3: memref<2x6x16x16xf32, #tpu.memory_space<vmem>>, %arg4: memref<16x32xbf16, #tpu.memory_space<vmem>>, %arg5: memref<1x32xf32, #tpu.memory_space<vmem>>, %arg6: memref<1x32xf32, #tpu.memory_space<vmem>>, %arg7: memref<48xf32, #tpu.memory_space<smem>>, %arg8: memref<8xf32, #tpu.memory_space<smem>>, %arg9: memref<1x1x32xf32, #tpu.memory_space<vmem>>, %arg10: memref<1x1x32xf32, #tpu.memory_space<vmem>>, %arg11: memref<1x32x96xbf16, #tpu.memory_space<vmem>>, %arg12: memref<1x1x96xf32, #tpu.memory_space<vmem>>, %arg13: memref<1x32x32xbf16, #tpu.memory_space<vmem>>, %arg14: memref<1x1x32xf32, #tpu.memory_space<vmem>>, %arg15: memref<1x1x32xf32, #tpu.memory_space<vmem>>, %arg16: memref<1x1x32xf32, #tpu.memory_space<vmem>>, %arg17: memref<1x32x64xbf16, #tpu.memory_space<vmem>>, %arg18: memref<1x1x64xf32, #tpu.memory_space<vmem>>, %arg19: memref<1x64x32xbf16, #tpu.memory_space<vmem>>, %arg20: memref<1x1x32xf32, #tpu.memory_space<vmem>>, %arg21: memref<1x32xf32, #tpu.memory_space<vmem>>, %arg22: memref<1x32xf32, #tpu.memory_space<vmem>>, %arg23: memref<32x10xbf16, #tpu.memory_space<vmem>>, %arg24: memref<1x10xf32, #tpu.memory_space<vmem>>, %arg25: memref<2x1x10xf32, #tpu.memory_space<vmem>>, %arg26: memref<32x32xf32, #tpu.memory_space<vmem>>) attributes {dimension_semantics = [#tpu.dimension_semantics<parallel>, #tpu.dimension_semantics<arbitrary>], iteration_bounds = array<i64: 1, 2>, scalar_prefetch = 0 : i64, scratch_operands = 1 : i64, tpu.core_type = #tpu.core_type<tc>, window_params = [{transform_indices = @transform_0, window_bounds = array<i64: 2, 15, 16>}, {transform_indices = @transform_1, window_bounds = array<i64: 2, 6, 16, 16>}, {pipeline_mode = #tpu.pipeline_mode<synchronous>, transform_indices = @transform_2, window_bounds = array<i64: 16, 32>}, {pipeline_mode = #tpu.pipeline_mode<synchronous>, transform_indices = @transform_3, window_bounds = array<i64: 1, 32>}, {pipeline_mode = #tpu.pipeline_mode<synchronous>, transform_indices = @transform_4, window_bounds = array<i64: 1, 32>}, {transform_indices = @transform_5, window_bounds = array<i64: 48>}, {transform_indices = @transform_6, window_bounds = array<i64: 8>}, {transform_indices = @transform_7, window_bounds = array<i64: 1, 1, 32>}, {transform_indices = @transform_8, window_bounds = array<i64: 1, 1, 32>}, {transform_indices = @transform_9, window_bounds = array<i64: 1, 32, 96>}, {transform_indices = @transform_10, window_bounds = array<i64: 1, 1, 96>}, {transform_indices = @transform_11, window_bounds = array<i64: 1, 32, 32>}, {transform_indices = @transform_12, window_bounds = array<i64: 1, 1, 32>}, {transform_indices = @transform_13, window_bounds = array<i64: 1, 1, 32>}, {transform_indices = @transform_14, window_bounds = array<i64: 1, 1, 32>}, {transform_indices = @transform_15, window_bounds = array<i64: 1, 32, 64>}, {transform_indices = @transform_16, window_bounds = array<i64: 1, 1, 64>}, {transform_indices = @transform_17, window_bounds = array<i64: 1, 64, 32>}, {transform_indices = @transform_18, window_bounds = array<i64: 1, 1, 32>}, {pipeline_mode = #tpu.pipeline_mode<synchronous>, transform_indices = @transform_19, window_bounds = array<i64: 1, 32>}, {pipeline_mode = #tpu.pipeline_mode<synchronous>, transform_indices = @transform_20, window_bounds = array<i64: 1, 32>}, {pipeline_mode = #tpu.pipeline_mode<synchronous>, transform_indices = @transform_21, window_bounds = array<i64: 32, 10>}, {pipeline_mode = #tpu.pipeline_mode<synchronous>, transform_indices = @transform_22, window_bounds = array<i64: 1, 10>}, {transform_indices = @transform_23, window_bounds = array<i64: 2, 1, 10>}]} {
    %c0_i32 = arith.constant 0 : i32
    %0 = arith.cmpi eq, %arg1, %c0_i32 : i32
    %1 = arith.extui %0 : i1 to i32
    %c0_i32_0 = arith.constant 0 : i32
    %2 = arith.cmpi ne, %1, %c0_i32_0 : i32
    scf.if %2 {
      %c0_336 = arith.constant 0 : index
      %c0_337 = arith.constant 0 : index
      %c0_338 = arith.constant 0 : index
      %760 = vector.load %arg2[%c0_336, %c0_337, %c0_338] : memref<2x15x16xf32, #tpu.memory_space<vmem>>, vector<1x15x16xf32>
      %761 = vector.shape_cast %760 : vector<1x15x16xf32> to vector<15x16xf32>
      %762 = arith.truncf %761 : vector<15x16xf32> to vector<15x16xbf16>
      %c0_339 = arith.constant 0 : index
      %c0_340 = arith.constant 0 : index
      %763 = vector.load %arg4[%c0_339, %c0_340] : memref<16x32xbf16, #tpu.memory_space<vmem>>, vector<16x32xbf16>
      %cst_341 = arith.constant dense<0.000000e+00> : vector<15x32xf32>
      %764 = tpu.matmul %762, %763, %cst_341 {dimension_numbers = #tpu.dot_dimension_numbers<[1], [0], [0], [1], [0, 0, 1, 1], [], []>} : vector<15x16xbf16>, vector<16x32xbf16>, vector<15x32xf32> -> vector<15x32xf32>
      %c0_342 = arith.constant 0 : index
      %c0_343 = arith.constant 0 : index
      %765 = vector.load %arg5[%c0_342, %c0_343] : memref<1x32xf32, #tpu.memory_space<vmem>>, vector<1x32xf32>
      %766 = vector.broadcast %765 : vector<1x32xf32> to vector<15x32xf32>
      %767 = arith.addf %764, %766 : vector<15x32xf32>
      %c0_344 = arith.constant 0 : index
      %c0_345 = arith.constant 0 : index
      %768 = vector.load %arg26[%c0_344, %c0_345] : memref<32x32xf32, #tpu.memory_space<vmem>>, vector<15x32xf32>
      tpu.vector_store %arg26[%c0_344, %c0_345], %767 {strides = array<i32>} : memref<32x32xf32, #tpu.memory_space<vmem>>, vector<15x32xf32>,
      %c0_346 = arith.constant 0 : index
      %c0_347 = arith.constant 0 : index
      %769 = vector.load %arg6[%c0_346, %c0_347] : memref<1x32xf32, #tpu.memory_space<vmem>>, vector<1x32xf32>
      %c15 = arith.constant 15 : index
      %c0_348 = arith.constant 0 : index
      %770 = vector.load %arg26[%c15, %c0_348] : memref<32x32xf32, #tpu.memory_space<vmem>>, vector<1x32xf32>
      tpu.vector_store %arg26[%c15, %c0_348], %769 {strides = array<i32>} : memref<32x32xf32, #tpu.memory_space<vmem>>, vector<1x32xf32>,
      %c1_349 = arith.constant 1 : index
      %c0_350 = arith.constant 0 : index
      %c0_351 = arith.constant 0 : index
      %771 = vector.load %arg2[%c1_349, %c0_350, %c0_351] : memref<2x15x16xf32, #tpu.memory_space<vmem>>, vector<1x15x16xf32>
      %772 = vector.shape_cast %771 : vector<1x15x16xf32> to vector<15x16xf32>
      %773 = arith.truncf %772 : vector<15x16xf32> to vector<15x16xbf16>
      %c0_352 = arith.constant 0 : index
      %c0_353 = arith.constant 0 : index
      %774 = vector.load %arg4[%c0_352, %c0_353] : memref<16x32xbf16, #tpu.memory_space<vmem>>, vector<16x32xbf16>
      %cst_354 = arith.constant dense<0.000000e+00> : vector<15x32xf32>
      %775 = tpu.matmul %773, %774, %cst_354 {dimension_numbers = #tpu.dot_dimension_numbers<[1], [0], [0], [1], [0, 0, 1, 1], [], []>} : vector<15x16xbf16>, vector<16x32xbf16>, vector<15x32xf32> -> vector<15x32xf32>
      %c0_355 = arith.constant 0 : index
      %c0_356 = arith.constant 0 : index
      %776 = vector.load %arg5[%c0_355, %c0_356] : memref<1x32xf32, #tpu.memory_space<vmem>>, vector<1x32xf32>
      %777 = vector.broadcast %776 : vector<1x32xf32> to vector<15x32xf32>
      %778 = arith.addf %775, %777 : vector<15x32xf32>
      %c16 = arith.constant 16 : index
      %c0_357 = arith.constant 0 : index
      %779 = vector.load %arg26[%c16, %c0_357] : memref<32x32xf32, #tpu.memory_space<vmem>>, vector<15x32xf32>
      tpu.vector_store %arg26[%c16, %c0_357], %778 {strides = array<i32>} : memref<32x32xf32, #tpu.memory_space<vmem>>, vector<15x32xf32>,
      %c0_358 = arith.constant 0 : index
      %c0_359 = arith.constant 0 : index
      %780 = vector.load %arg6[%c0_358, %c0_359] : memref<1x32xf32, #tpu.memory_space<vmem>>, vector<1x32xf32>
      %c31 = arith.constant 31 : index
      %c0_360 = arith.constant 0 : index
      %781 = vector.load %arg26[%c31, %c0_360] : memref<32x32xf32, #tpu.memory_space<vmem>>, vector<1x32xf32>
      tpu.vector_store %arg26[%c31, %c0_360], %780 {strides = array<i32>} : memref<32x32xf32, #tpu.memory_space<vmem>>, vector<1x32xf32>,
    } else {
    }
    %c0 = arith.constant 0 : index
    %c0_1 = arith.constant 0 : index
    %3 = vector.load %arg26[%c0, %c0_1] : memref<32x32xf32, #tpu.memory_space<vmem>>, vector<32x32xf32>
    %c0_2 = arith.constant 0 : index
    %c0_3 = arith.constant 0 : index
    %c0_4 = arith.constant 0 : index
    %4 = vector.load %arg9[%c0_2, %c0_3, %c0_4] : memref<1x1x32xf32, #tpu.memory_space<vmem>>, vector<1x1x32xf32>
    %5 = vector.shape_cast %4 : vector<1x1x32xf32> to vector<1x32xf32>
    %c0_5 = arith.constant 0 : index
    %c0_6 = arith.constant 0 : index
    %c0_7 = arith.constant 0 : index
    %6 = vector.load %arg10[%c0_5, %c0_6, %c0_7] : memref<1x1x32xf32, #tpu.memory_space<vmem>>, vector<1x1x32xf32>
    %7 = vector.shape_cast %6 : vector<1x1x32xf32> to vector<1x32xf32>
    %cst = arith.constant dense<0.000000e+00> : vector<32xf32>
    %8 = vector.multi_reduction <add>, %3, %cst [1] : vector<32x32xf32> to vector<32xf32>
    %9 = vector.shape_cast %8 : vector<32xf32> to vector<32x1xf32>
    %cst_8 = arith.constant 3.200000e+01 : f32
    %10 = vector.broadcast %cst_8 : f32 to vector<32x1xf32>
    %11 = arith.divf %9, %10 : vector<32x1xf32>
    %12 = vector.broadcast %11 : vector<32x1xf32> to vector<32x32xf32>
    %13 = arith.subf %3, %12 : vector<32x32xf32>
    %14 = arith.mulf %13, %13 : vector<32x32xf32>
    %cst_9 = arith.constant dense<0.000000e+00> : vector<32xf32>
    %15 = vector.multi_reduction <add>, %14, %cst_9 [1] : vector<32x32xf32> to vector<32xf32>
    %16 = vector.shape_cast %15 : vector<32xf32> to vector<32x1xf32>
    %cst_10 = arith.constant 3.200000e+01 : f32
    %17 = vector.broadcast %cst_10 : f32 to vector<32x1xf32>
    %18 = arith.divf %16, %17 : vector<32x1xf32>
    %19 = vector.broadcast %11 : vector<32x1xf32> to vector<32x32xf32>
    %20 = arith.subf %3, %19 : vector<32x32xf32>
    %cst_11 = arith.constant 9.99999974E-6 : f32
    %21 = vector.broadcast %cst_11 : f32 to vector<32x1xf32>
    %22 = arith.addf %18, %21 : vector<32x1xf32>
    %23 = math.rsqrt %22 : vector<32x1xf32>
    %24 = vector.broadcast %23 : vector<32x1xf32> to vector<32x32xf32>
    %25 = arith.mulf %20, %24 : vector<32x32xf32>
    %26 = vector.broadcast %5 : vector<1x32xf32> to vector<32x32xf32>
    %27 = arith.mulf %25, %26 : vector<32x32xf32>
    %28 = vector.broadcast %7 : vector<1x32xf32> to vector<32x32xf32>
    %29 = arith.addf %27, %28 : vector<32x32xf32>
    %30 = arith.truncf %29 : vector<32x32xf32> to vector<32x32xbf16>
    %c0_12 = arith.constant 0 : index
    %c0_13 = arith.constant 0 : index
    %c0_14 = arith.constant 0 : index
    %31 = vector.load %arg11[%c0_12, %c0_13, %c0_14] : memref<1x32x96xbf16, #tpu.memory_space<vmem>>, vector<1x32x96xbf16>
    %32 = vector.shape_cast %31 : vector<1x32x96xbf16> to vector<32x96xbf16>
    %cst_15 = arith.constant dense<0.000000e+00> : vector<32x96xf32>
    %33 = tpu.matmul %30, %32, %cst_15 {dimension_numbers = #tpu.dot_dimension_numbers<[1], [0], [0], [1], [0, 0, 1, 1], [], []>} : vector<32x32xbf16>, vector<32x96xbf16>, vector<32x96xf32> -> vector<32x96xf32>
    %c0_16 = arith.constant 0 : index
    %c0_17 = arith.constant 0 : index
    %c0_18 = arith.constant 0 : index
    %34 = vector.load %arg12[%c0_16, %c0_17, %c0_18] : memref<1x1x96xf32, #tpu.memory_space<vmem>>, vector<1x1x96xf32>
    %35 = vector.shape_cast %34 : vector<1x1x96xf32> to vector<1x96xf32>
    %36 = vector.broadcast %35 : vector<1x96xf32> to vector<32x96xf32>
    %37 = arith.addf %33, %36 : vector<32x96xf32>
    %38 = vector.extract_strided_slice %37 {offsets = [0, 0], sizes = [16, 96], strides = [1, 1]} : vector<32x96xf32> to vector<16x96xf32>
    %c0_19 = arith.constant 0 : index
    %c0_20 = arith.constant 0 : index
    %c0_21 = arith.constant 0 : index
    %c0_22 = arith.constant 0 : index
    %39 = vector.load %arg3[%c0_19, %c0_20, %c0_21, %c0_22] : memref<2x6x16x16xf32, #tpu.memory_space<vmem>>, vector<1x1x16x16xf32>
    %40 = vector.shape_cast %39 : vector<1x1x16x16xf32> to vector<16x16xf32>
    %c0_23 = arith.constant 0 : index
    %c1 = arith.constant 1 : index
    %c0_24 = arith.constant 0 : index
    %c0_25 = arith.constant 0 : index
    %41 = vector.load %arg3[%c0_23, %c1, %c0_24, %c0_25] : memref<2x6x16x16xf32, #tpu.memory_space<vmem>>, vector<1x1x16x16xf32>
    %42 = vector.shape_cast %41 : vector<1x1x16x16xf32> to vector<16x16xf32>
    %c0_26 = arith.constant 0 : index
    %c2 = arith.constant 2 : index
    %c0_27 = arith.constant 0 : index
    %c0_28 = arith.constant 0 : index
    %43 = vector.load %arg3[%c0_26, %c2, %c0_27, %c0_28] : memref<2x6x16x16xf32, #tpu.memory_space<vmem>>, vector<1x1x16x16xf32>
    %44 = vector.shape_cast %43 : vector<1x1x16x16xf32> to vector<16x16xf32>
    %c0_29 = arith.constant 0 : index
    %c3 = arith.constant 3 : index
    %c0_30 = arith.constant 0 : index
    %c0_31 = arith.constant 0 : index
    %45 = vector.load %arg3[%c0_29, %c3, %c0_30, %c0_31] : memref<2x6x16x16xf32, #tpu.memory_space<vmem>>, vector<1x1x16x16xf32>
    %46 = vector.shape_cast %45 : vector<1x1x16x16xf32> to vector<16x16xf32>
    %c0_32 = arith.constant 0 : index
    %c4 = arith.constant 4 : index
    %c0_33 = arith.constant 0 : index
    %c0_34 = arith.constant 0 : index
    %47 = vector.load %arg3[%c0_32, %c4, %c0_33, %c0_34] : memref<2x6x16x16xf32, #tpu.memory_space<vmem>>, vector<1x1x16x16xf32>
    %48 = vector.shape_cast %47 : vector<1x1x16x16xf32> to vector<16x16xf32>
    %c0_35 = arith.constant 0 : index
    %c5 = arith.constant 5 : index
    %c0_36 = arith.constant 0 : index
    %c0_37 = arith.constant 0 : index
    %49 = vector.load %arg3[%c0_35, %c5, %c0_36, %c0_37] : memref<2x6x16x16xf32, #tpu.memory_space<vmem>>, vector<1x1x16x16xf32>
    %50 = vector.shape_cast %49 : vector<1x1x16x16xf32> to vector<16x16xf32>
    %c6_i32 = arith.constant 6 : i32
    %51 = arith.muli %arg1, %c6_i32 : i32
    %c0_i32_38 = arith.constant 0 : i32
    %52 = arith.addi %51, %c0_i32_38 : i32
    %c4_i32 = arith.constant 4 : i32
    %53 = arith.muli %52, %c4_i32 : i32
    %c0_i32_39 = arith.constant 0 : i32
    %54 = arith.addi %53, %c0_i32_39 : i32
    %55 = arith.index_cast %54 : i32 to index
    %56 = memref.load %arg7[%55] : memref<48xf32, #tpu.memory_space<smem>>
    %57 = vector.broadcast %56 : f32 to vector<16x16xf32>
    %58 = arith.mulf %40, %57 : vector<16x16xf32>
    %c6_i32_40 = arith.constant 6 : i32
    %59 = arith.muli %arg1, %c6_i32_40 : i32
    %c1_i32 = arith.constant 1 : i32
    %60 = arith.addi %59, %c1_i32 : i32
    %c4_i32_41 = arith.constant 4 : i32
    %61 = arith.muli %60, %c4_i32_41 : i32
    %c0_i32_42 = arith.constant 0 : i32
    %62 = arith.addi %61, %c0_i32_42 : i32
    %63 = arith.index_cast %62 : i32 to index
    %64 = memref.load %arg7[%63] : memref<48xf32, #tpu.memory_space<smem>>
    %65 = vector.broadcast %64 : f32 to vector<16x16xf32>
    %66 = arith.mulf %42, %65 : vector<16x16xf32>
    %67 = arith.addf %58, %66 : vector<16x16xf32>
    %c6_i32_43 = arith.constant 6 : i32
    %68 = arith.muli %arg1, %c6_i32_43 : i32
    %c2_i32 = arith.constant 2 : i32
    %69 = arith.addi %68, %c2_i32 : i32
    %c4_i32_44 = arith.constant 4 : i32
    %70 = arith.muli %69, %c4_i32_44 : i32
    %c0_i32_45 = arith.constant 0 : i32
    %71 = arith.addi %70, %c0_i32_45 : i32
    %72 = arith.index_cast %71 : i32 to index
    %73 = memref.load %arg7[%72] : memref<48xf32, #tpu.memory_space<smem>>
    %74 = vector.broadcast %73 : f32 to vector<16x16xf32>
    %75 = arith.mulf %44, %74 : vector<16x16xf32>
    %76 = arith.addf %67, %75 : vector<16x16xf32>
    %c6_i32_46 = arith.constant 6 : i32
    %77 = arith.muli %arg1, %c6_i32_46 : i32
    %c3_i32 = arith.constant 3 : i32
    %78 = arith.addi %77, %c3_i32 : i32
    %c4_i32_47 = arith.constant 4 : i32
    %79 = arith.muli %78, %c4_i32_47 : i32
    %c0_i32_48 = arith.constant 0 : i32
    %80 = arith.addi %79, %c0_i32_48 : i32
    %81 = arith.index_cast %80 : i32 to index
    %82 = memref.load %arg7[%81] : memref<48xf32, #tpu.memory_space<smem>>
    %83 = vector.broadcast %82 : f32 to vector<16x16xf32>
    %84 = arith.mulf %46, %83 : vector<16x16xf32>
    %85 = arith.addf %76, %84 : vector<16x16xf32>
    %c6_i32_49 = arith.constant 6 : i32
    %86 = arith.muli %arg1, %c6_i32_49 : i32
    %c4_i32_50 = arith.constant 4 : i32
    %87 = arith.addi %86, %c4_i32_50 : i32
    %c4_i32_51 = arith.constant 4 : i32
    %88 = arith.muli %87, %c4_i32_51 : i32
    %c0_i32_52 = arith.constant 0 : i32
    %89 = arith.addi %88, %c0_i32_52 : i32
    %90 = arith.index_cast %89 : i32 to index
    %91 = memref.load %arg7[%90] : memref<48xf32, #tpu.memory_space<smem>>
    %92 = vector.broadcast %91 : f32 to vector<16x16xf32>
    %93 = arith.mulf %48, %92 : vector<16x16xf32>
    %94 = arith.addf %85, %93 : vector<16x16xf32>
    %c6_i32_53 = arith.constant 6 : i32
    %95 = arith.muli %arg1, %c6_i32_53 : i32
    %c5_i32 = arith.constant 5 : i32
    %96 = arith.addi %95, %c5_i32 : i32
    %c4_i32_54 = arith.constant 4 : i32
    %97 = arith.muli %96, %c4_i32_54 : i32
    %c0_i32_55 = arith.constant 0 : i32
    %98 = arith.addi %97, %c0_i32_55 : i32
    %99 = arith.index_cast %98 : i32 to index
    %100 = memref.load %arg7[%99] : memref<48xf32, #tpu.memory_space<smem>>
    %101 = vector.broadcast %100 : f32 to vector<16x16xf32>
    %102 = arith.mulf %50, %101 : vector<16x16xf32>
    %103 = arith.addf %94, %102 : vector<16x16xf32>
    %c4_i32_56 = arith.constant 4 : i32
    %104 = arith.muli %arg1, %c4_i32_56 : i32
    %c0_i32_57 = arith.constant 0 : i32
    %105 = arith.addi %104, %c0_i32_57 : i32
    %106 = arith.index_cast %105 : i32 to index
    %107 = memref.load %arg8[%106] : memref<8xf32, #tpu.memory_space<smem>>
    %108 = vector.broadcast %107 : f32 to vector<16x16xf32>
    %109 = arith.addf %103, %108 : vector<16x16xf32>
    %110 = vector.extract_strided_slice %38 {offsets = [0, 0], sizes = [16, 8], strides = [1, 1]} : vector<16x96xf32> to vector<16x8xf32>
    %111 = arith.truncf %110 : vector<16x8xf32> to vector<16x8xbf16>
    %112 = vector.extract_strided_slice %38 {offsets = [0, 32], sizes = [16, 8], strides = [1, 1]} : vector<16x96xf32> to vector<16x8xf32>
    %113 = arith.truncf %112 : vector<16x8xf32> to vector<16x8xbf16>
    %114 = vector.extract_strided_slice %38 {offsets = [0, 64], sizes = [16, 8], strides = [1, 1]} : vector<16x96xf32> to vector<16x8xf32>
    %115 = arith.truncf %114 : vector<16x8xf32> to vector<16x8xbf16>
    %cst_58 = arith.constant dense<0.000000e+00> : vector<16x16xf32>
    %116 = tpu.matmul %111, %113, %cst_58 {dimension_numbers = #tpu.dot_dimension_numbers<[1], [1], [0], [0], [0, 0, 1, 0], [], []>} : vector<16x8xbf16>, vector<16x8xbf16>, vector<16x16xf32> -> vector<16x16xf32>
    %117 = arith.addf %116, %109 : vector<16x16xf32>
    %cst_59 = arith.constant dense<0xFF800000> : vector<16xf32>
    %118 = vector.multi_reduction <maximumf>, %117, %cst_59 [1] : vector<16x16xf32> to vector<16xf32>
    %119 = vector.shape_cast %118 : vector<16xf32> to vector<16x1xf32>
    %120 = vector.broadcast %119 : vector<16x1xf32> to vector<16x16xf32>
    %121 = arith.subf %117, %120 : vector<16x16xf32>
    %122 = math.exp %121 : vector<16x16xf32>
    %cst_60 = arith.constant dense<0.000000e+00> : vector<16xf32>
    %123 = vector.multi_reduction <add>, %122, %cst_60 [1] : vector<16x16xf32> to vector<16xf32>
    %124 = vector.shape_cast %123 : vector<16xf32> to vector<16x1xf32>
    %125 = vector.broadcast %124 : vector<16x1xf32> to vector<16x16xf32>
    %126 = arith.divf %122, %125 : vector<16x16xf32>
    %127 = arith.truncf %126 : vector<16x16xf32> to vector<16x16xbf16>
    %cst_61 = arith.constant dense<0.000000e+00> : vector<16x8xf32>
    %128 = tpu.matmul %127, %115, %cst_61 {dimension_numbers = #tpu.dot_dimension_numbers<[1], [0], [0], [1], [0, 0, 1, 1], [], []>} : vector<16x16xbf16>, vector<16x8xbf16>, vector<16x8xf32> -> vector<16x8xf32>
    %c6_i32_62 = arith.constant 6 : i32
    %129 = arith.muli %arg1, %c6_i32_62 : i32
    %c0_i32_63 = arith.constant 0 : i32
    %130 = arith.addi %129, %c0_i32_63 : i32
    %c4_i32_64 = arith.constant 4 : i32
    %131 = arith.muli %130, %c4_i32_64 : i32
    %c1_i32_65 = arith.constant 1 : i32
    %132 = arith.addi %131, %c1_i32_65 : i32
    %133 = arith.index_cast %132 : i32 to index
    %134 = memref.load %arg7[%133] : memref<48xf32, #tpu.memory_space<smem>>
    %135 = vector.broadcast %134 : f32 to vector<16x16xf32>
    %136 = arith.mulf %40, %135 : vector<16x16xf32>
    %c6_i32_66 = arith.constant 6 : i32
    %137 = arith.muli %arg1, %c6_i32_66 : i32
    %c1_i32_67 = arith.constant 1 : i32
    %138 = arith.addi %137, %c1_i32_67 : i32
    %c4_i32_68 = arith.constant 4 : i32
    %139 = arith.muli %138, %c4_i32_68 : i32
    %c1_i32_69 = arith.constant 1 : i32
    %140 = arith.addi %139, %c1_i32_69 : i32
    %141 = arith.index_cast %140 : i32 to index
    %142 = memref.load %arg7[%141] : memref<48xf32, #tpu.memory_space<smem>>
    %143 = vector.broadcast %142 : f32 to vector<16x16xf32>
    %144 = arith.mulf %42, %143 : vector<16x16xf32>
    %145 = arith.addf %136, %144 : vector<16x16xf32>
    %c6_i32_70 = arith.constant 6 : i32
    %146 = arith.muli %arg1, %c6_i32_70 : i32
    %c2_i32_71 = arith.constant 2 : i32
    %147 = arith.addi %146, %c2_i32_71 : i32
    %c4_i32_72 = arith.constant 4 : i32
    %148 = arith.muli %147, %c4_i32_72 : i32
    %c1_i32_73 = arith.constant 1 : i32
    %149 = arith.addi %148, %c1_i32_73 : i32
    %150 = arith.index_cast %149 : i32 to index
    %151 = memref.load %arg7[%150] : memref<48xf32, #tpu.memory_space<smem>>
    %152 = vector.broadcast %151 : f32 to vector<16x16xf32>
    %153 = arith.mulf %44, %152 : vector<16x16xf32>
    %154 = arith.addf %145, %153 : vector<16x16xf32>
    %c6_i32_74 = arith.constant 6 : i32
    %155 = arith.muli %arg1, %c6_i32_74 : i32
    %c3_i32_75 = arith.constant 3 : i32
    %156 = arith.addi %155, %c3_i32_75 : i32
    %c4_i32_76 = arith.constant 4 : i32
    %157 = arith.muli %156, %c4_i32_76 : i32
    %c1_i32_77 = arith.constant 1 : i32
    %158 = arith.addi %157, %c1_i32_77 : i32
    %159 = arith.index_cast %158 : i32 to index
    %160 = memref.load %arg7[%159] : memref<48xf32, #tpu.memory_space<smem>>
    %161 = vector.broadcast %160 : f32 to vector<16x16xf32>
    %162 = arith.mulf %46, %161 : vector<16x16xf32>
    %163 = arith.addf %154, %162 : vector<16x16xf32>
    %c6_i32_78 = arith.constant 6 : i32
    %164 = arith.muli %arg1, %c6_i32_78 : i32
    %c4_i32_79 = arith.constant 4 : i32
    %165 = arith.addi %164, %c4_i32_79 : i32
    %c4_i32_80 = arith.constant 4 : i32
    %166 = arith.muli %165, %c4_i32_80 : i32
    %c1_i32_81 = arith.constant 1 : i32
    %167 = arith.addi %166, %c1_i32_81 : i32
    %168 = arith.index_cast %167 : i32 to index
    %169 = memref.load %arg7[%168] : memref<48xf32, #tpu.memory_space<smem>>
    %170 = vector.broadcast %169 : f32 to vector<16x16xf32>
    %171 = arith.mulf %48, %170 : vector<16x16xf32>
    %172 = arith.addf %163, %171 : vector<16x16xf32>
    %c6_i32_82 = arith.constant 6 : i32
    %173 = arith.muli %arg1, %c6_i32_82 : i32
    %c5_i32_83 = arith.constant 5 : i32
    %174 = arith.addi %173, %c5_i32_83 : i32
    %c4_i32_84 = arith.constant 4 : i32
    %175 = arith.muli %174, %c4_i32_84 : i32
    %c1_i32_85 = arith.constant 1 : i32
    %176 = arith.addi %175, %c1_i32_85 : i32
    %177 = arith.index_cast %176 : i32 to index
    %178 = memref.load %arg7[%177] : memref<48xf32, #tpu.memory_space<smem>>
    %179 = vector.broadcast %178 : f32 to vector<16x16xf32>
    %180 = arith.mulf %50, %179 : vector<16x16xf32>
    %181 = arith.addf %172, %180 : vector<16x16xf32>
    %c4_i32_86 = arith.constant 4 : i32
    %182 = arith.muli %arg1, %c4_i32_86 : i32
    %c1_i32_87 = arith.constant 1 : i32
    %183 = arith.addi %182, %c1_i32_87 : i32
    %184 = arith.index_cast %183 : i32 to index
    %185 = memref.load %arg8[%184] : memref<8xf32, #tpu.memory_space<smem>>
    %186 = vector.broadcast %185 : f32 to vector<16x16xf32>
    %187 = arith.addf %181, %186 : vector<16x16xf32>
    %188 = vector.extract_strided_slice %38 {offsets = [0, 8], sizes = [16, 8], strides = [1, 1]} : vector<16x96xf32> to vector<16x8xf32>
    %189 = arith.truncf %188 : vector<16x8xf32> to vector<16x8xbf16>
    %190 = vector.extract_strided_slice %38 {offsets = [0, 40], sizes = [16, 8], strides = [1, 1]} : vector<16x96xf32> to vector<16x8xf32>
    %191 = arith.truncf %190 : vector<16x8xf32> to vector<16x8xbf16>
    %192 = vector.extract_strided_slice %38 {offsets = [0, 72], sizes = [16, 8], strides = [1, 1]} : vector<16x96xf32> to vector<16x8xf32>
    %193 = arith.truncf %192 : vector<16x8xf32> to vector<16x8xbf16>
    %cst_88 = arith.constant dense<0.000000e+00> : vector<16x16xf32>
    %194 = tpu.matmul %189, %191, %cst_88 {dimension_numbers = #tpu.dot_dimension_numbers<[1], [1], [0], [0], [0, 0, 1, 0], [], []>} : vector<16x8xbf16>, vector<16x8xbf16>, vector<16x16xf32> -> vector<16x16xf32>
    %195 = arith.addf %194, %187 : vector<16x16xf32>
    %cst_89 = arith.constant dense<0xFF800000> : vector<16xf32>
    %196 = vector.multi_reduction <maximumf>, %195, %cst_89 [1] : vector<16x16xf32> to vector<16xf32>
    %197 = vector.shape_cast %196 : vector<16xf32> to vector<16x1xf32>
    %198 = vector.broadcast %197 : vector<16x1xf32> to vector<16x16xf32>
    %199 = arith.subf %195, %198 : vector<16x16xf32>
    %200 = math.exp %199 : vector<16x16xf32>
    %cst_90 = arith.constant dense<0.000000e+00> : vector<16xf32>
    %201 = vector.multi_reduction <add>, %200, %cst_90 [1] : vector<16x16xf32> to vector<16xf32>
    %202 = vector.shape_cast %201 : vector<16xf32> to vector<16x1xf32>
    %203 = vector.broadcast %202 : vector<16x1xf32> to vector<16x16xf32>
    %204 = arith.divf %200, %203 : vector<16x16xf32>
    %205 = arith.truncf %204 : vector<16x16xf32> to vector<16x16xbf16>
    %cst_91 = arith.constant dense<0.000000e+00> : vector<16x8xf32>
    %206 = tpu.matmul %205, %193, %cst_91 {dimension_numbers = #tpu.dot_dimension_numbers<[1], [0], [0], [1], [0, 0, 1, 1], [], []>} : vector<16x16xbf16>, vector<16x8xbf16>, vector<16x8xf32> -> vector<16x8xf32>
    %c6_i32_92 = arith.constant 6 : i32
    %207 = arith.muli %arg1, %c6_i32_92 : i32
    %c0_i32_93 = arith.constant 0 : i32
    %208 = arith.addi %207, %c0_i32_93 : i32
    %c4_i32_94 = arith.constant 4 : i32
    %209 = arith.muli %208, %c4_i32_94 : i32
    %c2_i32_95 = arith.constant 2 : i32
    %210 = arith.addi %209, %c2_i32_95 : i32
    %211 = arith.index_cast %210 : i32 to index
    %212 = memref.load %arg7[%211] : memref<48xf32, #tpu.memory_space<smem>>
    %213 = vector.broadcast %212 : f32 to vector<16x16xf32>
    %214 = arith.mulf %40, %213 : vector<16x16xf32>
    %c6_i32_96 = arith.constant 6 : i32
    %215 = arith.muli %arg1, %c6_i32_96 : i32
    %c1_i32_97 = arith.constant 1 : i32
    %216 = arith.addi %215, %c1_i32_97 : i32
    %c4_i32_98 = arith.constant 4 : i32
    %217 = arith.muli %216, %c4_i32_98 : i32
    %c2_i32_99 = arith.constant 2 : i32
    %218 = arith.addi %217, %c2_i32_99 : i32
    %219 = arith.index_cast %218 : i32 to index
    %220 = memref.load %arg7[%219] : memref<48xf32, #tpu.memory_space<smem>>
    %221 = vector.broadcast %220 : f32 to vector<16x16xf32>
    %222 = arith.mulf %42, %221 : vector<16x16xf32>
    %223 = arith.addf %214, %222 : vector<16x16xf32>
    %c6_i32_100 = arith.constant 6 : i32
    %224 = arith.muli %arg1, %c6_i32_100 : i32
    %c2_i32_101 = arith.constant 2 : i32
    %225 = arith.addi %224, %c2_i32_101 : i32
    %c4_i32_102 = arith.constant 4 : i32
    %226 = arith.muli %225, %c4_i32_102 : i32
    %c2_i32_103 = arith.constant 2 : i32
    %227 = arith.addi %226, %c2_i32_103 : i32
    %228 = arith.index_cast %227 : i32 to index
    %229 = memref.load %arg7[%228] : memref<48xf32, #tpu.memory_space<smem>>
    %230 = vector.broadcast %229 : f32 to vector<16x16xf32>
    %231 = arith.mulf %44, %230 : vector<16x16xf32>
    %232 = arith.addf %223, %231 : vector<16x16xf32>
    %c6_i32_104 = arith.constant 6 : i32
    %233 = arith.muli %arg1, %c6_i32_104 : i32
    %c3_i32_105 = arith.constant 3 : i32
    %234 = arith.addi %233, %c3_i32_105 : i32
    %c4_i32_106 = arith.constant 4 : i32
    %235 = arith.muli %234, %c4_i32_106 : i32
    %c2_i32_107 = arith.constant 2 : i32
    %236 = arith.addi %235, %c2_i32_107 : i32
    %237 = arith.index_cast %236 : i32 to index
    %238 = memref.load %arg7[%237] : memref<48xf32, #tpu.memory_space<smem>>
    %239 = vector.broadcast %238 : f32 to vector<16x16xf32>
    %240 = arith.mulf %46, %239 : vector<16x16xf32>
    %241 = arith.addf %232, %240 : vector<16x16xf32>
    %c6_i32_108 = arith.constant 6 : i32
    %242 = arith.muli %arg1, %c6_i32_108 : i32
    %c4_i32_109 = arith.constant 4 : i32
    %243 = arith.addi %242, %c4_i32_109 : i32
    %c4_i32_110 = arith.constant 4 : i32
    %244 = arith.muli %243, %c4_i32_110 : i32
    %c2_i32_111 = arith.constant 2 : i32
    %245 = arith.addi %244, %c2_i32_111 : i32
    %246 = arith.index_cast %245 : i32 to index
    %247 = memref.load %arg7[%246] : memref<48xf32, #tpu.memory_space<smem>>
    %248 = vector.broadcast %247 : f32 to vector<16x16xf32>
    %249 = arith.mulf %48, %248 : vector<16x16xf32>
    %250 = arith.addf %241, %249 : vector<16x16xf32>
    %c6_i32_112 = arith.constant 6 : i32
    %251 = arith.muli %arg1, %c6_i32_112 : i32
    %c5_i32_113 = arith.constant 5 : i32
    %252 = arith.addi %251, %c5_i32_113 : i32
    %c4_i32_114 = arith.constant 4 : i32
    %253 = arith.muli %252, %c4_i32_114 : i32
    %c2_i32_115 = arith.constant 2 : i32
    %254 = arith.addi %253, %c2_i32_115 : i32
    %255 = arith.index_cast %254 : i32 to index
    %256 = memref.load %arg7[%255] : memref<48xf32, #tpu.memory_space<smem>>
    %257 = vector.broadcast %256 : f32 to vector<16x16xf32>
    %258 = arith.mulf %50, %257 : vector<16x16xf32>
    %259 = arith.addf %250, %258 : vector<16x16xf32>
    %c4_i32_116 = arith.constant 4 : i32
    %260 = arith.muli %arg1, %c4_i32_116 : i32
    %c2_i32_117 = arith.constant 2 : i32
    %261 = arith.addi %260, %c2_i32_117 : i32
    %262 = arith.index_cast %261 : i32 to index
    %263 = memref.load %arg8[%262] : memref<8xf32, #tpu.memory_space<smem>>
    %264 = vector.broadcast %263 : f32 to vector<16x16xf32>
    %265 = arith.addf %259, %264 : vector<16x16xf32>
    %266 = vector.extract_strided_slice %38 {offsets = [0, 16], sizes = [16, 8], strides = [1, 1]} : vector<16x96xf32> to vector<16x8xf32>
    %267 = arith.truncf %266 : vector<16x8xf32> to vector<16x8xbf16>
    %268 = vector.extract_strided_slice %38 {offsets = [0, 48], sizes = [16, 8], strides = [1, 1]} : vector<16x96xf32> to vector<16x8xf32>
    %269 = arith.truncf %268 : vector<16x8xf32> to vector<16x8xbf16>
    %270 = vector.extract_strided_slice %38 {offsets = [0, 80], sizes = [16, 8], strides = [1, 1]} : vector<16x96xf32> to vector<16x8xf32>
    %271 = arith.truncf %270 : vector<16x8xf32> to vector<16x8xbf16>
    %cst_118 = arith.constant dense<0.000000e+00> : vector<16x16xf32>
    %272 = tpu.matmul %267, %269, %cst_118 {dimension_numbers = #tpu.dot_dimension_numbers<[1], [1], [0], [0], [0, 0, 1, 0], [], []>} : vector<16x8xbf16>, vector<16x8xbf16>, vector<16x16xf32> -> vector<16x16xf32>
    %273 = arith.addf %272, %265 : vector<16x16xf32>
    %cst_119 = arith.constant dense<0xFF800000> : vector<16xf32>
    %274 = vector.multi_reduction <maximumf>, %273, %cst_119 [1] : vector<16x16xf32> to vector<16xf32>
    %275 = vector.shape_cast %274 : vector<16xf32> to vector<16x1xf32>
    %276 = vector.broadcast %275 : vector<16x1xf32> to vector<16x16xf32>
    %277 = arith.subf %273, %276 : vector<16x16xf32>
    %278 = math.exp %277 : vector<16x16xf32>
    %cst_120 = arith.constant dense<0.000000e+00> : vector<16xf32>
    %279 = vector.multi_reduction <add>, %278, %cst_120 [1] : vector<16x16xf32> to vector<16xf32>
    %280 = vector.shape_cast %279 : vector<16xf32> to vector<16x1xf32>
    %281 = vector.broadcast %280 : vector<16x1xf32> to vector<16x16xf32>
    %282 = arith.divf %278, %281 : vector<16x16xf32>
    %283 = arith.truncf %282 : vector<16x16xf32> to vector<16x16xbf16>
    %cst_121 = arith.constant dense<0.000000e+00> : vector<16x8xf32>
    %284 = tpu.matmul %283, %271, %cst_121 {dimension_numbers = #tpu.dot_dimension_numbers<[1], [0], [0], [1], [0, 0, 1, 1], [], []>} : vector<16x16xbf16>, vector<16x8xbf16>, vector<16x8xf32> -> vector<16x8xf32>
    %c6_i32_122 = arith.constant 6 : i32
    %285 = arith.muli %arg1, %c6_i32_122 : i32
    %c0_i32_123 = arith.constant 0 : i32
    %286 = arith.addi %285, %c0_i32_123 : i32
    %c4_i32_124 = arith.constant 4 : i32
    %287 = arith.muli %286, %c4_i32_124 : i32
    %c3_i32_125 = arith.constant 3 : i32
    %288 = arith.addi %287, %c3_i32_125 : i32
    %289 = arith.index_cast %288 : i32 to index
    %290 = memref.load %arg7[%289] : memref<48xf32, #tpu.memory_space<smem>>
    %291 = vector.broadcast %290 : f32 to vector<16x16xf32>
    %292 = arith.mulf %40, %291 : vector<16x16xf32>
    %c6_i32_126 = arith.constant 6 : i32
    %293 = arith.muli %arg1, %c6_i32_126 : i32
    %c1_i32_127 = arith.constant 1 : i32
    %294 = arith.addi %293, %c1_i32_127 : i32
    %c4_i32_128 = arith.constant 4 : i32
    %295 = arith.muli %294, %c4_i32_128 : i32
    %c3_i32_129 = arith.constant 3 : i32
    %296 = arith.addi %295, %c3_i32_129 : i32
    %297 = arith.index_cast %296 : i32 to index
    %298 = memref.load %arg7[%297] : memref<48xf32, #tpu.memory_space<smem>>
    %299 = vector.broadcast %298 : f32 to vector<16x16xf32>
    %300 = arith.mulf %42, %299 : vector<16x16xf32>
    %301 = arith.addf %292, %300 : vector<16x16xf32>
    %c6_i32_130 = arith.constant 6 : i32
    %302 = arith.muli %arg1, %c6_i32_130 : i32
    %c2_i32_131 = arith.constant 2 : i32
    %303 = arith.addi %302, %c2_i32_131 : i32
    %c4_i32_132 = arith.constant 4 : i32
    %304 = arith.muli %303, %c4_i32_132 : i32
    %c3_i32_133 = arith.constant 3 : i32
    %305 = arith.addi %304, %c3_i32_133 : i32
    %306 = arith.index_cast %305 : i32 to index
    %307 = memref.load %arg7[%306] : memref<48xf32, #tpu.memory_space<smem>>
    %308 = vector.broadcast %307 : f32 to vector<16x16xf32>
    %309 = arith.mulf %44, %308 : vector<16x16xf32>
    %310 = arith.addf %301, %309 : vector<16x16xf32>
    %c6_i32_134 = arith.constant 6 : i32
    %311 = arith.muli %arg1, %c6_i32_134 : i32
    %c3_i32_135 = arith.constant 3 : i32
    %312 = arith.addi %311, %c3_i32_135 : i32
    %c4_i32_136 = arith.constant 4 : i32
    %313 = arith.muli %312, %c4_i32_136 : i32
    %c3_i32_137 = arith.constant 3 : i32
    %314 = arith.addi %313, %c3_i32_137 : i32
    %315 = arith.index_cast %314 : i32 to index
    %316 = memref.load %arg7[%315] : memref<48xf32, #tpu.memory_space<smem>>
    %317 = vector.broadcast %316 : f32 to vector<16x16xf32>
    %318 = arith.mulf %46, %317 : vector<16x16xf32>
    %319 = arith.addf %310, %318 : vector<16x16xf32>
    %c6_i32_138 = arith.constant 6 : i32
    %320 = arith.muli %arg1, %c6_i32_138 : i32
    %c4_i32_139 = arith.constant 4 : i32
    %321 = arith.addi %320, %c4_i32_139 : i32
    %c4_i32_140 = arith.constant 4 : i32
    %322 = arith.muli %321, %c4_i32_140 : i32
    %c3_i32_141 = arith.constant 3 : i32
    %323 = arith.addi %322, %c3_i32_141 : i32
    %324 = arith.index_cast %323 : i32 to index
    %325 = memref.load %arg7[%324] : memref<48xf32, #tpu.memory_space<smem>>
    %326 = vector.broadcast %325 : f32 to vector<16x16xf32>
    %327 = arith.mulf %48, %326 : vector<16x16xf32>
    %328 = arith.addf %319, %327 : vector<16x16xf32>
    %c6_i32_142 = arith.constant 6 : i32
    %329 = arith.muli %arg1, %c6_i32_142 : i32
    %c5_i32_143 = arith.constant 5 : i32
    %330 = arith.addi %329, %c5_i32_143 : i32
    %c4_i32_144 = arith.constant 4 : i32
    %331 = arith.muli %330, %c4_i32_144 : i32
    %c3_i32_145 = arith.constant 3 : i32
    %332 = arith.addi %331, %c3_i32_145 : i32
    %333 = arith.index_cast %332 : i32 to index
    %334 = memref.load %arg7[%333] : memref<48xf32, #tpu.memory_space<smem>>
    %335 = vector.broadcast %334 : f32 to vector<16x16xf32>
    %336 = arith.mulf %50, %335 : vector<16x16xf32>
    %337 = arith.addf %328, %336 : vector<16x16xf32>
    %c4_i32_146 = arith.constant 4 : i32
    %338 = arith.muli %arg1, %c4_i32_146 : i32
    %c3_i32_147 = arith.constant 3 : i32
    %339 = arith.addi %338, %c3_i32_147 : i32
    %340 = arith.index_cast %339 : i32 to index
    %341 = memref.load %arg8[%340] : memref<8xf32, #tpu.memory_space<smem>>
    %342 = vector.broadcast %341 : f32 to vector<16x16xf32>
    %343 = arith.addf %337, %342 : vector<16x16xf32>
    %344 = vector.extract_strided_slice %38 {offsets = [0, 24], sizes = [16, 8], strides = [1, 1]} : vector<16x96xf32> to vector<16x8xf32>
    %345 = arith.truncf %344 : vector<16x8xf32> to vector<16x8xbf16>
    %346 = vector.extract_strided_slice %38 {offsets = [0, 56], sizes = [16, 8], strides = [1, 1]} : vector<16x96xf32> to vector<16x8xf32>
    %347 = arith.truncf %346 : vector<16x8xf32> to vector<16x8xbf16>
    %348 = vector.extract_strided_slice %38 {offsets = [0, 88], sizes = [16, 8], strides = [1, 1]} : vector<16x96xf32> to vector<16x8xf32>
    %349 = arith.truncf %348 : vector<16x8xf32> to vector<16x8xbf16>
    %cst_148 = arith.constant dense<0.000000e+00> : vector<16x16xf32>
    %350 = tpu.matmul %345, %347, %cst_148 {dimension_numbers = #tpu.dot_dimension_numbers<[1], [1], [0], [0], [0, 0, 1, 0], [], []>} : vector<16x8xbf16>, vector<16x8xbf16>, vector<16x16xf32> -> vector<16x16xf32>
    %351 = arith.addf %350, %343 : vector<16x16xf32>
    %cst_149 = arith.constant dense<0xFF800000> : vector<16xf32>
    %352 = vector.multi_reduction <maximumf>, %351, %cst_149 [1] : vector<16x16xf32> to vector<16xf32>
    %353 = vector.shape_cast %352 : vector<16xf32> to vector<16x1xf32>
    %354 = vector.broadcast %353 : vector<16x1xf32> to vector<16x16xf32>
    %355 = arith.subf %351, %354 : vector<16x16xf32>
    %356 = math.exp %355 : vector<16x16xf32>
    %cst_150 = arith.constant dense<0.000000e+00> : vector<16xf32>
    %357 = vector.multi_reduction <add>, %356, %cst_150 [1] : vector<16x16xf32> to vector<16xf32>
    %358 = vector.shape_cast %357 : vector<16xf32> to vector<16x1xf32>
    %359 = vector.broadcast %358 : vector<16x1xf32> to vector<16x16xf32>
    %360 = arith.divf %356, %359 : vector<16x16xf32>
    %361 = arith.truncf %360 : vector<16x16xf32> to vector<16x16xbf16>
    %cst_151 = arith.constant dense<0.000000e+00> : vector<16x8xf32>
    %362 = tpu.matmul %361, %349, %cst_151 {dimension_numbers = #tpu.dot_dimension_numbers<[1], [0], [0], [1], [0, 0, 1, 1], [], []>} : vector<16x16xbf16>, vector<16x8xbf16>, vector<16x8xf32> -> vector<16x8xf32>
    %363 = tpu.concatenate %128, %206, %284, %362 in 1 : vector<16x8xf32>, vector<16x8xf32>, vector<16x8xf32>, vector<16x8xf32> -> vector<16x32xf32>
    %364 = vector.extract_strided_slice %37 {offsets = [16, 0], sizes = [16, 96], strides = [1, 1]} : vector<32x96xf32> to vector<16x96xf32>
    %c1_152 = arith.constant 1 : index
    %c0_153 = arith.constant 0 : index
    %c0_154 = arith.constant 0 : index
    %c0_155 = arith.constant 0 : index
    %365 = vector.load %arg3[%c1_152, %c0_153, %c0_154, %c0_155] : memref<2x6x16x16xf32, #tpu.memory_space<vmem>>, vector<1x1x16x16xf32>
    %366 = vector.shape_cast %365 : vector<1x1x16x16xf32> to vector<16x16xf32>
    %c1_156 = arith.constant 1 : index
    %c1_157 = arith.constant 1 : index
    %c0_158 = arith.constant 0 : index
    %c0_159 = arith.constant 0 : index
    %367 = vector.load %arg3[%c1_156, %c1_157, %c0_158, %c0_159] : memref<2x6x16x16xf32, #tpu.memory_space<vmem>>, vector<1x1x16x16xf32>
    %368 = vector.shape_cast %367 : vector<1x1x16x16xf32> to vector<16x16xf32>
    %c1_160 = arith.constant 1 : index
    %c2_161 = arith.constant 2 : index
    %c0_162 = arith.constant 0 : index
    %c0_163 = arith.constant 0 : index
    %369 = vector.load %arg3[%c1_160, %c2_161, %c0_162, %c0_163] : memref<2x6x16x16xf32, #tpu.memory_space<vmem>>, vector<1x1x16x16xf32>
    %370 = vector.shape_cast %369 : vector<1x1x16x16xf32> to vector<16x16xf32>
    %c1_164 = arith.constant 1 : index
    %c3_165 = arith.constant 3 : index
    %c0_166 = arith.constant 0 : index
    %c0_167 = arith.constant 0 : index
    %371 = vector.load %arg3[%c1_164, %c3_165, %c0_166, %c0_167] : memref<2x6x16x16xf32, #tpu.memory_space<vmem>>, vector<1x1x16x16xf32>
    %372 = vector.shape_cast %371 : vector<1x1x16x16xf32> to vector<16x16xf32>
    %c1_168 = arith.constant 1 : index
    %c4_169 = arith.constant 4 : index
    %c0_170 = arith.constant 0 : index
    %c0_171 = arith.constant 0 : index
    %373 = vector.load %arg3[%c1_168, %c4_169, %c0_170, %c0_171] : memref<2x6x16x16xf32, #tpu.memory_space<vmem>>, vector<1x1x16x16xf32>
    %374 = vector.shape_cast %373 : vector<1x1x16x16xf32> to vector<16x16xf32>
    %c1_172 = arith.constant 1 : index
    %c5_173 = arith.constant 5 : index
    %c0_174 = arith.constant 0 : index
    %c0_175 = arith.constant 0 : index
    %375 = vector.load %arg3[%c1_172, %c5_173, %c0_174, %c0_175] : memref<2x6x16x16xf32, #tpu.memory_space<vmem>>, vector<1x1x16x16xf32>
    %376 = vector.shape_cast %375 : vector<1x1x16x16xf32> to vector<16x16xf32>
    %c6_i32_176 = arith.constant 6 : i32
    %377 = arith.muli %arg1, %c6_i32_176 : i32
    %c0_i32_177 = arith.constant 0 : i32
    %378 = arith.addi %377, %c0_i32_177 : i32
    %c4_i32_178 = arith.constant 4 : i32
    %379 = arith.muli %378, %c4_i32_178 : i32
    %c0_i32_179 = arith.constant 0 : i32
    %380 = arith.addi %379, %c0_i32_179 : i32
    %381 = arith.index_cast %380 : i32 to index
    %382 = memref.load %arg7[%381] : memref<48xf32, #tpu.memory_space<smem>>
    %383 = vector.broadcast %382 : f32 to vector<16x16xf32>
    %384 = arith.mulf %366, %383 : vector<16x16xf32>
    %c6_i32_180 = arith.constant 6 : i32
    %385 = arith.muli %arg1, %c6_i32_180 : i32
    %c1_i32_181 = arith.constant 1 : i32
    %386 = arith.addi %385, %c1_i32_181 : i32
    %c4_i32_182 = arith.constant 4 : i32
    %387 = arith.muli %386, %c4_i32_182 : i32
    %c0_i32_183 = arith.constant 0 : i32
    %388 = arith.addi %387, %c0_i32_183 : i32
    %389 = arith.index_cast %388 : i32 to index
    %390 = memref.load %arg7[%389] : memref<48xf32, #tpu.memory_space<smem>>
    %391 = vector.broadcast %390 : f32 to vector<16x16xf32>
    %392 = arith.mulf %368, %391 : vector<16x16xf32>
    %393 = arith.addf %384, %392 : vector<16x16xf32>
    %c6_i32_184 = arith.constant 6 : i32
    %394 = arith.muli %arg1, %c6_i32_184 : i32
    %c2_i32_185 = arith.constant 2 : i32
    %395 = arith.addi %394, %c2_i32_185 : i32
    %c4_i32_186 = arith.constant 4 : i32
    %396 = arith.muli %395, %c4_i32_186 : i32
    %c0_i32_187 = arith.constant 0 : i32
    %397 = arith.addi %396, %c0_i32_187 : i32
    %398 = arith.index_cast %397 : i32 to index
    %399 = memref.load %arg7[%398] : memref<48xf32, #tpu.memory_space<smem>>
    %400 = vector.broadcast %399 : f32 to vector<16x16xf32>
    %401 = arith.mulf %370, %400 : vector<16x16xf32>
    %402 = arith.addf %393, %401 : vector<16x16xf32>
    %c6_i32_188 = arith.constant 6 : i32
    %403 = arith.muli %arg1, %c6_i32_188 : i32
    %c3_i32_189 = arith.constant 3 : i32
    %404 = arith.addi %403, %c3_i32_189 : i32
    %c4_i32_190 = arith.constant 4 : i32
    %405 = arith.muli %404, %c4_i32_190 : i32
    %c0_i32_191 = arith.constant 0 : i32
    %406 = arith.addi %405, %c0_i32_191 : i32
    %407 = arith.index_cast %406 : i32 to index
    %408 = memref.load %arg7[%407] : memref<48xf32, #tpu.memory_space<smem>>
    %409 = vector.broadcast %408 : f32 to vector<16x16xf32>
    %410 = arith.mulf %372, %409 : vector<16x16xf32>
    %411 = arith.addf %402, %410 : vector<16x16xf32>
    %c6_i32_192 = arith.constant 6 : i32
    %412 = arith.muli %arg1, %c6_i32_192 : i32
    %c4_i32_193 = arith.constant 4 : i32
    %413 = arith.addi %412, %c4_i32_193 : i32
    %c4_i32_194 = arith.constant 4 : i32
    %414 = arith.muli %413, %c4_i32_194 : i32
    %c0_i32_195 = arith.constant 0 : i32
    %415 = arith.addi %414, %c0_i32_195 : i32
    %416 = arith.index_cast %415 : i32 to index
    %417 = memref.load %arg7[%416] : memref<48xf32, #tpu.memory_space<smem>>
    %418 = vector.broadcast %417 : f32 to vector<16x16xf32>
    %419 = arith.mulf %374, %418 : vector<16x16xf32>
    %420 = arith.addf %411, %419 : vector<16x16xf32>
    %c6_i32_196 = arith.constant 6 : i32
    %421 = arith.muli %arg1, %c6_i32_196 : i32
    %c5_i32_197 = arith.constant 5 : i32
    %422 = arith.addi %421, %c5_i32_197 : i32
    %c4_i32_198 = arith.constant 4 : i32
    %423 = arith.muli %422, %c4_i32_198 : i32
    %c0_i32_199 = arith.constant 0 : i32
    %424 = arith.addi %423, %c0_i32_199 : i32
    %425 = arith.index_cast %424 : i32 to index
    %426 = memref.load %arg7[%425] : memref<48xf32, #tpu.memory_space<smem>>
    %427 = vector.broadcast %426 : f32 to vector<16x16xf32>
    %428 = arith.mulf %376, %427 : vector<16x16xf32>
    %429 = arith.addf %420, %428 : vector<16x16xf32>
    %c4_i32_200 = arith.constant 4 : i32
    %430 = arith.muli %arg1, %c4_i32_200 : i32
    %c0_i32_201 = arith.constant 0 : i32
    %431 = arith.addi %430, %c0_i32_201 : i32
    %432 = arith.index_cast %431 : i32 to index
    %433 = memref.load %arg8[%432] : memref<8xf32, #tpu.memory_space<smem>>
    %434 = vector.broadcast %433 : f32 to vector<16x16xf32>
    %435 = arith.addf %429, %434 : vector<16x16xf32>
    %436 = vector.extract_strided_slice %364 {offsets = [0, 0], sizes = [16, 8], strides = [1, 1]} : vector<16x96xf32> to vector<16x8xf32>
    %437 = arith.truncf %436 : vector<16x8xf32> to vector<16x8xbf16>
    %438 = vector.extract_strided_slice %364 {offsets = [0, 32], sizes = [16, 8], strides = [1, 1]} : vector<16x96xf32> to vector<16x8xf32>
    %439 = arith.truncf %438 : vector<16x8xf32> to vector<16x8xbf16>
    %440 = vector.extract_strided_slice %364 {offsets = [0, 64], sizes = [16, 8], strides = [1, 1]} : vector<16x96xf32> to vector<16x8xf32>
    %441 = arith.truncf %440 : vector<16x8xf32> to vector<16x8xbf16>
    %cst_202 = arith.constant dense<0.000000e+00> : vector<16x16xf32>
    %442 = tpu.matmul %437, %439, %cst_202 {dimension_numbers = #tpu.dot_dimension_numbers<[1], [1], [0], [0], [0, 0, 1, 0], [], []>} : vector<16x8xbf16>, vector<16x8xbf16>, vector<16x16xf32> -> vector<16x16xf32>
    %443 = arith.addf %442, %435 : vector<16x16xf32>
    %cst_203 = arith.constant dense<0xFF800000> : vector<16xf32>
    %444 = vector.multi_reduction <maximumf>, %443, %cst_203 [1] : vector<16x16xf32> to vector<16xf32>
    %445 = vector.shape_cast %444 : vector<16xf32> to vector<16x1xf32>
    %446 = vector.broadcast %445 : vector<16x1xf32> to vector<16x16xf32>
    %447 = arith.subf %443, %446 : vector<16x16xf32>
    %448 = math.exp %447 : vector<16x16xf32>
    %cst_204 = arith.constant dense<0.000000e+00> : vector<16xf32>
    %449 = vector.multi_reduction <add>, %448, %cst_204 [1] : vector<16x16xf32> to vector<16xf32>
    %450 = vector.shape_cast %449 : vector<16xf32> to vector<16x1xf32>
    %451 = vector.broadcast %450 : vector<16x1xf32> to vector<16x16xf32>
    %452 = arith.divf %448, %451 : vector<16x16xf32>
    %453 = arith.truncf %452 : vector<16x16xf32> to vector<16x16xbf16>
    %cst_205 = arith.constant dense<0.000000e+00> : vector<16x8xf32>
    %454 = tpu.matmul %453, %441, %cst_205 {dimension_numbers = #tpu.dot_dimension_numbers<[1], [0], [0], [1], [0, 0, 1, 1], [], []>} : vector<16x16xbf16>, vector<16x8xbf16>, vector<16x8xf32> -> vector<16x8xf32>
    %c6_i32_206 = arith.constant 6 : i32
    %455 = arith.muli %arg1, %c6_i32_206 : i32
    %c0_i32_207 = arith.constant 0 : i32
    %456 = arith.addi %455, %c0_i32_207 : i32
    %c4_i32_208 = arith.constant 4 : i32
    %457 = arith.muli %456, %c4_i32_208 : i32
    %c1_i32_209 = arith.constant 1 : i32
    %458 = arith.addi %457, %c1_i32_209 : i32
    %459 = arith.index_cast %458 : i32 to index
    %460 = memref.load %arg7[%459] : memref<48xf32, #tpu.memory_space<smem>>
    %461 = vector.broadcast %460 : f32 to vector<16x16xf32>
    %462 = arith.mulf %366, %461 : vector<16x16xf32>
    %c6_i32_210 = arith.constant 6 : i32
    %463 = arith.muli %arg1, %c6_i32_210 : i32
    %c1_i32_211 = arith.constant 1 : i32
    %464 = arith.addi %463, %c1_i32_211 : i32
    %c4_i32_212 = arith.constant 4 : i32
    %465 = arith.muli %464, %c4_i32_212 : i32
    %c1_i32_213 = arith.constant 1 : i32
    %466 = arith.addi %465, %c1_i32_213 : i32
    %467 = arith.index_cast %466 : i32 to index
    %468 = memref.load %arg7[%467] : memref<48xf32, #tpu.memory_space<smem>>
    %469 = vector.broadcast %468 : f32 to vector<16x16xf32>
    %470 = arith.mulf %368, %469 : vector<16x16xf32>
    %471 = arith.addf %462, %470 : vector<16x16xf32>
    %c6_i32_214 = arith.constant 6 : i32
    %472 = arith.muli %arg1, %c6_i32_214 : i32
    %c2_i32_215 = arith.constant 2 : i32
    %473 = arith.addi %472, %c2_i32_215 : i32
    %c4_i32_216 = arith.constant 4 : i32
    %474 = arith.muli %473, %c4_i32_216 : i32
    %c1_i32_217 = arith.constant 1 : i32
    %475 = arith.addi %474, %c1_i32_217 : i32
    %476 = arith.index_cast %475 : i32 to index
    %477 = memref.load %arg7[%476] : memref<48xf32, #tpu.memory_space<smem>>
    %478 = vector.broadcast %477 : f32 to vector<16x16xf32>
    %479 = arith.mulf %370, %478 : vector<16x16xf32>
    %480 = arith.addf %471, %479 : vector<16x16xf32>
    %c6_i32_218 = arith.constant 6 : i32
    %481 = arith.muli %arg1, %c6_i32_218 : i32
    %c3_i32_219 = arith.constant 3 : i32
    %482 = arith.addi %481, %c3_i32_219 : i32
    %c4_i32_220 = arith.constant 4 : i32
    %483 = arith.muli %482, %c4_i32_220 : i32
    %c1_i32_221 = arith.constant 1 : i32
    %484 = arith.addi %483, %c1_i32_221 : i32
    %485 = arith.index_cast %484 : i32 to index
    %486 = memref.load %arg7[%485] : memref<48xf32, #tpu.memory_space<smem>>
    %487 = vector.broadcast %486 : f32 to vector<16x16xf32>
    %488 = arith.mulf %372, %487 : vector<16x16xf32>
    %489 = arith.addf %480, %488 : vector<16x16xf32>
    %c6_i32_222 = arith.constant 6 : i32
    %490 = arith.muli %arg1, %c6_i32_222 : i32
    %c4_i32_223 = arith.constant 4 : i32
    %491 = arith.addi %490, %c4_i32_223 : i32
    %c4_i32_224 = arith.constant 4 : i32
    %492 = arith.muli %491, %c4_i32_224 : i32
    %c1_i32_225 = arith.constant 1 : i32
    %493 = arith.addi %492, %c1_i32_225 : i32
    %494 = arith.index_cast %493 : i32 to index
    %495 = memref.load %arg7[%494] : memref<48xf32, #tpu.memory_space<smem>>
    %496 = vector.broadcast %495 : f32 to vector<16x16xf32>
    %497 = arith.mulf %374, %496 : vector<16x16xf32>
    %498 = arith.addf %489, %497 : vector<16x16xf32>
    %c6_i32_226 = arith.constant 6 : i32
    %499 = arith.muli %arg1, %c6_i32_226 : i32
    %c5_i32_227 = arith.constant 5 : i32
    %500 = arith.addi %499, %c5_i32_227 : i32
    %c4_i32_228 = arith.constant 4 : i32
    %501 = arith.muli %500, %c4_i32_228 : i32
    %c1_i32_229 = arith.constant 1 : i32
    %502 = arith.addi %501, %c1_i32_229 : i32
    %503 = arith.index_cast %502 : i32 to index
    %504 = memref.load %arg7[%503] : memref<48xf32, #tpu.memory_space<smem>>
    %505 = vector.broadcast %504 : f32 to vector<16x16xf32>
    %506 = arith.mulf %376, %505 : vector<16x16xf32>
    %507 = arith.addf %498, %506 : vector<16x16xf32>
    %c4_i32_230 = arith.constant 4 : i32
    %508 = arith.muli %arg1, %c4_i32_230 : i32
    %c1_i32_231 = arith.constant 1 : i32
    %509 = arith.addi %508, %c1_i32_231 : i32
    %510 = arith.index_cast %509 : i32 to index
    %511 = memref.load %arg8[%510] : memref<8xf32, #tpu.memory_space<smem>>
    %512 = vector.broadcast %511 : f32 to vector<16x16xf32>
    %513 = arith.addf %507, %512 : vector<16x16xf32>
    %514 = vector.extract_strided_slice %364 {offsets = [0, 8], sizes = [16, 8], strides = [1, 1]} : vector<16x96xf32> to vector<16x8xf32>
    %515 = arith.truncf %514 : vector<16x8xf32> to vector<16x8xbf16>
    %516 = vector.extract_strided_slice %364 {offsets = [0, 40], sizes = [16, 8], strides = [1, 1]} : vector<16x96xf32> to vector<16x8xf32>
    %517 = arith.truncf %516 : vector<16x8xf32> to vector<16x8xbf16>
    %518 = vector.extract_strided_slice %364 {offsets = [0, 72], sizes = [16, 8], strides = [1, 1]} : vector<16x96xf32> to vector<16x8xf32>
    %519 = arith.truncf %518 : vector<16x8xf32> to vector<16x8xbf16>
    %cst_232 = arith.constant dense<0.000000e+00> : vector<16x16xf32>
    %520 = tpu.matmul %515, %517, %cst_232 {dimension_numbers = #tpu.dot_dimension_numbers<[1], [1], [0], [0], [0, 0, 1, 0], [], []>} : vector<16x8xbf16>, vector<16x8xbf16>, vector<16x16xf32> -> vector<16x16xf32>
    %521 = arith.addf %520, %513 : vector<16x16xf32>
    %cst_233 = arith.constant dense<0xFF800000> : vector<16xf32>
    %522 = vector.multi_reduction <maximumf>, %521, %cst_233 [1] : vector<16x16xf32> to vector<16xf32>
    %523 = vector.shape_cast %522 : vector<16xf32> to vector<16x1xf32>
    %524 = vector.broadcast %523 : vector<16x1xf32> to vector<16x16xf32>
    %525 = arith.subf %521, %524 : vector<16x16xf32>
    %526 = math.exp %525 : vector<16x16xf32>
    %cst_234 = arith.constant dense<0.000000e+00> : vector<16xf32>
    %527 = vector.multi_reduction <add>, %526, %cst_234 [1] : vector<16x16xf32> to vector<16xf32>
    %528 = vector.shape_cast %527 : vector<16xf32> to vector<16x1xf32>
    %529 = vector.broadcast %528 : vector<16x1xf32> to vector<16x16xf32>
    %530 = arith.divf %526, %529 : vector<16x16xf32>
    %531 = arith.truncf %530 : vector<16x16xf32> to vector<16x16xbf16>
    %cst_235 = arith.constant dense<0.000000e+00> : vector<16x8xf32>
    %532 = tpu.matmul %531, %519, %cst_235 {dimension_numbers = #tpu.dot_dimension_numbers<[1], [0], [0], [1], [0, 0, 1, 1], [], []>} : vector<16x16xbf16>, vector<16x8xbf16>, vector<16x8xf32> -> vector<16x8xf32>
    %c6_i32_236 = arith.constant 6 : i32
    %533 = arith.muli %arg1, %c6_i32_236 : i32
    %c0_i32_237 = arith.constant 0 : i32
    %534 = arith.addi %533, %c0_i32_237 : i32
    %c4_i32_238 = arith.constant 4 : i32
    %535 = arith.muli %534, %c4_i32_238 : i32
    %c2_i32_239 = arith.constant 2 : i32
    %536 = arith.addi %535, %c2_i32_239 : i32
    %537 = arith.index_cast %536 : i32 to index
    %538 = memref.load %arg7[%537] : memref<48xf32, #tpu.memory_space<smem>>
    %539 = vector.broadcast %538 : f32 to vector<16x16xf32>
    %540 = arith.mulf %366, %539 : vector<16x16xf32>
    %c6_i32_240 = arith.constant 6 : i32
    %541 = arith.muli %arg1, %c6_i32_240 : i32
    %c1_i32_241 = arith.constant 1 : i32
    %542 = arith.addi %541, %c1_i32_241 : i32
    %c4_i32_242 = arith.constant 4 : i32
    %543 = arith.muli %542, %c4_i32_242 : i32
    %c2_i32_243 = arith.constant 2 : i32
    %544 = arith.addi %543, %c2_i32_243 : i32
    %545 = arith.index_cast %544 : i32 to index
    %546 = memref.load %arg7[%545] : memref<48xf32, #tpu.memory_space<smem>>
    %547 = vector.broadcast %546 : f32 to vector<16x16xf32>
    %548 = arith.mulf %368, %547 : vector<16x16xf32>
    %549 = arith.addf %540, %548 : vector<16x16xf32>
    %c6_i32_244 = arith.constant 6 : i32
    %550 = arith.muli %arg1, %c6_i32_244 : i32
    %c2_i32_245 = arith.constant 2 : i32
    %551 = arith.addi %550, %c2_i32_245 : i32
    %c4_i32_246 = arith.constant 4 : i32
    %552 = arith.muli %551, %c4_i32_246 : i32
    %c2_i32_247 = arith.constant 2 : i32
    %553 = arith.addi %552, %c2_i32_247 : i32
    %554 = arith.index_cast %553 : i32 to index
    %555 = memref.load %arg7[%554] : memref<48xf32, #tpu.memory_space<smem>>
    %556 = vector.broadcast %555 : f32 to vector<16x16xf32>
    %557 = arith.mulf %370, %556 : vector<16x16xf32>
    %558 = arith.addf %549, %557 : vector<16x16xf32>
    %c6_i32_248 = arith.constant 6 : i32
    %559 = arith.muli %arg1, %c6_i32_248 : i32
    %c3_i32_249 = arith.constant 3 : i32
    %560 = arith.addi %559, %c3_i32_249 : i32
    %c4_i32_250 = arith.constant 4 : i32
    %561 = arith.muli %560, %c4_i32_250 : i32
    %c2_i32_251 = arith.constant 2 : i32
    %562 = arith.addi %561, %c2_i32_251 : i32
    %563 = arith.index_cast %562 : i32 to index
    %564 = memref.load %arg7[%563] : memref<48xf32, #tpu.memory_space<smem>>
    %565 = vector.broadcast %564 : f32 to vector<16x16xf32>
    %566 = arith.mulf %372, %565 : vector<16x16xf32>
    %567 = arith.addf %558, %566 : vector<16x16xf32>
    %c6_i32_252 = arith.constant 6 : i32
    %568 = arith.muli %arg1, %c6_i32_252 : i32
    %c4_i32_253 = arith.constant 4 : i32
    %569 = arith.addi %568, %c4_i32_253 : i32
    %c4_i32_254 = arith.constant 4 : i32
    %570 = arith.muli %569, %c4_i32_254 : i32
    %c2_i32_255 = arith.constant 2 : i32
    %571 = arith.addi %570, %c2_i32_255 : i32
    %572 = arith.index_cast %571 : i32 to index
    %573 = memref.load %arg7[%572] : memref<48xf32, #tpu.memory_space<smem>>
    %574 = vector.broadcast %573 : f32 to vector<16x16xf32>
    %575 = arith.mulf %374, %574 : vector<16x16xf32>
    %576 = arith.addf %567, %575 : vector<16x16xf32>
    %c6_i32_256 = arith.constant 6 : i32
    %577 = arith.muli %arg1, %c6_i32_256 : i32
    %c5_i32_257 = arith.constant 5 : i32
    %578 = arith.addi %577, %c5_i32_257 : i32
    %c4_i32_258 = arith.constant 4 : i32
    %579 = arith.muli %578, %c4_i32_258 : i32
    %c2_i32_259 = arith.constant 2 : i32
    %580 = arith.addi %579, %c2_i32_259 : i32
    %581 = arith.index_cast %580 : i32 to index
    %582 = memref.load %arg7[%581] : memref<48xf32, #tpu.memory_space<smem>>
    %583 = vector.broadcast %582 : f32 to vector<16x16xf32>
    %584 = arith.mulf %376, %583 : vector<16x16xf32>
    %585 = arith.addf %576, %584 : vector<16x16xf32>
    %c4_i32_260 = arith.constant 4 : i32
    %586 = arith.muli %arg1, %c4_i32_260 : i32
    %c2_i32_261 = arith.constant 2 : i32
    %587 = arith.addi %586, %c2_i32_261 : i32
    %588 = arith.index_cast %587 : i32 to index
    %589 = memref.load %arg8[%588] : memref<8xf32, #tpu.memory_space<smem>>
    %590 = vector.broadcast %589 : f32 to vector<16x16xf32>
    %591 = arith.addf %585, %590 : vector<16x16xf32>
    %592 = vector.extract_strided_slice %364 {offsets = [0, 16], sizes = [16, 8], strides = [1, 1]} : vector<16x96xf32> to vector<16x8xf32>
    %593 = arith.truncf %592 : vector<16x8xf32> to vector<16x8xbf16>
    %594 = vector.extract_strided_slice %364 {offsets = [0, 48], sizes = [16, 8], strides = [1, 1]} : vector<16x96xf32> to vector<16x8xf32>
    %595 = arith.truncf %594 : vector<16x8xf32> to vector<16x8xbf16>
    %596 = vector.extract_strided_slice %364 {offsets = [0, 80], sizes = [16, 8], strides = [1, 1]} : vector<16x96xf32> to vector<16x8xf32>
    %597 = arith.truncf %596 : vector<16x8xf32> to vector<16x8xbf16>
    %cst_262 = arith.constant dense<0.000000e+00> : vector<16x16xf32>
    %598 = tpu.matmul %593, %595, %cst_262 {dimension_numbers = #tpu.dot_dimension_numbers<[1], [1], [0], [0], [0, 0, 1, 0], [], []>} : vector<16x8xbf16>, vector<16x8xbf16>, vector<16x16xf32> -> vector<16x16xf32>
    %599 = arith.addf %598, %591 : vector<16x16xf32>
    %cst_263 = arith.constant dense<0xFF800000> : vector<16xf32>
    %600 = vector.multi_reduction <maximumf>, %599, %cst_263 [1] : vector<16x16xf32> to vector<16xf32>
    %601 = vector.shape_cast %600 : vector<16xf32> to vector<16x1xf32>
    %602 = vector.broadcast %601 : vector<16x1xf32> to vector<16x16xf32>
    %603 = arith.subf %599, %602 : vector<16x16xf32>
    %604 = math.exp %603 : vector<16x16xf32>
    %cst_264 = arith.constant dense<0.000000e+00> : vector<16xf32>
    %605 = vector.multi_reduction <add>, %604, %cst_264 [1] : vector<16x16xf32> to vector<16xf32>
    %606 = vector.shape_cast %605 : vector<16xf32> to vector<16x1xf32>
    %607 = vector.broadcast %606 : vector<16x1xf32> to vector<16x16xf32>
    %608 = arith.divf %604, %607 : vector<16x16xf32>
    %609 = arith.truncf %608 : vector<16x16xf32> to vector<16x16xbf16>
    %cst_265 = arith.constant dense<0.000000e+00> : vector<16x8xf32>
    %610 = tpu.matmul %609, %597, %cst_265 {dimension_numbers = #tpu.dot_dimension_numbers<[1], [0], [0], [1], [0, 0, 1, 1], [], []>} : vector<16x16xbf16>, vector<16x8xbf16>, vector<16x8xf32> -> vector<16x8xf32>
    %c6_i32_266 = arith.constant 6 : i32
    %611 = arith.muli %arg1, %c6_i32_266 : i32
    %c0_i32_267 = arith.constant 0 : i32
    %612 = arith.addi %611, %c0_i32_267 : i32
    %c4_i32_268 = arith.constant 4 : i32
    %613 = arith.muli %612, %c4_i32_268 : i32
    %c3_i32_269 = arith.constant 3 : i32
    %614 = arith.addi %613, %c3_i32_269 : i32
    %615 = arith.index_cast %614 : i32 to index
    %616 = memref.load %arg7[%615] : memref<48xf32, #tpu.memory_space<smem>>
    %617 = vector.broadcast %616 : f32 to vector<16x16xf32>
    %618 = arith.mulf %366, %617 : vector<16x16xf32>
    %c6_i32_270 = arith.constant 6 : i32
    %619 = arith.muli %arg1, %c6_i32_270 : i32
    %c1_i32_271 = arith.constant 1 : i32
    %620 = arith.addi %619, %c1_i32_271 : i32
    %c4_i32_272 = arith.constant 4 : i32
    %621 = arith.muli %620, %c4_i32_272 : i32
    %c3_i32_273 = arith.constant 3 : i32
    %622 = arith.addi %621, %c3_i32_273 : i32
    %623 = arith.index_cast %622 : i32 to index
    %624 = memref.load %arg7[%623] : memref<48xf32, #tpu.memory_space<smem>>
    %625 = vector.broadcast %624 : f32 to vector<16x16xf32>
    %626 = arith.mulf %368, %625 : vector<16x16xf32>
    %627 = arith.addf %618, %626 : vector<16x16xf32>
    %c6_i32_274 = arith.constant 6 : i32
    %628 = arith.muli %arg1, %c6_i32_274 : i32
    %c2_i32_275 = arith.constant 2 : i32
    %629 = arith.addi %628, %c2_i32_275 : i32
    %c4_i32_276 = arith.constant 4 : i32
    %630 = arith.muli %629, %c4_i32_276 : i32
    %c3_i32_277 = arith.constant 3 : i32
    %631 = arith.addi %630, %c3_i32_277 : i32
    %632 = arith.index_cast %631 : i32 to index
    %633 = memref.load %arg7[%632] : memref<48xf32, #tpu.memory_space<smem>>
    %634 = vector.broadcast %633 : f32 to vector<16x16xf32>
    %635 = arith.mulf %370, %634 : vector<16x16xf32>
    %636 = arith.addf %627, %635 : vector<16x16xf32>
    %c6_i32_278 = arith.constant 6 : i32
    %637 = arith.muli %arg1, %c6_i32_278 : i32
    %c3_i32_279 = arith.constant 3 : i32
    %638 = arith.addi %637, %c3_i32_279 : i32
    %c4_i32_280 = arith.constant 4 : i32
    %639 = arith.muli %638, %c4_i32_280 : i32
    %c3_i32_281 = arith.constant 3 : i32
    %640 = arith.addi %639, %c3_i32_281 : i32
    %641 = arith.index_cast %640 : i32 to index
    %642 = memref.load %arg7[%641] : memref<48xf32, #tpu.memory_space<smem>>
    %643 = vector.broadcast %642 : f32 to vector<16x16xf32>
    %644 = arith.mulf %372, %643 : vector<16x16xf32>
    %645 = arith.addf %636, %644 : vector<16x16xf32>
    %c6_i32_282 = arith.constant 6 : i32
    %646 = arith.muli %arg1, %c6_i32_282 : i32
    %c4_i32_283 = arith.constant 4 : i32
    %647 = arith.addi %646, %c4_i32_283 : i32
    %c4_i32_284 = arith.constant 4 : i32
    %648 = arith.muli %647, %c4_i32_284 : i32
    %c3_i32_285 = arith.constant 3 : i32
    %649 = arith.addi %648, %c3_i32_285 : i32
    %650 = arith.index_cast %649 : i32 to index
    %651 = memref.load %arg7[%650] : memref<48xf32, #tpu.memory_space<smem>>
    %652 = vector.broadcast %651 : f32 to vector<16x16xf32>
    %653 = arith.mulf %374, %652 : vector<16x16xf32>
    %654 = arith.addf %645, %653 : vector<16x16xf32>
    %c6_i32_286 = arith.constant 6 : i32
    %655 = arith.muli %arg1, %c6_i32_286 : i32
    %c5_i32_287 = arith.constant 5 : i32
    %656 = arith.addi %655, %c5_i32_287 : i32
    %c4_i32_288 = arith.constant 4 : i32
    %657 = arith.muli %656, %c4_i32_288 : i32
    %c3_i32_289 = arith.constant 3 : i32
    %658 = arith.addi %657, %c3_i32_289 : i32
    %659 = arith.index_cast %658 : i32 to index
    %660 = memref.load %arg7[%659] : memref<48xf32, #tpu.memory_space<smem>>
    %661 = vector.broadcast %660 : f32 to vector<16x16xf32>
    %662 = arith.mulf %376, %661 : vector<16x16xf32>
    %663 = arith.addf %654, %662 : vector<16x16xf32>
    %c4_i32_290 = arith.constant 4 : i32
    %664 = arith.muli %arg1, %c4_i32_290 : i32
    %c3_i32_291 = arith.constant 3 : i32
    %665 = arith.addi %664, %c3_i32_291 : i32
    %666 = arith.index_cast %665 : i32 to index
    %667 = memref.load %arg8[%666] : memref<8xf32, #tpu.memory_space<smem>>
    %668 = vector.broadcast %667 : f32 to vector<16x16xf32>
    %669 = arith.addf %663, %668 : vector<16x16xf32>
    %670 = vector.extract_strided_slice %364 {offsets = [0, 24], sizes = [16, 8], strides = [1, 1]} : vector<16x96xf32> to vector<16x8xf32>
    %671 = arith.truncf %670 : vector<16x8xf32> to vector<16x8xbf16>
    %672 = vector.extract_strided_slice %364 {offsets = [0, 56], sizes = [16, 8], strides = [1, 1]} : vector<16x96xf32> to vector<16x8xf32>
    %673 = arith.truncf %672 : vector<16x8xf32> to vector<16x8xbf16>
    %674 = vector.extract_strided_slice %364 {offsets = [0, 88], sizes = [16, 8], strides = [1, 1]} : vector<16x96xf32> to vector<16x8xf32>
    %675 = arith.truncf %674 : vector<16x8xf32> to vector<16x8xbf16>
    %cst_292 = arith.constant dense<0.000000e+00> : vector<16x16xf32>
    %676 = tpu.matmul %671, %673, %cst_292 {dimension_numbers = #tpu.dot_dimension_numbers<[1], [1], [0], [0], [0, 0, 1, 0], [], []>} : vector<16x8xbf16>, vector<16x8xbf16>, vector<16x16xf32> -> vector<16x16xf32>
    %677 = arith.addf %676, %669 : vector<16x16xf32>
    %cst_293 = arith.constant dense<0xFF800000> : vector<16xf32>
    %678 = vector.multi_reduction <maximumf>, %677, %cst_293 [1] : vector<16x16xf32> to vector<16xf32>
    %679 = vector.shape_cast %678 : vector<16xf32> to vector<16x1xf32>
    %680 = vector.broadcast %679 : vector<16x1xf32> to vector<16x16xf32>
    %681 = arith.subf %677, %680 : vector<16x16xf32>
    %682 = math.exp %681 : vector<16x16xf32>
    %cst_294 = arith.constant dense<0.000000e+00> : vector<16xf32>
    %683 = vector.multi_reduction <add>, %682, %cst_294 [1] : vector<16x16xf32> to vector<16xf32>
    %684 = vector.shape_cast %683 : vector<16xf32> to vector<16x1xf32>
    %685 = vector.broadcast %684 : vector<16x1xf32> to vector<16x16xf32>
    %686 = arith.divf %682, %685 : vector<16x16xf32>
    %687 = arith.truncf %686 : vector<16x16xf32> to vector<16x16xbf16>
    %cst_295 = arith.constant dense<0.000000e+00> : vector<16x8xf32>
    %688 = tpu.matmul %687, %675, %cst_295 {dimension_numbers = #tpu.dot_dimension_numbers<[1], [0], [0], [1], [0, 0, 1, 1], [], []>} : vector<16x16xbf16>, vector<16x8xbf16>, vector<16x8xf32> -> vector<16x8xf32>
    %689 = tpu.concatenate %454, %532, %610, %688 in 1 : vector<16x8xf32>, vector<16x8xf32>, vector<16x8xf32>, vector<16x8xf32> -> vector<16x32xf32>
    %690 = tpu.concatenate %363, %689 in 0 : vector<16x32xf32>, vector<16x32xf32> -> vector<32x32xf32>
    %691 = arith.truncf %690 : vector<32x32xf32> to vector<32x32xbf16>
    %c0_296 = arith.constant 0 : index
    %c0_297 = arith.constant 0 : index
    %c0_298 = arith.constant 0 : index
    %692 = vector.load %arg13[%c0_296, %c0_297, %c0_298] : memref<1x32x32xbf16, #tpu.memory_space<vmem>>, vector<1x32x32xbf16>
    %693 = vector.shape_cast %692 : vector<1x32x32xbf16> to vector<32x32xbf16>
    %cst_299 = arith.constant dense<0.000000e+00> : vector<32x32xf32>
    %694 = tpu.matmul %691, %693, %cst_299 {dimension_numbers = #tpu.dot_dimension_numbers<[1], [0], [0], [1], [0, 0, 1, 1], [], []>} : vector<32x32xbf16>, vector<32x32xbf16>, vector<32x32xf32> -> vector<32x32xf32>
    %c0_300 = arith.constant 0 : index
    %c0_301 = arith.constant 0 : index
    %c0_302 = arith.constant 0 : index
    %695 = vector.load %arg14[%c0_300, %c0_301, %c0_302] : memref<1x1x32xf32, #tpu.memory_space<vmem>>, vector<1x1x32xf32>
    %696 = vector.shape_cast %695 : vector<1x1x32xf32> to vector<1x32xf32>
    %697 = vector.broadcast %696 : vector<1x32xf32> to vector<32x32xf32>
    %698 = arith.addf %694, %697 : vector<32x32xf32>
    %699 = arith.addf %3, %698 : vector<32x32xf32>
    %c0_303 = arith.constant 0 : index
    %c0_304 = arith.constant 0 : index
    %c0_305 = arith.constant 0 : index
    %700 = vector.load %arg15[%c0_303, %c0_304, %c0_305] : memref<1x1x32xf32, #tpu.memory_space<vmem>>, vector<1x1x32xf32>
    %701 = vector.shape_cast %700 : vector<1x1x32xf32> to vector<1x32xf32>
    %c0_306 = arith.constant 0 : index
    %c0_307 = arith.constant 0 : index
    %c0_308 = arith.constant 0 : index
    %702 = vector.load %arg16[%c0_306, %c0_307, %c0_308] : memref<1x1x32xf32, #tpu.memory_space<vmem>>, vector<1x1x32xf32>
    %703 = vector.shape_cast %702 : vector<1x1x32xf32> to vector<1x32xf32>
    %cst_309 = arith.constant dense<0.000000e+00> : vector<32xf32>
    %704 = vector.multi_reduction <add>, %699, %cst_309 [1] : vector<32x32xf32> to vector<32xf32>
    %705 = vector.shape_cast %704 : vector<32xf32> to vector<32x1xf32>
    %cst_310 = arith.constant 3.200000e+01 : f32
    %706 = vector.broadcast %cst_310 : f32 to vector<32x1xf32>
    %707 = arith.divf %705, %706 : vector<32x1xf32>
    %708 = vector.broadcast %707 : vector<32x1xf32> to vector<32x32xf32>
    %709 = arith.subf %699, %708 : vector<32x32xf32>
    %710 = arith.mulf %709, %709 : vector<32x32xf32>
    %cst_311 = arith.constant dense<0.000000e+00> : vector<32xf32>
    %711 = vector.multi_reduction <add>, %710, %cst_311 [1] : vector<32x32xf32> to vector<32xf32>
    %712 = vector.shape_cast %711 : vector<32xf32> to vector<32x1xf32>
    %cst_312 = arith.constant 3.200000e+01 : f32
    %713 = vector.broadcast %cst_312 : f32 to vector<32x1xf32>
    %714 = arith.divf %712, %713 : vector<32x1xf32>
    %715 = vector.broadcast %707 : vector<32x1xf32> to vector<32x32xf32>
    %716 = arith.subf %699, %715 : vector<32x32xf32>
    %cst_313 = arith.constant 9.99999974E-6 : f32
    %717 = vector.broadcast %cst_313 : f32 to vector<32x1xf32>
    %718 = arith.addf %714, %717 : vector<32x1xf32>
    %719 = math.rsqrt %718 : vector<32x1xf32>
    %720 = vector.broadcast %719 : vector<32x1xf32> to vector<32x32xf32>
    %721 = arith.mulf %716, %720 : vector<32x32xf32>
    %722 = vector.broadcast %701 : vector<1x32xf32> to vector<32x32xf32>
    %723 = arith.mulf %721, %722 : vector<32x32xf32>
    %724 = vector.broadcast %703 : vector<1x32xf32> to vector<32x32xf32>
    %725 = arith.addf %723, %724 : vector<32x32xf32>
    %726 = arith.truncf %725 : vector<32x32xf32> to vector<32x32xbf16>
    %c0_314 = arith.constant 0 : index
    %c0_315 = arith.constant 0 : index
    %c0_316 = arith.constant 0 : index
    %727 = vector.load %arg17[%c0_314, %c0_315, %c0_316] : memref<1x32x64xbf16, #tpu.memory_space<vmem>>, vector<1x32x64xbf16>
    %728 = vector.shape_cast %727 : vector<1x32x64xbf16> to vector<32x64xbf16>
    %cst_317 = arith.constant dense<0.000000e+00> : vector<32x64xf32>
    %729 = tpu.matmul %726, %728, %cst_317 {dimension_numbers = #tpu.dot_dimension_numbers<[1], [0], [0], [1], [0, 0, 1, 1], [], []>} : vector<32x32xbf16>, vector<32x64xbf16>, vector<32x64xf32> -> vector<32x64xf32>
    %c0_318 = arith.constant 0 : index
    %c0_319 = arith.constant 0 : index
    %c0_320 = arith.constant 0 : index
    %730 = vector.load %arg18[%c0_318, %c0_319, %c0_320] : memref<1x1x64xf32, #tpu.memory_space<vmem>>, vector<1x1x64xf32>
    %731 = vector.shape_cast %730 : vector<1x1x64xf32> to vector<1x64xf32>
    %732 = vector.broadcast %731 : vector<1x64xf32> to vector<32x64xf32>
    %733 = arith.addf %729, %732 : vector<32x64xf32>
    %cst_321 = arith.constant 5.000000e-01 : f32
    %734 = vector.broadcast %cst_321 : f32 to vector<32x64xf32>
    %735 = arith.mulf %734, %733 : vector<32x64xf32>
    %cst_322 = arith.constant 4.471500e-02 : f32
    %736 = vector.broadcast %cst_322 : f32 to vector<32x64xf32>
    %737 = arith.mulf %736, %733 : vector<32x64xf32>
    %738 = arith.mulf %737, %733 : vector<32x64xf32>
    %739 = arith.mulf %738, %733 : vector<32x64xf32>
    %740 = arith.addf %733, %739 : vector<32x64xf32>
    %cst_323 = arith.constant 0.797884583 : f32
    %741 = vector.broadcast %cst_323 : f32 to vector<32x64xf32>
    %742 = arith.mulf %741, %740 : vector<32x64xf32>
    %743 = math.tanh %742 : vector<32x64xf32>
    %cst_324 = arith.constant 1.000000e+00 : f32
    %744 = vector.broadcast %cst_324 : f32 to vector<32x64xf32>
    %745 = arith.addf %744, %743 : vector<32x64xf32>
    %746 = arith.mulf %735, %745 : vector<32x64xf32>
    %747 = arith.truncf %746 : vector<32x64xf32> to vector<32x64xbf16>
    %c0_325 = arith.constant 0 : index
    %c0_326 = arith.constant 0 : index
    %c0_327 = arith.constant 0 : index
    %748 = vector.load %arg19[%c0_325, %c0_326, %c0_327] : memref<1x64x32xbf16, #tpu.memory_space<vmem>>, vector<1x64x32xbf16>
    %749 = vector.shape_cast %748 : vector<1x64x32xbf16> to vector<64x32xbf16>
    %cst_328 = arith.constant dense<0.000000e+00> : vector<32x32xf32>
    %750 = tpu.matmul %747, %749, %cst_328 {dimension_numbers = #tpu.dot_dimension_numbers<[1], [0], [0], [1], [0, 0, 1, 1], [], []>} : vector<32x64xbf16>, vector<64x32xbf16>, vector<32x32xf32> -> vector<32x32xf32>
    %c0_329 = arith.constant 0 : index
    %c0_330 = arith.constant 0 : index
    %c0_331 = arith.constant 0 : index
    %751 = vector.load %arg20[%c0_329, %c0_330, %c0_331] : memref<1x1x32xf32, #tpu.memory_space<vmem>>, vector<1x1x32xf32>
    %752 = vector.shape_cast %751 : vector<1x1x32xf32> to vector<1x32xf32>
    %753 = vector.broadcast %752 : vector<1x32xf32> to vector<32x32xf32>
    %754 = arith.addf %750, %753 : vector<32x32xf32>
    %755 = arith.addf %699, %754 : vector<32x32xf32>
    %c0_332 = arith.constant 0 : index
    %c0_333 = arith.constant 0 : index
    %756 = vector.load %arg26[%c0_332, %c0_333] : memref<32x32xf32, #tpu.memory_space<vmem>>, vector<32x32xf32>
    tpu.vector_store %arg26[%c0_332, %c0_333], %755 {strides = array<i32>} : memref<32x32xf32, #tpu.memory_space<vmem>>, vector<32x32xf32>,
    %c1_i32_334 = arith.constant 1 : i32
    %757 = arith.cmpi eq, %arg1, %c1_i32_334 : i32
    %758 = arith.extui %757 : i1 to i32
    %c0_i32_335 = arith.constant 0 : i32
    %759 = arith.cmpi ne, %758, %c0_i32_335 : i32
    scf.if %759 {
      %c0_336 = arith.constant 0 : index
      %c0_337 = arith.constant 0 : index
      %760 = vector.load %arg21[%c0_336, %c0_337] : memref<1x32xf32, #tpu.memory_space<vmem>>, vector<1x32xf32>
      %c0_338 = arith.constant 0 : index
      %c0_339 = arith.constant 0 : index
      %761 = vector.load %arg22[%c0_338, %c0_339] : memref<1x32xf32, #tpu.memory_space<vmem>>, vector<1x32xf32>
      %cst_340 = arith.constant dense<0.000000e+00> : vector<32xf32>
      %762 = vector.multi_reduction <add>, %755, %cst_340 [1] : vector<32x32xf32> to vector<32xf32>
      %763 = vector.shape_cast %762 : vector<32xf32> to vector<32x1xf32>
      %cst_341 = arith.constant 3.200000e+01 : f32
      %764 = vector.broadcast %cst_341 : f32 to vector<32x1xf32>
      %765 = arith.divf %763, %764 : vector<32x1xf32>
      %766 = vector.broadcast %765 : vector<32x1xf32> to vector<32x32xf32>
      %767 = arith.subf %755, %766 : vector<32x32xf32>
      %768 = arith.mulf %767, %767 : vector<32x32xf32>
      %cst_342 = arith.constant dense<0.000000e+00> : vector<32xf32>
      %769 = vector.multi_reduction <add>, %768, %cst_342 [1] : vector<32x32xf32> to vector<32xf32>
      %770 = vector.shape_cast %769 : vector<32xf32> to vector<32x1xf32>
      %cst_343 = arith.constant 3.200000e+01 : f32
      %771 = vector.broadcast %cst_343 : f32 to vector<32x1xf32>
      %772 = arith.divf %770, %771 : vector<32x1xf32>
      %773 = vector.broadcast %765 : vector<32x1xf32> to vector<32x32xf32>
      %774 = arith.subf %755, %773 : vector<32x32xf32>
      %cst_344 = arith.constant 9.99999974E-6 : f32
      %775 = vector.broadcast %cst_344 : f32 to vector<32x1xf32>
      %776 = arith.addf %772, %775 : vector<32x1xf32>
      %777 = math.rsqrt %776 : vector<32x1xf32>
      %778 = vector.broadcast %777 : vector<32x1xf32> to vector<32x32xf32>
      %779 = arith.mulf %774, %778 : vector<32x32xf32>
      %780 = vector.broadcast %760 : vector<1x32xf32> to vector<32x32xf32>
      %781 = arith.mulf %779, %780 : vector<32x32xf32>
      %782 = vector.broadcast %761 : vector<1x32xf32> to vector<32x32xf32>
      %783 = arith.addf %781, %782 : vector<32x32xf32>
      %784 = arith.truncf %783 : vector<32x32xf32> to vector<32x32xbf16>
      %c0_345 = arith.constant 0 : index
      %c0_346 = arith.constant 0 : index
      %785 = vector.load %arg23[%c0_345, %c0_346] : memref<32x10xbf16, #tpu.memory_space<vmem>>, vector<32x10xbf16>
      %cst_347 = arith.constant dense<0.000000e+00> : vector<32x10xf32>
      %786 = tpu.matmul %784, %785, %cst_347 {dimension_numbers = #tpu.dot_dimension_numbers<[1], [0], [0], [1], [0, 0, 1, 1], [], []>} : vector<32x32xbf16>, vector<32x10xbf16>, vector<32x10xf32> -> vector<32x10xf32>
      %c0_348 = arith.constant 0 : index
      %c0_349 = arith.constant 0 : index
      %787 = vector.load %arg24[%c0_348, %c0_349] : memref<1x10xf32, #tpu.memory_space<vmem>>, vector<1x10xf32>
      %788 = vector.broadcast %787 : vector<1x10xf32> to vector<32x10xf32>
      %789 = arith.addf %786, %788 : vector<32x10xf32>
      %cst_350 = arith.constant dense<0xFF800000> : vector<32xf32>
      %790 = vector.multi_reduction <maximumf>, %789, %cst_350 [1] : vector<32x10xf32> to vector<32xf32>
      %791 = vector.shape_cast %790 : vector<32xf32> to vector<32x1xf32>
      %792 = vector.broadcast %791 : vector<32x1xf32> to vector<32x10xf32>
      %793 = arith.subf %789, %792 : vector<32x10xf32>
      %794 = math.exp %793 : vector<32x10xf32>
      %cst_351 = arith.constant dense<0.000000e+00> : vector<32xf32>
      %795 = vector.multi_reduction <add>, %794, %cst_351 [1] : vector<32x10xf32> to vector<32xf32>
      %796 = vector.shape_cast %795 : vector<32xf32> to vector<32x1xf32>
      %797 = math.log %796 : vector<32x1xf32>
      %798 = vector.broadcast %797 : vector<32x1xf32> to vector<32x10xf32>
      %799 = arith.subf %793, %798 : vector<32x10xf32>
      %800 = vector.extract_strided_slice %799 {offsets = [0, 0], sizes = [1, 10], strides = [1, 1]} : vector<32x10xf32> to vector<1x10xf32>
      %c0_352 = arith.constant 0 : index
      %c0_353 = arith.constant 0 : index
      %c0_354 = arith.constant 0 : index
      %801 = vector.load %arg25[%c0_352, %c0_353, %c0_354] : memref<2x1x10xf32, #tpu.memory_space<vmem>>, vector<1x1x10xf32>
      %802 = vector.shape_cast %801 : vector<1x1x10xf32> to vector<1x10xf32>
      %803 = vector.shape_cast %800 : vector<1x10xf32> to vector<1x1x10xf32>
      tpu.vector_store %arg25[%c0_352, %c0_353, %c0_354], %803 {strides = array<i32>} : memref<2x1x10xf32, #tpu.memory_space<vmem>>, vector<1x1x10xf32>,
      %804 = vector.extract_strided_slice %799 {offsets = [16, 0], sizes = [1, 10], strides = [1, 1]} : vector<32x10xf32> to vector<1x10xf32>
      %c1_355 = arith.constant 1 : index
      %c0_356 = arith.constant 0 : index
      %c0_357 = arith.constant 0 : index
      %805 = vector.load %arg25[%c1_355, %c0_356, %c0_357] : memref<2x1x10xf32, #tpu.memory_space<vmem>>, vector<1x1x10xf32>
      %806 = vector.shape_cast %805 : vector<1x1x10xf32> to vector<1x10xf32>
      %807 = vector.shape_cast %804 : vector<1x10xf32> to vector<1x1x10xf32>
      tpu.vector_store %arg25[%c1_355, %c0_356, %c0_357], %807 {strides = array<i32>} : memref<2x1x10xf32, #tpu.memory_space<vmem>>, vector<1x1x10xf32>,
    } else {
    }
    return
  }
  func.func @transform_0(%arg0: i32, %arg1: i32) -> (i32, i32, i32) {
    %c0_i32 = arith.constant 0 : i32
    %c0_i32_0 = arith.constant 0 : i32
    %c0_i32_1 = arith.constant 0 : i32
    return %arg0, %c0_i32, %c0_i32_0 : i32, i32, i32
  }
  func.func @transform_1(%arg0: i32, %arg1: i32) -> (i32, i32, i32, i32) {
    %c0_i32 = arith.constant 0 : i32
    %c0_i32_0 = arith.constant 0 : i32
    %c0_i32_1 = arith.constant 0 : i32
    %c0_i32_2 = arith.constant 0 : i32
    return %arg0, %c0_i32, %c0_i32_0, %c0_i32_1 : i32, i32, i32, i32
  }
  func.func @transform_2(%arg0: i32, %arg1: i32) -> (i32, i32) {
    %c0_i32 = arith.constant 0 : i32
    %c0_i32_0 = arith.constant 0 : i32
    %c0_i32_1 = arith.constant 0 : i32
    return %c0_i32, %c0_i32_0 : i32, i32
  }
  func.func @transform_3(%arg0: i32, %arg1: i32) -> (i32, i32) {
    %c0_i32 = arith.constant 0 : i32
    %c0_i32_0 = arith.constant 0 : i32
    %c0_i32_1 = arith.constant 0 : i32
    return %c0_i32, %c0_i32_0 : i32, i32
  }
  func.func @transform_4(%arg0: i32, %arg1: i32) -> (i32, i32) {
    %c0_i32 = arith.constant 0 : i32
    %c0_i32_0 = arith.constant 0 : i32
    %c0_i32_1 = arith.constant 0 : i32
    return %c0_i32, %c0_i32_0 : i32, i32
  }
  func.func @transform_5(%arg0: i32, %arg1: i32) -> i32 {
    %c0_i32 = arith.constant 0 : i32
    %c0_i32_0 = arith.constant 0 : i32
    return %c0_i32 : i32
  }
  func.func @transform_6(%arg0: i32, %arg1: i32) -> i32 {
    %c0_i32 = arith.constant 0 : i32
    %c0_i32_0 = arith.constant 0 : i32
    return %c0_i32 : i32
  }
  func.func @transform_7(%arg0: i32, %arg1: i32) -> (i32, i32, i32) {
    %c0_i32 = arith.constant 0 : i32
    %c0_i32_0 = arith.constant 0 : i32
    %c0_i32_1 = arith.constant 0 : i32
    return %arg1, %c0_i32, %c0_i32_0 : i32, i32, i32
  }
  func.func @transform_8(%arg0: i32, %arg1: i32) -> (i32, i32, i32) {
    %c0_i32 = arith.constant 0 : i32
    %c0_i32_0 = arith.constant 0 : i32
    %c0_i32_1 = arith.constant 0 : i32
    return %arg1, %c0_i32, %c0_i32_0 : i32, i32, i32
  }
  func.func @transform_9(%arg0: i32, %arg1: i32) -> (i32, i32, i32) {
    %c0_i32 = arith.constant 0 : i32
    %c0_i32_0 = arith.constant 0 : i32
    %c0_i32_1 = arith.constant 0 : i32
    return %arg1, %c0_i32, %c0_i32_0 : i32, i32, i32
  }
  func.func @transform_10(%arg0: i32, %arg1: i32) -> (i32, i32, i32) {
    %c0_i32 = arith.constant 0 : i32
    %c0_i32_0 = arith.constant 0 : i32
    %c0_i32_1 = arith.constant 0 : i32
    return %arg1, %c0_i32, %c0_i32_0 : i32, i32, i32
  }
  func.func @transform_11(%arg0: i32, %arg1: i32) -> (i32, i32, i32) {
    %c0_i32 = arith.constant 0 : i32
    %c0_i32_0 = arith.constant 0 : i32
    %c0_i32_1 = arith.constant 0 : i32
    return %arg1, %c0_i32, %c0_i32_0 : i32, i32, i32
  }
  func.func @transform_12(%arg0: i32, %arg1: i32) -> (i32, i32, i32) {
    %c0_i32 = arith.constant 0 : i32
    %c0_i32_0 = arith.constant 0 : i32
    %c0_i32_1 = arith.constant 0 : i32
    return %arg1, %c0_i32, %c0_i32_0 : i32, i32, i32
  }
  func.func @transform_13(%arg0: i32, %arg1: i32) -> (i32, i32, i32) {
    %c0_i32 = arith.constant 0 : i32
    %c0_i32_0 = arith.constant 0 : i32
    %c0_i32_1 = arith.constant 0 : i32
    return %arg1, %c0_i32, %c0_i32_0 : i32, i32, i32
  }
  func.func @transform_14(%arg0: i32, %arg1: i32) -> (i32, i32, i32) {
    %c0_i32 = arith.constant 0 : i32
    %c0_i32_0 = arith.constant 0 : i32
    %c0_i32_1 = arith.constant 0 : i32
    return %arg1, %c0_i32, %c0_i32_0 : i32, i32, i32
  }
  func.func @transform_15(%arg0: i32, %arg1: i32) -> (i32, i32, i32) {
    %c0_i32 = arith.constant 0 : i32
    %c0_i32_0 = arith.constant 0 : i32
    %c0_i32_1 = arith.constant 0 : i32
    return %arg1, %c0_i32, %c0_i32_0 : i32, i32, i32
  }
  func.func @transform_16(%arg0: i32, %arg1: i32) -> (i32, i32, i32) {
    %c0_i32 = arith.constant 0 : i32
    %c0_i32_0 = arith.constant 0 : i32
    %c0_i32_1 = arith.constant 0 : i32
    return %arg1, %c0_i32, %c0_i32_0 : i32, i32, i32
  }
  func.func @transform_17(%arg0: i32, %arg1: i32) -> (i32, i32, i32) {
    %c0_i32 = arith.constant 0 : i32
    %c0_i32_0 = arith.constant 0 : i32
    %c0_i32_1 = arith.constant 0 : i32
    return %arg1, %c0_i32, %c0_i32_0 : i32, i32, i32
  }
  func.func @transform_18(%arg0: i32, %arg1: i32) -> (i32, i32, i32) {
    %c0_i32 = arith.constant 0 : i32
    %c0_i32_0 = arith.constant 0 : i32
    %c0_i32_1 = arith.constant 0 : i32
    return %arg1, %c0_i32, %c0_i32_0 : i32, i32, i32
  }
  func.func @transform_19(%arg0: i32, %arg1: i32) -> (i32, i32) {
    %c0_i32 = arith.constant 0 : i32
    %c0_i32_0 = arith.constant 0 : i32
    %c0_i32_1 = arith.constant 0 : i32
    return %c0_i32, %c0_i32_0 : i32, i32
  }
  func.func @transform_20(%arg0: i32, %arg1: i32) -> (i32, i32) {
    %c0_i32 = arith.constant 0 : i32
    %c0_i32_0 = arith.constant 0 : i32
    %c0_i32_1 = arith.constant 0 : i32
    return %c0_i32, %c0_i32_0 : i32, i32
  }
  func.func @transform_21(%arg0: i32, %arg1: i32) -> (i32, i32) {
    %c0_i32 = arith.constant 0 : i32
    %c0_i32_0 = arith.constant 0 : i32
    %c0_i32_1 = arith.constant 0 : i32
    return %c0_i32, %c0_i32_0 : i32, i32
  }
  func.func @transform_22(%arg0: i32, %arg1: i32) -> (i32, i32) {
    %c0_i32 = arith.constant 0 : i32
    %c0_i32_0 = arith.constant 0 : i32
    %c0_i32_1 = arith.constant 0 : i32
    return %c0_i32, %c0_i32_0 : i32, i32
  }
  func.func @transform_23(%arg0: i32, %arg1: i32) -> (i32, i32, i32) {
    %c0_i32 = arith.constant 0 : i32
    %c0_i32_0 = arith.constant 0 : i32
    %c0_i32_1 = arith.constant 0 : i32
    return %arg0, %c0_i32, %c0_i32_0 : i32, i32, i32
  }
}

</mosaic_0001>

<bundles_post_ra>
// kernel: gt_forward.1
= control target key start
LH: loop header
LB: loop body
LE: loop exit
PB: predicated region body
PF: predicated region fallthrough
CT: control target
= control target key end

     0   :  { %s4841_s0 = inlined_call_operand.vmem [shape: f32[2,15,16], index: 0, kind: input, shape index: {}]   ;;  %s4842_s1 = inlined_call_operand.vmem [shape: f32[2,6,16,16], index: 1, kind: input, shape index: {}]   ;;  %s4843_s2 = inlined_call_operand.vmem [shape: bf16[16,32], index: 2, kind: input, shape index: {}]   ;;  %s4844_s3 = inlined_call_operand.vmem [shape: f32[1,32], index: 3, kind: input, shape index: {}]   ;;  %s4845_s4 = inlined_call_operand.vmem [shape: f32[1,32], index: 4, kind: input, shape index: {}]   ;;  %s4846_s5 = inlined_call_operand.vmem [shape: f32[48], index: 5, kind: input, shape index: {}]   ;;  %s4847_s6 = inlined_call_operand.vmem [shape: f32[8], index: 6, kind: input, shape index: {}]   ;;  %s4848_s7 = inlined_call_operand.vmem [shape: f32[2,1,32], index: 7, kind: input, shape index: {}]   ;;  %s4849_s8 = inlined_call_operand.vmem [shape: f32[2,1,32], index: 8, kind: input, shape index: {}]   ;;  %s4850_s9 = inlined_call_operand.vmem [shape: bf16[2,32,96], index: 9, kind: input, shape index: {}]   ;;  %s4851_s10 = inlined_call_operand.vmem [shape: f32[2,1,96], index: 10, kind: input, shape index: {}]   ;;  %s4852_s11 = inlined_call_operand.vmem [shape: bf16[2,32,32], index: 11, kind: input, shape index: {}]   ;;  %s4853_s12 = inlined_call_operand.vmem [shape: f32[2,1,32], index: 12, kind: input, shape index: {}]   ;;  %s4854_s13 = inlined_call_operand.vmem [shape: f32[2,1,32], index: 13, kind: input, shape index: {}]   ;;  %s4855_s14 = inlined_call_operand.vmem [shape: f32[2,1,32], index: 14, kind: input, shape index: {}]   ;;  %s4856_s15 = inlined_call_operand.vmem [shape: bf16[2,32,64], index: 15, kind: input, shape index: {}]   ;;  %s4857_s16 = inlined_call_operand.vmem [shape: f32[2,1,64], index: 16, kind: input, shape index: {}]   ;;  %s4858_s17 = inlined_call_operand.vmem [shape: bf16[2,64,32], index: 17, kind: input, shape index: {}]   ;;  %s4859_s18 = inlined_call_operand.vmem [shape: f32[2,1,32], index: 18, kind: input, shape index: {}]   ;;  %s4860_s19 = inlined_call_operand.vmem [shape: f32[1,32], index: 19, kind: input, shape index: {}]   ;;  %s4861_s20 = inlined_call_operand.vmem [shape: f32[1,32], index: 20, kind: input, shape index: {}]   ;;  %s4862_s21 = inlined_call_operand.vmem [shape: bf16[32,10], index: 21, kind: input, shape index: {}]   ;;  %s4863_s22 = inlined_call_operand.vmem [shape: f32[1,10], index: 22, kind: input, shape index: {}]   ;;  %s4864_s23 = inlined_call_operand.hbm [shape: f32[2,1,10], index: 23, kind: output, shape index: {}]  }
   0x1   :  { %4882 = sst [smem:[#allocation16_spill]] %s4841_s0 }
   0x2   :  { %4883 = sst [smem:[#allocation17_spill]] %s4842_s1 }
   0x3   :  { %4884 = sst [smem:[#allocation18_spill]] %s4843_s2 }
   0x4   :  { %4885 = sst [smem:[#allocation19_spill]] %s4844_s3 }
   0x5   :  { %4886 = sst [smem:[#allocation20_spill]] %s4845_s4 }
   0x6   :  { %4887 = sst [smem:[#allocation21_spill]] %s4846_s5 }
   0x7   :  { %4888 = sst [smem:[#allocation22_spill]] %s4847_s6 }
   0x8   :  { %4889 = sst [smem:[#allocation23_spill]] %s4848_s7 }
   0x9   :  { %4890 = sst [smem:[#allocation24_spill]] %s4849_s8 }
   0xa   :  { %4891 = sst [smem:[#allocation25_spill]] %s4850_s9 }
   0xb   :  { %4892 = sst [smem:[#allocation26_spill]] %s4851_s10 }
   0xc   :  { %4893 = sst [smem:[#allocation27_spill]] %s4852_s11 }
   0xd   :  { %4894 = sst [smem:[#allocation28_spill]] %s4856_s15 }
   0xe   :  { %4895 = sst [smem:[#allocation29_spill]] %s4858_s17 }
   0xf   :  { %4896 = sst [smem:[#allocation30_spill]] %s4860_s19 }
  0x10   :  { %4897 = sst [smem:[#allocation31_spill]] %s4861_s20 }
  0x11   :  { %4898 = sst [smem:[#allocation32_spill]] %s4863_s22 }
  0x12   :  { %4899 = sst [smem:[#allocation33_spill]] %s4864_s23 }
  0x13   :  { %28 = vsyncpa [#allocation5], 0 }
  0x14   :  { %29 = vsyncpa [#allocation7], 0 }
  0x15   :  { %30 = vsyncpa [#allocation4], 0  ;;  %s3675_s4 = smov 0   ;;  %s3677_s30 = smov 0  }
  0x16   :  { %s3679_s24 = smov 0  }
  0x17 LB: > { %4900 = sst [smem:[#allocation12_spill]] %s3530_s30  ;;  %s4870_s25 = sadd.s32 4294967295, %s3534_s24   ;;  %s3534_s24 = sphi %s3679_s24, %s36_s24   ;;  %s3530_s30 = sphi %s3677_s30, %s4953_s30   ;;  %s3526_s4 = sphi %s3675_s4, %s4952_s4  }
  0x18   : > { %4901 = sst [smem:[#allocation13_spill]] %s3534_s24  ;;  %s45_s5 = sadd.s32 1, %s3530_s30 }
  0x19   : > { %p46_p0 = scmp.ge.s32.totalorder %s45_s5, 2  ;;  %p3049_p1 = scmp.ge.s32.totalorder %s3534_s24, 1 }
  0x1a   : > { %p632_p2 = scmp.lt.s32.totalorder %s3534_s24, 3  ;;  %p3698_p4 = scmp.eq.s32.totalorder %s4870_s25, 0 }
  0x1b   : > { %s4955_s5 = smov (%p46_p0, %s45_s5), 0  ;;  %s4904_s6 = sld [smem:[#allocation21_spill]] }
  0x1c   : > { %4902 = sst [smem:[#allocation14_spill]] %s4955_s5  ;;  %p633_p3 = pnand %p3049_p1, %p632_p2 }
  0x1d   : > { %s4905_s29 = sld [smem:[#allocation22_spill]]  ;;  %s3536_s0 = smov [#allocation3]  }
  0x1e   : > { %p3233_p5 = pneg %p633_p3  ;;  %s3537_s25 = smov [#allocation6]  }
  0x20   : > { %p3234_p6 = pnand %p3698_p4, %p3233_p5  ;;  %788 = sbr.rel (%p633_p3) target bundleno = 3435 (0xd6b), region = 112 }
  0x21   : > { %s673_s27 = sshll.u32 %s4904_s6, 4  ;;  %s674_s27 = int_to_ptr.vmem [resolvable:$true] %s673_s27 }
  0x22   : > { %3236 = dma.vmem_to_smem (!%p3234_p6), %s674_s27, 16, %s3536_s0, [#allocation5]  }
  0x23   : > { %s683_s3 = sshll.u32 %s4905_s29, 4  ;;  %s684_s3 = int_to_ptr.vmem [resolvable:$true] %s683_s3 }
  0x24   : > { %3239 = dma.vmem_to_smem (!%p3234_p6), %s684_s3, 16, %s3537_s25, [#allocation7]  }
  0x25   : > { %3513 = dma.done.wait (%p3698_p4), [#allocation5], 16  }
  0x26   : > { %3515 = vsyncadd (%p3698_p4), [#allocation5], 4294967280 }
  0x27   : > { %3517 = dma.done.wait (%p3698_p4), [#allocation7], 16  }
  0x28   : > { %3519 = vsyncadd (%p3698_p4), [#allocation7], 4294967280 }
  0x29   : > { %800 = sfence }
  0x2a   : > { %p919_p7 = scmp.lt.s32.totalorder %s3526_s4, 1  ;;  %s4909_s9 = sld [smem:[#allocation25_spill]] }
  0x2b   : > { %s4910_s11 = sld [smem:[#allocation27_spill]]  ;;  %p3066_p8 = scmp.ne.s32.totalorder %s3526_s4, 0 }
  0x2c   : > { %s3720_s26 = scalar_select %p919_p7, %s3526_s4, 1 }
  0x2d   : > { %s4911_s15 = sld [smem:[#allocation28_spill]] }
  0x2e   : > { %s3186_s29 = sshll.u32 %s3720_s26, 4  ;;  %s3189_s19 = sshll.u32 %s3720_s26, 5 }
  0x2f   : > { %s4912_s17 = sld [smem:[#allocation29_spill]] }
  0x30   : > { %s3738_s30 = scalar_lea.vmem %s4909_s9, %s3186_s29  ;;  %s4913_s25 = sld [smem:[#allocation18_spill]] (!%p3066_p8) }
  0x31   : > { %s3743_s22 = scalar_lea.vmem %s4910_s11, %s3186_s29  ;;  %968 = sbr.rel (%p3066_p8) target bundleno = 198 (0xc6), region = 124 }
  0x32   : > { %s4914_s24 = sld [smem:[#allocation20_spill]] (!%p3066_p8) }
  0x33   : > { %s3760_s9 = scalar_lea.vmem %s4911_s15, %s3186_s29  ;;  %s4916_s28 = sld [smem:[#allocation16_spill]] (!%p3066_p8) }
  0x35   : > { %s3770_s27 = scalar_lea.vmem %s4912_s17, %s3189_s19  ;;  %s4917_s19 = sld [smem:[#allocation19_spill]] (!%p3066_p8) }
  0x36   : > { %v3190_v0 = vld [vmem:[%s4913_s25] sm:$0xff]  ;;  %vm1007_vm0 = vcmask 253952   ;;  %vm984_vm1 = vcmask 130048   ;;  %vm1002_vm2 = vcmask 261120   ;;  %vm1004_vm3 = vcmask 260096  }
  0x37   : > { %v3191_v2 = vld [vmem:[%s4913_s25] sm:$0xff]  ;;  %995 = vmatpush.bf16.msra.mxu0 %v3190_v0 }
  0x38   : > { %s4915_s11 = smov %s4914_s24  ;;  %v1006_v1 = vld [vmem:[%s4914_s24] sm:$0x1]  ;;  %1035 = vmatpush.bf16.msra.mxu1 %v3191_v2 }
  0x39   : > { %1008 = vst.msk [vmem:[#allocation2 + $0xf] sm:$0x1] %vm1007_vm0, %v1006_v1  ;;  %v969_v3 = vld [vmem:[%s4916_s28] sm:$0xff]  ;;  %v970_v4 = vld [vmem:[%s4916_s28 + $0x8] sm:$0x7f]  ;;  %v3072_v5 = vld [vmem:[%s4916_s28 + $0x10] sm:$0xff] }
  0x3a   : > { %v971_v6 = vpack.c.bf16 %v970_v4, %v969_v3  ;;  %v3073_v7 = vld [vmem:[%s4916_s28 + $0x18] sm:$0x7f]  ;;  %v1044_v9 = vld [vmem:[%s4915_s11] sm:$0x1] }
  0x3b   : > { %v1012_v8 = vpack.c.bf16 %v3073_v7, %v3072_v5  ;;  %1045 = vst.msk [vmem:[#allocation2 + $0x1f] sm:$0x1] %vm1007_vm0, %v1044_v9  ;;  %v3289_v10 = vld [vmem:[%s4917_s19] ss:$0 sm:$0xff] }
  0x3c   : > { %3071 = vmatmul.msk.bf16.vlgmr.msra.gmra.mxu0 %vm984_vm1, %v971_v6  ;;  %v3290_v11 = vld [vmem:[%s4917_s19] ss:$0 sm:$0xff] }
  0x3d   : > { %3078 = vmatmul.msk.bf16.vlgmr.msra.gmra.mxu1 %vm984_vm1, %v1012_v8 }
  0xb9   : > { %v997_v12 = vpop.f32.mrf.mxu0 }
  0xba   : > { %v1037_v13 = vpop.f32.mrf.mxu1  ;;  %v998_v14 = vadd.f32 %v3289_v10, %v997_v12 }
  0xbb   : > { %v1038_v15 = vadd.f32 %v3290_v11, %v1037_v13 }
  0xbc   : > { %1003 = vst.msk [vmem:[#allocation2] sm:$0xff] %vm1002_vm2, %v998_v14 }
  0xbd   : > { %1042 = vst.msk [vmem:[#allocation2 + $0x10] sm:$0xff] %vm1002_vm2, %v1038_v15 }
  0xc1   : > { %v999_v16 = vpop.f32.mrf.mxu0 }
  0xc2   : > { %v1039_v17 = vpop.f32.mrf.mxu1  ;;  %v1000_v18 = vadd.f32 %v3289_v10, %v999_v16 }
  0xc3   : > { %v1040_v19 = vadd.f32 %v3290_v11, %v1039_v17 }
  0xc4   : > { %1005 = vst.msk [vmem:[#allocation2 + $0x8] sm:$0x7f] %vm1004_vm3, %v1000_v18 }
  0xc5   : > { %1043 = vst.msk [vmem:[#allocation2 + $0x18] sm:$0x7f] %vm1004_vm3, %v1040_v19 }
  0xc6 PF: > { %v1046_v20 = vld [vmem:[#allocation2] sm:$0xff]  ;;  %vm1052_vm4 = vcmask 261120   ;;  %v3538_v24 = vmov 32.0   ;;  %v3193_v43 = vld [vmem:[%s3738_s30 + $0x8] sm:$0xff]  ;;  %v1048_v48 = vld [vmem:[#allocation2 + $0x10] sm:$0xff]  ;;  %s4919_s29 = sld [smem:[#allocation23_spill]] }
  0xc7   : > { %v1053_v21 = vsel %vm1052_vm4, %v1046_v20, 0.0  ;;  %3329 = vrcp.f32 %v3538_v24  ;;  %1196 = vmatpush.bf16.msra.mxu0 %v3193_v43  ;;  %v3192_v45 = vld [vmem:[%s3738_s30] sm:$0xff]  ;;  %v1059_v50 = vsel %vm1052_vm4, %v1048_v48, 0.0  ;;  %s4921_s8 = sld [smem:[#allocation24_spill]]  ;;  %s4874_s7 = smov 96   ;;  %vm1281_vm12 = vcmask 64512  }
  0xc8   : > { %1054 = vadd.xlane.f32.xlu0 %v1053_v21  ;;  %s4923_s10 = sld [smem:[#allocation26_spill]]  ;;  %s4875_s30 = smov 88   ;;  %vm1302_vm3 = vcmask 130048  }
  0xc9   : > { %s4876_s0 = smov 120   ;;  %s4925_s11 = sld [smem:[#allocation17_spill]] }
  0xca   : > { %s3545_s19 = smov 112   ;;  %p3171_p9 = scmp.ne.s32.totalorder %s3526_s4, 1 }
  0xcb   : > { %v1047_v22 = vld [vmem:[#allocation2 + $0x8] sm:$0xff]  ;;  %1197 = vmatpush.bf16.msra.mxu0 %v3192_v45 }
  0xcc   : > { %v1056_v23 = vsel %vm1052_vm4, %v1047_v22, 0.0  ;;  %v1049_v41 = vld [vmem:[#allocation2 + $0x18] sm:$0xff]  ;;  %s4920_s2 = scalar_lea.vmem %s4919_s29, %s3720_s26  ;;  %s4873_s29 = smov 80  }
  0xcd   : > { %v3330_v25 = vpop.eup %3329  ;;  %v1062_v42 = vsel %vm1052_vm4, %v1049_v41, 0.0  ;;  %v3826_v2 = vld [vmem:[%s4920_s2] ss:$0 sm:$0xff]  ;;  %s4922_s24 = scalar_lea.vmem %s4921_s8, %s3720_s26  ;;  %s3876_s2 = smul.u32 24, %s3526_s4 }
  0xce   : > { %v1066_v26 = vmul.f32 32.0, %v3330_v25  ;;  %vm1070_vm5 = vweird.f32 %v3330_v25  ;;  %v3834_v7 = vld [vmem:[%s4922_s24] ss:$0 sm:$0xff]  ;;  %s4924_s6 = scalar_lea.vmem %s4923_s10, %s3720_s26  ;;  %s3950_s10 = sshll.u32 %s3526_s4, 2 }
  0xcf   : > { %v3851_v18 = vld [vmem:[%s4924_s6] ss:$0 sm:$0xff]  ;;  %s3880_s5 = sadd.s32 4, %s3876_s2  ;;  %s1372_s23 = sadd.s32 1, %s3876_s2 }
  0xd0   : > { %1057 = vadd.xlane.f32.xlu0 %v1056_v23  ;;  %v1067_v27 = vsub.f32 1.0, %v1066_v26  ;;  %s1377_s24 = sadd.s32 1, %s3880_s5  ;;  %s3887_s3 = sadd.s32 8, %s3876_s2 }
  0xd1   : > { %s1373_s1 = sld [smem:[#allocation3 + %s1372_s23]]  ;;  %s1384_s20 = sadd.s32 1, %s3887_s3 }
  0xd2   : > { %v1068_v28 = vmul.f32 %v3330_v25, %v1067_v27  ;;  %s1378_s6 = sld [smem:[#allocation3 + %s1377_s24]]  ;;  %s3916_s17 = sadd.s32 20, %s3876_s2 }
  0xd3   : > { %s3544_s8 = smov 56  }
  0xd4   : > { %v1069_v29 = vadd.f32 %v3330_v25, %v1068_v28 }
  0xd6   : > { %v3809_v30 = vsel %vm1070_vm5, %v3330_v25, %v1069_v29 }
  0xd7   : > { %4918 = vst [vmem:[#allocation15_spill] sm:$0xff] %v3809_v30 }
  0xd8   : > { %1060 = vadd.xlane.f32.xlu0 %v1059_v50 }
 0x13b   : > { %v1055_v31 = vpop.xlane.xlu0 %1054 }
 0x13c   : > { %v1072_v32 = vmul.f32 %v3809_v30, %v1055_v31 }
 0x13e   : > { %v1076_v33 = vsub.f32 %v1046_v20, %v1072_v32 }
 0x140   : > { %v1080_v34 = vmul.f32 %v1076_v33, %v1076_v33 }
 0x142   : > { %v1084_v35 = vsel %vm1052_vm4, %v1080_v34, 0.0 }
 0x143   : > { %1085 = vadd.xlane.f32.xlu1 %v1084_v35  ;;  %v1058_v36 = vpop.xlane.xlu0 %1057 }
 0x144   : > { %v1073_v37 = vmul.f32 %v3809_v30, %v1058_v36 }
 0x146   : > { %v1077_v38 = vsub.f32 %v1047_v22, %v1073_v37 }
 0x148   : > { %v1081_v39 = vmul.f32 %v1077_v38, %v1077_v38 }
 0x14a   : > { %v1087_v40 = vsel %vm1052_vm4, %v1081_v39, 0.0 }
 0x14b   : > { %1088 = vadd.xlane.f32.xlu1 %v1087_v40  ;;  %v1061_v23 = vpop.xlane.xlu0 %1060 }
 0x14c   : > { %v1074_v24 = vmul.f32 %v3809_v30, %v1061_v23 }
 0x14e   : > { %v1078_v25 = vsub.f32 %v1048_v48, %v1074_v24 }
 0x150   : > { %v1082_v26 = vmul.f32 %v1078_v25, %v1078_v25 }
 0x152   : > { %v1090_v27 = vsel %vm1052_vm4, %v1082_v26, 0.0  ;;  %v3978_v26 = vld [vmem:[%s4925_s11 + $0x50] sm:$0xff] }
 0x153   : > { %1063 = vadd.xlane.f32.xlu1 %v1062_v42 }
 0x1b6   : > { %v1086_v44 = vpop.xlane.xlu1 %1085 }
 0x1b7   : > { %v1096_v46 = vmul.f32 %v1086_v44, %v3809_v30 }
 0x1b9   : > { %v1100_v47 = vadd.f32 1e-05, %v1096_v46 }
 0x1bb   : > { %3331 = vrsqrt.f32 %v1100_v47  ;;  %vm1110_vm7 = vweird.f32 %v1100_v47 }
 0x1be   : > { %v1089_v49 = vpop.xlane.xlu1 %1088 }
 0x1bf   : > { %v1097_v51 = vmul.f32 %v1089_v49, %v3809_v30 }
 0x1c1   : > { %v3332_v52 = vpop.eup %3331  ;;  %v1101_v53 = vadd.f32 1e-05, %v1097_v51 }
 0x1c2   : > { %v1105_v54 = vmul.f32 %v3332_v52, %v1100_v47  ;;  %vm1111_vm6 = vweird.f32 %v3332_v52 }
 0x1c3   : > { %3333 = vrsqrt.f32 %v1101_v53  ;;  %vm1112_vm8 = vmor %vm1110_vm7, %vm1111_vm6  ;;  %vm1120_vm10 = vweird.f32 %v1101_v53 }
 0x1c4   : > { %v1106_v55 = vmul.f32 %v3332_v52, %v1105_v54 }
 0x1c6   : > { %v1107_v56 = vmul.f32 0.5, %v1106_v55  ;;  %v1064_v12 = vpop.xlane.xlu1 %1063 }
 0x1c7   : > { %v1075_v13 = vmul.f32 %v3809_v30, %v1064_v12  ;;  %v3947_v12 = vld [vmem:[%s4925_s11 + $0x18] sm:$0xff] }
 0x1c8   : > { %v1108_v57 = vsub.f32 1.5, %v1107_v56 }
 0x1c9   : > { %v3334_v58 = vpop.eup %3333  ;;  %v3841_v14 = vsub.f32 %v1049_v41, %v1075_v13 }
 0x1ca   : > { %v1109_v59 = vmul.f32 %v3332_v52, %v1108_v57  ;;  %v1115_v60 = vmul.f32 %v3334_v58, %v1101_v53  ;;  %vm1121_vm9 = vweird.f32 %v3334_v58 }
 0x1cb   : > { %vm1122_vm11 = vmor %vm1120_vm10, %vm1121_vm9  ;;  %v1083_v15 = vmul.f32 %v3841_v14, %v3841_v14 }
 0x1cc   : > { %v1116_v61 = vmul.f32 %v3334_v58, %v1115_v60  ;;  %v1113_v62 = vsel %vm1112_vm8, %v3332_v52, %v1109_v59 }
 0x1cd   : > { %v1144_v1 = vmul.f32 %v1113_v62, %v1076_v33  ;;  %v1093_v16 = vsel %vm1052_vm4, %v1083_v15, 0.0 }
 0x1ce   : > { %v1117_v63 = vmul.f32 0.5, %v1116_v61  ;;  %1094 = vadd.xlane.f32.xlu0 %v1093_v16 }
 0x1cf   : > { %v1151_v6 = vmul.f32 %v3826_v2, %v1144_v1  ;;  %v3910_v1 = vstv %s1373_s1  ;;  %s1266_s1 = sld [smem:[#allocation3 + %s3916_s17]] }
 0x1d0   : > { %v1118_v0 = vsub.f32 1.5, %v1117_v63  ;;  %v3903_v63 = vld [vmem:[%s4925_s11] sm:$0xff] }
 0x1d1   : > { %v1158_v9 = vadd.f32 %v3834_v7, %v1151_v6 }
 0x1d2   : > { %v1119_v3 = vmul.f32 %v3334_v58, %v1118_v0  ;;  %v3908_v0 = vld [vmem:[%s4925_s11 + $0x10] sm:$0xff] }
 0x1d4   : > { %v1123_v4 = vsel %vm1122_vm11, %v3334_v58, %v1119_v3  ;;  %v1375_v3 = vmul.f32 %v3910_v1, %v3903_v63 }
 0x1d5   : > { %v1145_v5 = vmul.f32 %v1123_v4, %v1077_v38 }
 0x1d7   : > { %v1152_v8 = vmul.f32 %v3826_v2, %v1145_v5  ;;  %v3925_v5 = vld [vmem:[%s4925_s11 + $0x20] sm:$0xff] }
 0x1d9   : > { %v1159_v10 = vadd.f32 %v3834_v7, %v1152_v8 }
 0x1db   : > { %v1162_v11 = vpack.c.bf16 %v1159_v10, %v1158_v9  ;;  %v3935_v9 = vld [vmem:[%s4925_s11 + $0x30] sm:$0xff] }
 0x1dd   : > { %3087 = vmatmul.msk.bf16.vlgmr.msra.gmra.mxu0 %vm1052_vm4, %v1162_v11  ;;  %v3942_v11 = vld [vmem:[%s4925_s11 + $0x8] sm:$0xff] }
 0x1de   : > { %v1376_v15 = vmul.f32 %v3910_v1, %v3942_v11 }
 0x241   : > { %v1095_v34 = vpop.xlane.xlu0 %1094 }
 0x242   : > { %v1099_v35 = vmul.f32 %v1095_v34, %v3809_v30  ;;  %v3994_v34 = vld [vmem:[%s4925_s11 + $0x48] sm:$0xff] }
 0x244   : > { %v1103_v36 = vadd.f32 1e-05, %v1099_v35 }
 0x246   : > { %3335 = vrsqrt.f32 %v1103_v36  ;;  %vm1140_vm13 = vweird.f32 %v1103_v36 }
 0x24c   : > { %v3336_v37 = vpop.eup %3335 }
 0x24d   : > { %v1135_v38 = vmul.f32 %v3336_v37, %v1103_v36  ;;  %vm1141_vm14 = vweird.f32 %v3336_v37 }
 0x24e   : > { %vm1142_vm15 = vmor %vm1140_vm13, %vm1141_vm14 }
 0x24f   : > { %v1136_v39 = vmul.f32 %v3336_v37, %v1135_v38 }
 0x251   : > { %v1137_v43 = vmul.f32 0.5, %v1136_v39  ;;  %v4003_v39 = vld [vmem:[%s4925_s11 + $0x58] sm:$0xff] }
 0x253   : > { %v1138_v44 = vsub.f32 1.5, %v1137_v43 }
 0x255   : > { %v1139_v48 = vmul.f32 %v3336_v37, %v1138_v44 }
 0x257   : > { %v1143_v51 = vsel %vm1142_vm15, %v3336_v37, %v1139_v48 }
 0x258   : > { %v1147_v54 = vmul.f32 %v1143_v51, %v3841_v14 }
 0x25a   : > { %v1199_v17 = vpop.f32.mrf.mxu0  ;;  %v1154_v58 = vmul.f32 %v3826_v2, %v1147_v54 }
 0x25b   : > { %v1200_v20 = vadd.f32 %v3851_v18, %v1199_v17  ;;  %v3961_v17 = vld [vmem:[%s4925_s11 + $0x40] sm:$0xff] }
 0x25c   : > { %v1161_v61 = vadd.f32 %v3834_v7, %v1154_v58 }
 0x262   : > { %v1201_v19 = vpop.f32.mrf.mxu0 }
 0x263   : > { %v1202_v21 = vadd.f32 %v3851_v18, %v1201_v19 }
 0x265   : > { %v3855_v22 = vpack.c.bf16 %v1202_v21, %v1200_v20  ;;  %v3968_v20 = vld [vmem:[%s4925_s11 + $0x28] sm:$0xff] }
 0x267   : > { %1279 = vrot.lane.b32.xlu1 %v3855_v22, %s4874_s7  ;;  %1419 = vrot.lane.b32.xlu2 %v3855_v22, %s4875_s30  ;;  %s1385_s7 = sld [smem:[#allocation3 + %s1384_s20]] }
 0x26d   : > { %v3927_v6 = vstv %s1385_s7  ;;  %s4926_s7 = smov 120  }
 0x26e   : > { %v1387_v8 = vmul.f32 %v3925_v5, %v3927_v6 }
 0x26f   : > { %1417 = vrot.lane.b32.xlu2 %v3855_v22, %s4876_s0  ;;  %s3898_s0 = sadd.s32 16, %s3876_s2 }
 0x270   : > { %s1398_s20 = sadd.s32 1, %s3898_s0 }
 0x271   : > { %s1399_s15 = sld [smem:[#allocation3 + %s1398_s20]] }
 0x272   : > { %s1234_s20 = sld [smem:[#allocation3 + %s3880_s5]] }
 0x277   : > { %v3963_v19 = vstv %s1399_s15 }
 0x278   : > { %v1401_v23 = vmul.f32 %v3961_v17, %v3963_v19  ;;  %v1402_v37 = vmul.f32 %v3994_v34, %v3963_v19 }
 0x298   : > { %1091 = vadd.xlane.f32.xlu2 %v1090_v27 }
 0x2b0   : > { %1557 = vrot.lane.b32.xlu2 %v3855_v22, %s4873_s29  ;;  %s3893_s29 = sadd.s32 12, %s3876_s2 }
 0x2b1   : > { %s1391_s30 = sadd.s32 1, %s3893_s29 }
 0x2b2   : > { %s1392_s24 = sld [smem:[#allocation3 + %s1391_s30]]  ;;  %s1405_s30 = sadd.s32 1, %s3916_s17 }
 0x2b3   : > { %s1406_s23 = sld [smem:[#allocation3 + %s1405_s30]] }
 0x2b4   : > { %s1250_s30 = sld [smem:[#allocation3 + %s3893_s29]] }
 0x2b8   : > { %v3937_v10 = vstv %s1392_s24  ;;  %s1242_s24 = sld [smem:[#allocation3 + %s3887_s3]] }
 0x2b9   : > { %v1394_v14 = vmul.f32 %v3935_v9, %v3937_v10  ;;  %v3980_v27 = vstv %s1406_s23  ;;  %s1258_s23 = sld [smem:[#allocation3 + %s3898_s0]] }
 0x2c1   : > { %v1420_v28 = vpop.permute.xlu2 %1419 }
 0x2c2   : > { %v1425_v29 = vsel %vm1281_vm12, %v1420_v28, 0  ;;  %v3985_v28 = vld [vmem:[%s4925_s11 + $0x38] sm:$0xff] }
 0x2c3   : > { %1434 = vmatpush.bf16.xpose.msra.mxu3 %v1425_v29 }
 0x2c9   : > { %v1418_v31 = vpop.permute.xlu2 %1417 }
 0x2ca   : > { %3107 = vmatmul.msk.bf16.vlgmr.msra.gmra.mxu3 %vm1281_vm12, %v1418_v31  ;;  %v1408_v31 = vmul.f32 %v3978_v26, %v3980_v27 }
 0x2d9   : > { %v1280_v32 = vpop.permute.xlu1 %1279 }
 0x2da   : > { %v1286_v33 = vsel %vm1281_vm12, %v1280_v32, 0 }
 0x2db   : > { %1295 = vmatpush.bf16.xpose.msra.mxu1 %v1286_v33  ;;  %v1395_v33 = vmul.f32 %v3985_v28, %v3937_v10 }
 0x2e2   : > { %3105 = vmatmul.msk.bf16.vlgmr.msra.gmra.mxu1 %vm1281_vm12, %v3855_v22 }
 0x30b   : > { %v1092_v40 = vpop.xlane.xlu2 %1091 }
 0x30c   : > { %v1098_v41 = vmul.f32 %v1092_v40, %v3809_v30 }
 0x30e   : > { %v1102_v42 = vadd.f32 1e-05, %v1098_v41 }
 0x310   : > { %3337 = vrsqrt.f32 %v1102_v42  ;;  %vm1130_vm0 = vweird.f32 %v1102_v42 }
 0x313   : > { %v1558_v45 = vpop.permute.xlu2 %1557 }
 0x314   : > { %v1563_v46 = vsel %vm1281_vm12, %v1558_v45, 0 }
 0x315   : > { %1572 = vmatpush.bf16.xpose.msrb.mxu1 %v1563_v46 }
 0x316   : > { %v3338_v47 = vpop.eup %3337 }
 0x317   : > { %v1125_v49 = vmul.f32 %v3338_v47, %v1102_v42  ;;  %vm1131_vm1 = vweird.f32 %v3338_v47  ;;  %v1409_v42 = vmul.f32 %v4003_v39, %v3980_v27 }
 0x318   : > { %vm1132_vm2 = vmor %vm1130_vm0, %vm1131_vm1 }
 0x319   : > { %v1126_v50 = vmul.f32 %v3338_v47, %v1125_v49 }
 0x31b   : > { %v1127_v52 = vmul.f32 0.5, %v1126_v50 }
 0x31d   : > { %v1128_v53 = vsub.f32 1.5, %v1127_v52 }
 0x31f   : > { %v1129_v55 = vmul.f32 %v3338_v47, %v1128_v53 }
 0x321   : > { %v1133_v56 = vsel %vm1132_vm2, %v3338_v47, %v1129_v55 }
 0x322   : > { %v1146_v57 = vmul.f32 %v1133_v56, %v1078_v25  ;;  %v1388_v25 = vmul.f32 %v3968_v20, %v3927_v6 }
 0x324   : > { %v1153_v59 = vmul.f32 %v3826_v2, %v1146_v57  ;;  %v3912_v2 = vstv %s1378_s6  ;;  %s1412_s6 = sadd.s32 1, %s3950_s10  ;;  %v4028_v57 = vstv %s1234_s20  ;;  %s4927_s20 = smov 88  }
 0x325   : > { %v1380_v4 = vmul.f32 %v3908_v0, %v3912_v2  ;;  %v1381_v16 = vmul.f32 %v3947_v12, %v3912_v2  ;;  %s1413_s15 = sld [smem:[#allocation6 + %s1412_s6]]  ;;  %s3543_s6 = smov 72   ;;  %v1237_v58 = vmul.f32 %v3947_v12, %v4028_v57 }
 0x326   : > { %v1160_v60 = vadd.f32 %v3834_v7, %v1153_v59 }
 0x327   : > { %v1382_v7 = vadd.f32 %v1380_v4, %v1375_v3  ;;  %v1383_v24 = vadd.f32 %v1381_v16, %v1376_v15 }
 0x328   : > { %v1163_v62 = vpack.c.bf16 %v1161_v61, %v1160_v60  ;;  %v4035_v61 = vstv %s1242_s24  ;;  %s4928_s24 = smov 96  }
 0x329   : > { %v1389_v13 = vadd.f32 %v1387_v8, %v1382_v7  ;;  %v1390_v32 = vadd.f32 %v1388_v25, %v1383_v24  ;;  %v1245_v4 = vmul.f32 %v3968_v20, %v4035_v61  ;;  %v4040_v7 = vstv %s1250_s30  ;;  %s4929_s30 = smov 80  }
 0x32a   : > { %3088 = vmatmul.msk.bf16.gmra.mxu0 %vm1052_vm4, %v1163_v62 }
 0x32b   : > { %v1396_v21 = vadd.f32 %v1394_v14, %v1389_v13  ;;  %v1397_v36 = vadd.f32 %v1395_v33, %v1390_v32  ;;  %v3998_v38 = vstv %s1413_s15  ;;  %s1227_s15 = sld [smem:[#allocation3 + %s3876_s2]]  ;;  %v1253_v13 = vmul.f32 %v3985_v28, %v4040_v7 }
 0x32d   : > { %v1403_v29 = vadd.f32 %v1401_v23, %v1396_v21  ;;  %v1404_v41 = vadd.f32 %v1402_v37, %v1397_v36  ;;  %v4047_v21 = vstv %s1258_s23 }
 0x32e   : > { %v1261_v25 = vmul.f32 %v3994_v34, %v4047_v21 }
 0x32f   : > { %v1410_v35 = vadd.f32 %v1408_v31, %v1403_v29  ;;  %v1411_v45 = vadd.f32 %v1409_v42, %v1404_v41  ;;  %v4053_v31 = vstv %s1266_s1 }
 0x331   : > { %v1415_v40 = vadd.f32 %v3998_v38, %v1410_v35  ;;  %v1416_v47 = vadd.f32 %v3998_v38, %v1411_v45  ;;  %v4026_v56 = vstv %s1227_s15  ;;  %v1269_v35 = vmul.f32 %v4003_v39, %v4053_v31  ;;  %s3546_s15 = smov 104  }
 0x34d   : > { %v1436_v43 = vpop.f32.mrf.mxu3 }
 0x34e   : > { %v1437_v44 = vadd.f32 %v1436_v43, %v1415_v40 }
 0x350   : > { %v1441_v46 = vsel %vm1302_vm3, %v1437_v44, -inf }
 0x351   : > { %1442 = vmax.xlane.f32.xlu1 %v1441_v46 }
 0x355   : > { %v1438_v48 = vpop.f32.mrf.mxu3 }
 0x356   : > { %v1439_v49 = vadd.f32 %v1438_v48, %v1416_v47 }
 0x358   : > { %v1444_v50 = vsel %vm1302_vm3, %v1439_v49, -inf }
 0x359   : > { %1445 = vmax.xlane.f32.xlu0 %v1444_v50  ;;  %v1236_v50 = vmul.f32 %v3908_v0, %v4028_v57 }
 0x35f   : > { %v1297_v32 = vpop.f32.mrf.mxu1 }
 0x367   : > { %v1299_v43 = vpop.f32.mrf.mxu1 }
 0x36a   : > { %1695 = vrot.lane.b32.xlu1 %v3855_v22, %s3543_s6 }
 0x36d   : > { %1490 = vrot.lane.b32.xlu0 %v3855_v22, %s3544_s8 }
 0x3a7   : > { %v1204_v51 = vpop.f32.mrf.mxu0 }
 0x3a8   : > { %v1205_v53 = vadd.f32 %v3851_v18, %v1204_v51 }
 0x3af   : > { %v1206_v52 = vpop.f32.mrf.mxu0 }
 0x3b0   : > { %v1207_v54 = vadd.f32 %v3851_v18, %v1206_v52  ;;  %v1230_v18 = vmul.f32 %v4026_v56, %v3942_v11  ;;  %v1244_v52 = vmul.f32 %v3925_v5, %v4035_v61 }
 0x3b2   : > { %v4017_v55 = vpack.c.bf16 %v1207_v54, %v1205_v53  ;;  %v1239_v3 = vadd.f32 %v1237_v58, %v1230_v18  ;;  %v1252_v54 = vmul.f32 %v3935_v9, %v4040_v7  ;;  %v1260_v58 = vmul.f32 %v3961_v17, %v4047_v21 }
 0x3b4   : > { %1976 = vrot.lane.b32.xlu2 %v4017_v55, %s4926_s7  ;;  %v1247_v8 = vadd.f32 %v1245_v4, %v1239_v3  ;;  %s1273_s7 = sld [smem:[#allocation6 + %s3950_s10]] }
 0x3b6   : > { %v1255_v24 = vadd.f32 %v1253_v13, %v1247_v8 }
 0x3b8   : > { %v1263_v33 = vadd.f32 %v1261_v25, %v1255_v24 }
 0x3ba   : > { %v1271_v37 = vadd.f32 %v1269_v35, %v1263_v33  ;;  %v4062_v41 = vstv %s1273_s7  ;;  %s1522_s7 = sadd.s32 2, %s3887_s3 }
 0x3bc   : > { %2093 = vrot.lane.b32.xlu2 %v4017_v55, %s3545_s19  ;;  %v1276_v42 = vadd.f32 %v4062_v41, %v1271_v37 }
 0x3be   : > { %v4065_v46 = vadd.f32 %v1299_v43, %v1276_v42 }
 0x3c0   : > { %v1306_v48 = vsel %vm1302_vm3, %v4065_v46, -inf }
 0x3c4   : > { %v1443_v59 = vpop.xlane.xlu1 %1442 }
 0x3c5   : > { %v1447_v60 = vsub.f32 %v1437_v44, %v1443_v59 }
 0x3c7   : > { %v1449_v62 = vmul.f32 1.442695, %v1447_v60  ;;  %v1268_v60 = vmul.f32 %v3978_v26, %v4053_v31 }
 0x3c9   : > { %3339 = vpow2.f32 %v1449_v62 }
 0x3cc   : > { %v1446_v14 = vpop.xlane.xlu0 %1445 }
 0x3cd   : > { %v1448_v15 = vsub.f32 %v1439_v49, %v1446_v14  ;;  %v1229_v49 = vmul.f32 %v4026_v56, %v3903_v63 }
 0x3cf   : > { %v4045_v16 = vpop.eup %3339  ;;  %v1451_v23 = vmul.f32 1.442695, %v1448_v15  ;;  %v1238_v51 = vadd.f32 %v1236_v50, %v1229_v49 }
 0x3d0   : > { %v1453_v29 = vsel %vm1302_vm3, %v4045_v16, 0.0 }
 0x3d1   : > { %3341 = vpow2.f32 %v1451_v23  ;;  %1454 = vadd.xlane.f32.xlu1 %v1453_v29  ;;  %v1246_v53 = vadd.f32 %v1244_v52, %v1238_v51 }
 0x3d3   : > { %v1254_v18 = vadd.f32 %v1252_v54, %v1246_v53 }
 0x3d5   : > { %v1262_v59 = vadd.f32 %v1260_v58, %v1254_v18 }
 0x3d7   : > { %v4058_v36 = vpop.eup %3341  ;;  %v1270_v62 = vadd.f32 %v1268_v60, %v1262_v59 }
 0x3d8   : > { %v1456_v40 = vsel %vm1302_vm3, %v4058_v36, 0.0 }
 0x3d9   : > { %1457 = vadd.xlane.f32.xlu0 %v1456_v40  ;;  %v1275_v3 = vadd.f32 %v4062_v41, %v1270_v62 }
 0x3db   : > { %v4095_v4 = vadd.f32 %v1297_v32, %v1275_v3 }
 0x3dc   : > { %v1696_v44 = vpop.permute.xlu1 %1695 }
 0x3dd   : > { %v1701_v47 = vsel %vm1281_vm12, %v1696_v44, 0  ;;  %v1303_v8 = vsel %vm1302_vm3, %v4095_v4, -inf }
 0x3df   : > { %v1491_v45 = vpop.permute.xlu0 %1490 }
 0x3e0   : > { %1503 = vmatpush.bf16.msra.mxu2 %v1491_v45 }
 0x3e4   : > { %1710 = vmatpush.bf16.xpose.msrb.mxu2 %v1701_v47 }
 0x3e5   : > { %1307 = vmax.xlane.f32.xlu2 %v1306_v48 }
 0x3ea   : > { %1693 = vrot.lane.b32.xlu1 %v3855_v22, %s3546_s15 }
 0x3ed   : > { %1555 = vrot.lane.b32.xlu0 %v3855_v22, %s3545_s19  ;;  %s1515_s19 = sadd.s32 2, %s3880_s5 }
 0x3ee   : > { %s1516_s1 = sld [smem:[#allocation3 + %s1515_s19]]  ;;  %s1543_s19 = sadd.s32 2, %s3916_s17 }
 0x3f2   : > { %1978 = vrot.lane.b32.xlu1 %v4017_v55, %s4927_s20  ;;  %s1529_s20 = sadd.s32 2, %s3893_s29 }
 0x3f5   : > { %1861 = vrot.lane.b32.xlu0 %v4017_v55, %s4928_s24  ;;  %s1530_s24 = sld [smem:[#allocation3 + %s1529_s20]] }
 0x3f6   : > { %s4947_s20 = sld [smem:[#allocation32_spill]] (!%p3171_p9) }
 0x3fa   : > { %2212 = vrot.lane.b32.xlu1 %v4017_v55, %s3543_s6  ;;  %s1510_s6 = sadd.s32 2, %s3876_s2 }
 0x3fb   : > { %s1511_s23 = sld [smem:[#allocation3 + %s1510_s6]] }
 0x3fd   : > { %2095 = vrot.lane.b32.xlu0 %v4017_v55, %s4929_s30  ;;  %s1536_s30 = sadd.s32 2, %s3898_s0 }
 0x3fe   : > { %s1537_s6 = sld [smem:[#allocation3 + %s1536_s30]]  ;;  %s3547_s30 = smov 64  }
 0x405   : > { %2210 = vrot.lane.b32.xlu0 %v4017_v55, %s3546_s15  ;;  %s1523_s15 = sld [smem:[#allocation3 + %s1522_s7]] }
 0x424   : > { %1304 = vmax.xlane.f32.xlu1 %v1303_v8 }
 0x444   : > { %v1455_v13 = vpop.xlane.xlu1 %1454 }
 0x445   : > { %3343 = vrcp.f32 %v1455_v13  ;;  %v1470_v37 = vand.u32 2147483648, %v1455_v13  ;;  %vm1464_vm6 = vweird.f32 %v1455_v13  ;;  %v1468_v32 = vand.u32 2147483647, %v1455_v13 }
 0x447   : > { %v1471_v47 = vor.u32 1.1754944e-38, %v1470_v37  ;;  %vm1469_vm9 = vcmp.eq.f32.partialorder %v1468_v32, 8.507059e+37  ;;  %v4126_v37 = vstv %s1523_s15  ;;  %s1653_s15 = sadd.s32 3, %s3880_s5  ;;  %s1681_s5 = sadd.s32 3, %s3916_s17 }
 0x448   : > { %s4307_s17 = sld [smem:[#allocation3 + %s1681_s5]] }
 0x44b   : > { %v3344_v14 = vpop.eup %3343 }
 0x44c   : > { %v1460_v15 = vmul.f32 %v3344_v14, %v1455_v13  ;;  %v1458_v23 = vpop.xlane.xlu0 %1457  ;;  %vm1465_vm5 = vweird.f32 %v3344_v14 }
 0x44d   : > { %3345 = vrcp.f32 %v1458_v23  ;;  %vm1466_vm7 = vmor %vm1464_vm6, %vm1465_vm5  ;;  %v1485_v42 = vand.u32 2147483648, %v1458_v23  ;;  %v1483_v44 = vand.u32 2147483647, %v1458_v23  ;;  %vm1479_vm10 = vweird.f32 %v1458_v23 }
 0x44e   : > { %v1461_v24 = vsub.f32 1.0, %v1460_v15  ;;  %v1977_v15 = vpop.permute.xlu2 %1976 }
 0x44f   : > { %v1486_v49 = vor.u32 1.1754944e-38, %v1485_v42  ;;  %vm1484_vm13 = vcmp.eq.f32.partialorder %v1483_v44, 8.507059e+37  ;;  %v4131_v42 = vstv %s1530_s24 }
 0x450   : > { %v1462_v25 = vmul.f32 %v3344_v14, %v1461_v24 }
 0x452   : > { %v1463_v33 = vadd.f32 %v3344_v14, %v1462_v25  ;;  %v4117_v25 = vstv %s1511_s23  ;;  %s1544_s23 = sld [smem:[#allocation3 + %s1543_s19]]  ;;  %s1660_s19 = sadd.s32 3, %s3887_s3 }
 0x453   : > { %v3346_v29 = vpop.eup %3345  ;;  %s1667_s3 = sadd.s32 3, %s3893_s29 }
 0x454   : > { %v1475_v35 = vmul.f32 %v3346_v29, %v1458_v23  ;;  %vm1480_vm8 = vweird.f32 %v3346_v29  ;;  %v1467_v45 = vsel %vm1466_vm7, %v3344_v14, %v1463_v33  ;;  %v1513_v33 = vmul.f32 %v4117_v25, %v3903_v63  ;;  %s4274_s29 = sld [smem:[#allocation3 + %s1667_s3]] }
 0x455   : > { %vm1481_vm11 = vmor %vm1479_vm10, %vm1480_vm8  ;;  %v1472_v50 = vsel %vm1469_vm9, %v1471_v47, %v1467_v45  ;;  %v1532_v47 = vmul.f32 %v3935_v9, %v4131_v42 }
 0x456   : > { %v1476_v40 = vsub.f32 1.0, %v1475_v35  ;;  %v1473_v54 = vmul.f32 %v4045_v16, %v1472_v50  ;;  %v2094_v23 = vpop.permute.xlu2 %2093  ;;  %v1526_v50 = vmul.f32 %v3968_v20, %v4126_v37 }
 0x458   : > { %v1477_v43 = vmul.f32 %v3346_v29, %v1476_v40  ;;  %v1525_v40 = vmul.f32 %v3925_v5, %v4126_v37 }
 0x45a   : > { %v1478_v48 = vadd.f32 %v3346_v29, %v1477_v43  ;;  %v1514_v43 = vmul.f32 %v4117_v25, %v3942_v11 }
 0x45c   : > { %v1694_v51 = vpop.permute.xlu1 %1693  ;;  %v1482_v52 = vsel %vm1481_vm11, %v3346_v29, %v1478_v48  ;;  %v4119_v29 = vstv %s1516_s1  ;;  %v4139_v48 = vstv %s1537_s6  ;;  %s1550_s1 = sadd.s32 2, %s3950_s10  ;;  %s4239_s6 = sld [smem:[#allocation3 + %s1653_s15]] }
 0x45d   : > { %v1487_v53 = vsel %vm1484_vm13, %v1486_v49, %v1482_v52  ;;  %v1518_v35 = vmul.f32 %v3908_v0, %v4119_v29  ;;  %v1519_v44 = vmul.f32 %v3947_v12, %v4119_v29  ;;  %v1539_v52 = vmul.f32 %v3961_v17, %v4139_v48  ;;  %s1551_s7 = sld [smem:[#allocation6 + %s1550_s1]]  ;;  %s1648_s1 = sadd.s32 3, %s3876_s2 }
 0x45e   : > { %v1488_v18 = vmul.f32 %v4058_v36, %v1487_v53  ;;  %v4146_v53 = vstv %s1544_s23  ;;  %s4232_s2 = sld [smem:[#allocation3 + %s1648_s1]]  ;;  %s1674_s15 = sadd.s32 3, %s3898_s0 }
 0x45f   : > { %v1556_v58 = vpop.permute.xlu0 %1555  ;;  %v1520_v32 = vadd.f32 %v1518_v35, %v1513_v33  ;;  %v1521_v49 = vadd.f32 %v1519_v44, %v1514_v43  ;;  %v4199_v44 = vld [vmem:[%s4925_s11 + $0x88] sm:$0xff]  ;;  %s4267_s1 = sld [smem:[#allocation3 + %s1660_s19]]  ;;  %s3549_s19 = smov 40  }
 0x460   : > { %3109 = vmatmul.msk.bf16.vlgmr.msrb.gmra.mxu1 %vm1281_vm12, %v1556_v58  ;;  %v1489_v59 = vpack.c.bf16 %v1488_v18, %v1473_v54  ;;  %v4151_v54 = vld [vmem:[%s4925_s11 + $0x60] sm:$0xff]  ;;  %v4156_v18 = vld [vmem:[%s4925_s11 + $0x70] sm:$0xff]  ;;  %s4287_s0 = sld [smem:[#allocation3 + %s1674_s15]]  ;;  %s3552_s23 = smov 24  }
 0x461   : > { %v1527_v45 = vadd.f32 %v1525_v40, %v1520_v32  ;;  %v1528_v58 = vadd.f32 %v1526_v50, %v1521_v49  ;;  %v4190_v32 = vld [vmem:[%s4925_s11 + $0x90] sm:$0xff]  ;;  %v1952_v49 = vmul.f32 %v4151_v54, %v3910_v1 }
 0x462   : > { %3108 = vmatmul.msk.bf16.vlgmr.msra.gmra.mxu2 %vm1302_vm3, %v1489_v59  ;;  %v1533_v59 = vmul.f32 %v3985_v28, %v4131_v42 }
 0x463   : > { %v4185_v35 = vstv %s1551_s7  ;;  %s3550_s7 = smov 8  }
 0x464   : > { %v1979_v60 = vpop.permute.xlu1 %1978 }
 0x465   : > { %v1984_v62 = vsel %vm1281_vm12, %v1979_v60, 0 }
 0x466   : > { %1993 = vmatpush.bf16.xpose.msra.mxu2 %v1984_v62  ;;  %v1546_v62 = vmul.f32 %v3978_v26, %v4146_v53 }
 0x467   : > { %v1862_v3 = vpop.permute.xlu0 %1861 }
 0x468   : > { %v1867_v8 = vsel %vm1281_vm12, %v1862_v3, 0  ;;  %v1835_v3 = vmul.f32 %v4151_v54, %v4026_v56 }
 0x469   : > { %1876 = vmatpush.bf16.xpose.msra.mxu1 %v1867_v8  ;;  %v1837_v8 = vmul.f32 %v4156_v18, %v4028_v57 }
 0x46c   : > { %v2213_v13 = vpop.permute.xlu1 %2212 }
 0x46d   : > { %v2218_v14 = vsel %vm1281_vm12, %v2213_v13, 0  ;;  %v4169_v13 = vld [vmem:[%s4925_s11 + $0x80] sm:$0xff] }
 0x46e   : > { %v1841_v33 = vmul.f32 %v4169_v13, %v4035_v61 }
 0x46f   : > { %v2096_v16 = vpop.permute.xlu0 %2095 }
 0x470   : > { %v2101_v36 = vsel %vm1281_vm12, %v2096_v16, 0  ;;  %3125 = vmatmul.msk.bf16.vlgmr.msra.gmra.mxu1 %vm1281_vm12, %v4017_v55  ;;  %v4174_v16 = vld [vmem:[%s4925_s11 + $0x68] sm:$0xff] }
 0x471   : > { %2110 = vmatpush.bf16.xpose.msrb.mxu1 %v2101_v36  ;;  %v4179_v36 = vld [vmem:[%s4925_s11 + $0x78] sm:$0xff]  ;;  %v1836_v40 = vmul.f32 %v4174_v16, %v4026_v56  ;;  %v1845_v56 = vmul.f32 %v4190_v32, %v4040_v7 }
 0x472   : > { %3111 = vmatmul.msk.bf16.vlgmr.msrb.gmra.mxu2 %vm1281_vm12, %v1694_v51  ;;  %v1534_v51 = vadd.f32 %v1532_v47, %v1527_v45  ;;  %v1838_v43 = vmul.f32 %v4179_v36, %v4028_v57  ;;  %v1547_v47 = vmul.f32 %v4003_v39, %v4146_v53  ;;  %v1954_v57 = vmul.f32 %v4156_v18, %v3912_v2 }
 0x473   : > { %2227 = vmatpush.bf16.xpose.msrb.mxu2 %v2218_v14  ;;  %v1535_v14 = vadd.f32 %v1533_v59, %v1528_v58  ;;  %v1842_v59 = vmul.f32 %v4199_v44, %v4035_v61 }
 0x474   : > { %v1541_v60 = vadd.f32 %v1539_v52, %v1534_v51  ;;  %v4213_v52 = vld [vmem:[%s4925_s11 + $0xa0] sm:$0xff]  ;;  %v1840_v58 = vadd.f32 %v1838_v43, %v1836_v40  ;;  %v4237_v40 = vld [vmem:[%s4925_s11 + $0xb0] sm:$0xff] }
 0x475   : > { %v1849_v61 = vmul.f32 %v4213_v52, %v4047_v21 }
 0x476   : > { %v1844_v43 = vadd.f32 %v1842_v59, %v1840_v58  ;;  %v1953_v58 = vmul.f32 %v4174_v16, %v3910_v1  ;;  %v1955_v59 = vmul.f32 %v4179_v36, %v3912_v2  ;;  %v1959_v1 = vmul.f32 %v4199_v44, %v3927_v6  ;;  %v4279_v2 = vld [vmem:[%s4925_s11 + $0xb8] sm:$0xff] }
 0x477   : > { %v2211_v24 = vpop.permute.xlu0 %2210 }
 0x478   : > { %v1957_v30 = vadd.f32 %v1955_v59, %v1953_v58 }
 0x480   : > { %3129 = vmatmul.msk.bf16.vlgmr.msrb.gmra.mxu1 %vm1281_vm12, %v2094_v23  ;;  %v1548_v23 = vadd.f32 %v1546_v62, %v1541_v60  ;;  %v1958_v60 = vmul.f32 %v4169_v13, %v3927_v6  ;;  %v4224_v62 = vld [vmem:[%s4925_s11 + $0x98] sm:$0xff]  ;;  %v1961_v6 = vadd.f32 %v1959_v1, %v1957_v30  ;;  %v4320_v1 = vstv %s4267_s1  ;;  %s4938_s1 = scalar_lea.vmem %s4853_s12, %s3720_s26 }
 0x481   : > { %v1963_v58 = vmul.f32 %v4224_v62, %v3937_v10 }
 0x482   : > { %3127 = vmatmul.msk.bf16.vlgmr.msra.gmra.mxu2 %vm1281_vm12, %v1977_v15  ;;  %v1540_v15 = vmul.f32 %v3994_v34, %v4139_v48  ;;  %v1553_v50 = vadd.f32 %v4185_v35, %v1548_v23 }
 0x484   : > { %v1542_v45 = vadd.f32 %v1540_v15, %v1535_v14  ;;  %v1962_v15 = vmul.f32 %v4190_v32, %v3937_v10 }
 0x486   : > { %v1549_v14 = vadd.f32 %v1547_v47, %v1542_v45  ;;  %v1846_v45 = vmul.f32 %v4224_v62, %v4040_v7  ;;  %v1966_v47 = vmul.f32 %v4213_v52, %v3963_v19  ;;  %v1970_v7 = vmul.f32 %v4237_v40, %v3980_v27 }
 0x492   : > { %3131 = vmatmul.msk.bf16.vlgmr.msrb.gmra.mxu2 %vm1281_vm12, %v2211_v24  ;;  %v1839_v24 = vadd.f32 %v1837_v8, %v1835_v3  ;;  %v1956_v3 = vadd.f32 %v1954_v57, %v1952_v49 }
 0x494   : > { %v1843_v51 = vadd.f32 %v1841_v33, %v1839_v24  ;;  %v1960_v33 = vadd.f32 %v1958_v60, %v1956_v3  ;;  %v1554_v60 = vadd.f32 %v4185_v35, %v1549_v14  ;;  %v1848_v14 = vadd.f32 %v1846_v45, %v1844_v43 }
 0x496   : > { %v1847_v24 = vadd.f32 %v1845_v56, %v1843_v51  ;;  %v2069_v51 = vmul.f32 %v4151_v54, %v4117_v25  ;;  %v2071_v56 = vmul.f32 %v4156_v18, %v4119_v29  ;;  %v1964_v57 = vadd.f32 %v1962_v15, %v1960_v33  ;;  %v1308_v33 = vpop.xlane.xlu2 %1307 }
 0x497   : > { %v1310_v59 = vsub.f32 %v4065_v46, %v1308_v33 }
 0x498   : > { %v1851_v3 = vadd.f32 %v1849_v61, %v1847_v24  ;;  %v1968_v15 = vadd.f32 %v1966_v47, %v1964_v57  ;;  %v2073_v24 = vadd.f32 %v2071_v56, %v2069_v51  ;;  %v2075_v61 = vmul.f32 %v4169_v13, %v4126_v37 }
 0x499   : > { %v4296_v51 = vstv %s4232_s2  ;;  %v4299_v56 = vstv %s4239_s6  ;;  %s1688_s2 = sadd.s32 3, %s3950_s10  ;;  %s3548_s6 = smov 48  }
 0x49a   : > { %v4283_v47 = vadd.f32 %v1970_v7, %v1968_v15  ;;  %v1854_v7 = vmul.f32 %v4279_v2, %v4053_v31  ;;  %v1965_v15 = vadd.f32 %v1963_v58, %v1961_v6  ;;  %v2188_v33 = vmul.f32 %v4156_v18, %v4299_v56  ;;  %s4333_s10 = sld [smem:[#allocation6 + %s1688_s2]]  ;;  %s4942_s2 = scalar_lea.vmem %s4857_s16, %s3720_s26 }
 0x49b   : > { %v4331_v6 = vstv %s4274_s29  ;;  %v2083_v58 = vmul.f32 %v4213_v52, %v4139_v48  ;;  %s4940_s29 = scalar_lea.vmem %s4854_s13, %s3720_s26 }
 0x4dd   : > { %v1574_v8 = vpop.f32.mrf.mxu1 }
 0x4de   : > { %v4228_v23 = vadd.f32 %v1574_v8, %v1553_v50  ;;  %v4251_v50 = vld [vmem:[%s4925_s11 + $0xa8] sm:$0xff]  ;;  %v1853_v8 = vmul.f32 %v4237_v40, %v4053_v31  ;;  %v1971_v31 = vmul.f32 %v4279_v2, %v3980_v27 }
 0x4df   : > { %v1967_v30 = vmul.f32 %v4251_v50, %v3963_v19  ;;  %v2186_v19 = vmul.f32 %v4151_v54, %v4296_v51  ;;  %v2192_v54 = vmul.f32 %v4169_v13, %v4320_v1 }
 0x4e0   : > { %v1579_v49 = vsel %vm1302_vm3, %v4228_v23, -inf  ;;  %v1855_v45 = vadd.f32 %v1853_v8, %v1851_v3  ;;  %v2079_v3 = vmul.f32 %v4190_v32, %v4131_v42 }
 0x4e1   : > { %1580 = vmax.xlane.f32.xlu0 %v1579_v49  ;;  %v1850_v49 = vmul.f32 %v4251_v50, %v4047_v21  ;;  %v1969_v8 = vadd.f32 %v1967_v30, %v1965_v15  ;;  %v2190_v27 = vadd.f32 %v2188_v33, %v2186_v19  ;;  %v2196_v30 = vmul.f32 %v4190_v32, %v4331_v6 }
 0x4e2   : > { %v2087_v19 = vmul.f32 %v4237_v40, %v4146_v53 }
 0x4e3   : > { %v1852_v46 = vadd.f32 %v1850_v49, %v1848_v14  ;;  %v1857_v49 = vadd.f32 %v1855_v45, %v4062_v41  ;;  %v2070_v14 = vmul.f32 %v4174_v16, %v4117_v25  ;;  %v2194_v15 = vadd.f32 %v2192_v54, %v2190_v27 }
 0x4e5   : > { %v4285_v21 = vpop.f32.mrf.mxu2  ;;  %v1576_v57 = vpop.f32.mrf.mxu1 }
 0x4e6   : > { %v4293_v43 = vadd.f32 %v1576_v57, %v1554_v60  ;;  %v2077_v60 = vadd.f32 %v2075_v61, %v2073_v24  ;;  %v2072_v24 = vmul.f32 %v4179_v36, %v4119_v29  ;;  %v1313_v61 = vmul.f32 1.442695, %v1310_v59 }
 0x4e7   : > { %v4326_v57 = vadd.f32 %v1971_v31, %v1969_v8  ;;  %v4340_v29 = vstv %s4287_s0  ;;  %v1856_v59 = vadd.f32 %v1854_v7, %v1852_v46  ;;  %v2198_v8 = vadd.f32 %v2196_v30, %v2194_v15  ;;  %s4941_s0 = scalar_lea.vmem %s4855_s14, %s3720_s26 }
 0x4e8   : > { %v1582_v10 = vsel %vm1302_vm3, %v4293_v43, -inf  ;;  %v2081_v18 = vadd.f32 %v2079_v3, %v2077_v60  ;;  %v2074_v60 = vadd.f32 %v2072_v24, %v2070_v14  ;;  %v2076_v3 = vmul.f32 %v4199_v44, %v4126_v37 }
 0x4e9   : > { %1583 = vmax.xlane.f32.xlu2 %v1582_v10  ;;  %3347 = vpow2.f32 %v1313_v61  ;;  %v2200_v31 = vmul.f32 %v4213_v52, %v4340_v29  ;;  %v4355_v46 = vstv %s4307_s17  ;;  %v2189_v52 = vmul.f32 %v4179_v36, %v4299_v56 }
 0x4ea   : > { %v2085_v32 = vadd.f32 %v2083_v58, %v2081_v18  ;;  %v2204_v37 = vmul.f32 %v4237_v40, %v4355_v46  ;;  %v1858_v14 = vadd.f32 %v1856_v59, %v4062_v41  ;;  %v2078_v24 = vadd.f32 %v2076_v3, %v2074_v60 }
 0x4eb   : > { %v2202_v33 = vadd.f32 %v2200_v31, %v2198_v8  ;;  %v2080_v61 = vmul.f32 %v4224_v62, %v4131_v42  ;;  %v2193_v18 = vmul.f32 %v4199_v44, %v4320_v1  ;;  %v4371_v58 = vstv %s4333_s10 }
 0x4ec   : > { %v2089_v40 = vadd.f32 %v2087_v19, %v2085_v32  ;;  %v2084_v36 = vmul.f32 %v4251_v50, %v4139_v48  ;;  %v2197_v42 = vmul.f32 %v4224_v62, %v4331_v6  ;;  %v2201_v44 = vmul.f32 %v4251_v50, %v4340_v29  ;;  %v1305_v19 = vpop.xlane.xlu1 %1304 }
 0x4ed   : > { %v4337_v25 = vpop.f32.mrf.mxu2  ;;  %v1878_v45 = vpop.f32.mrf.mxu1  ;;  %v2206_v27 = vadd.f32 %v2204_v37, %v2202_v33  ;;  %v2082_v30 = vadd.f32 %v2080_v61, %v2078_v24  ;;  %v2205_v60 = vmul.f32 %v4279_v2, %v4355_v46  ;;  %v2088_v32 = vmul.f32 %v4279_v2, %v4146_v53 }
 0x4ee   : > { %v3291_v13 = vpack.i.bf16 %v4337_v25, %v4285_v21  ;;  %v4346_v10 = vadd.f32 %v1878_v45, %v1857_v49  ;;  %v2187_v49 = vmul.f32 %v4174_v16, %v4296_v51  ;;  %v2091_v62 = vadd.f32 %v2089_v40, %v4185_v35 }
 0x4ef   : > { %v4373_v45 = vpop.eup %3347  ;;  %v4378_v41 = vadd.f32 %v2206_v27, %v4371_v58  ;;  %v1651_v40 = vmul.f32 %v4296_v51, %v3903_v63  ;;  %v1677_v63 = vmul.f32 %v3961_v17, %v4340_v29  ;;  %v1678_v17 = vmul.f32 %v3994_v34, %v4340_v29 }
 0x4f0   : > { %v1883_v7 = vsel %vm1302_vm3, %v4346_v10, -inf  ;;  %v2191_v54 = vadd.f32 %v2189_v52, %v2187_v49  ;;  %v1318_v8 = vsel %vm1302_vm3, %v4373_v45, 0.0 }
 0x4f1   : > { %1884 = vmax.xlane.f32.xlu2 %v1883_v7  ;;  %v2086_v7 = vadd.f32 %v2084_v36, %v2082_v30  ;;  %v1663_v36 = vmul.f32 %v3925_v5, %v4320_v1  ;;  %v1652_v30 = vmul.f32 %v4296_v51, %v3942_v11 }
 0x4f2   : > { %v2195_v59 = vadd.f32 %v2193_v18, %v2191_v54 }
 0x4f3   : > { %v2090_v52 = vadd.f32 %v2088_v32, %v2086_v7 }
 0x4f4   : > { %v2199_v3 = vadd.f32 %v2197_v42, %v2195_v59  ;;  %v1670_v42 = vmul.f32 %v3935_v9, %v4331_v6  ;;  %v1684_v9 = vmul.f32 %v3978_v26, %v4355_v46 }
 0x4f5   : > { %v1880_v16 = vpop.f32.mrf.mxu1  ;;  %v2092_v61 = vadd.f32 %v2090_v52, %v4185_v35  ;;  %v1656_v35 = vmul.f32 %v3908_v0, %v4299_v56  ;;  %v1664_v0 = vmul.f32 %v3968_v20, %v4320_v1 }
 0x4f6   : > { %v4382_v15 = vadd.f32 %v1880_v16, %v1858_v14  ;;  %v2203_v31 = vadd.f32 %v2201_v44, %v2199_v3  ;;  %v1309_v14 = vsub.f32 %v4095_v4, %v1305_v19  ;;  %v1657_v44 = vmul.f32 %v3947_v12, %v4299_v56 }
 0x4f7   : > { %v1658_v16 = vadd.f32 %v1656_v35, %v1651_v40  ;;  %v1671_v12 = vmul.f32 %v3985_v28, %v4331_v6 }
 0x4f8   : > { %v1886_v48 = vsel %vm1302_vm3, %v4382_v15, -inf  ;;  %v2207_v50 = vadd.f32 %v2205_v60, %v2203_v31  ;;  %v1311_v27 = vmul.f32 1.442695, %v1309_v14  ;;  %v1659_v3 = vadd.f32 %v1657_v44, %v1652_v30 }
 0x4f9   : > { %1887 = vmax.xlane.f32.xlu1 %v1886_v48  ;;  %1319 = vadd.xlane.f32.xlu2 %v1318_v8  ;;  %v1665_v59 = vadd.f32 %v1663_v36, %v1658_v16  ;;  %v1974_v36 = vadd.f32 %v4283_v47, %v3998_v38 }
 0x4fa   : > { %v4396_v37 = vadd.f32 %v2207_v50, %v4371_v58  ;;  %3349 = vpow2.f32 %v1311_v27  ;;  %v1666_v11 = vadd.f32 %v1664_v0, %v1659_v3  ;;  %v1685_v50 = vmul.f32 %v4003_v39, %v4355_v46 }
 0x4fb   : > { %v1672_v60 = vadd.f32 %v1670_v42, %v1665_v59  ;;  %v1975_v42 = vadd.f32 %v4326_v57, %v3998_v38 }
 0x4fc   : > { %v1673_v56 = vadd.f32 %v1671_v12, %v1666_v11 }
 0x4fd   : > { %v2112_v33 = vpop.f32.mrf.mxu1  ;;  %v1679_v31 = vadd.f32 %v1677_v63, %v1672_v60 }
 0x4fe   : > { %v4398_v49 = vadd.f32 %v2112_v33, %v2091_v62  ;;  %v1680_v26 = vadd.f32 %v1678_v17, %v1673_v56 }
 0x4ff   : > { %v1686_v51 = vadd.f32 %v1684_v9, %v1679_v31 }
 0x500   : > { %v2117_v24 = vsel %vm1302_vm3, %v4398_v49, -inf  ;;  %v4408_v18 = vpop.eup %3349  ;;  %v1687_v34 = vadd.f32 %v1685_v50, %v1680_v26 }
 0x501   : > { %2118 = vmax.xlane.f32.xlu1 %v2117_v24  ;;  %v1315_v4 = vsel %vm1302_vm3, %v4408_v18, 0.0  ;;  %v1691_v32 = vadd.f32 %v4371_v58, %v1686_v51 }
 0x502   : > { %v1692_v52 = vadd.f32 %v4371_v58, %v1687_v34 }
 0x505   : > { %v2114_v54 = vpop.f32.mrf.mxu1 }
 0x506   : > { %v4404_v53 = vadd.f32 %v2114_v54, %v2092_v61 }
 0x508   : > { %v2120_v2 = vsel %vm1302_vm3, %v4404_v53, -inf }
 0x509   : > { %2121 = vmax.xlane.f32.xlu0 %v2120_v2 }
 0x511   : > { %1316 = vadd.xlane.f32.xlu0 %v1315_v4 }
 0x554   : > { %v1581_v48 = vpop.xlane.xlu0 %1580 }
 0x555   : > { %v1585_v5 = vsub.f32 %v4228_v23, %v1581_v48  ;;  %v1712_v23 = vpop.f32.mrf.mxu2 }
 0x556   : > { %v4443_v6 = vadd.f32 %v1712_v23, %v1691_v32 }
 0x557   : > { %v1587_v8 = vmul.f32 1.442695, %v1585_v5 }
 0x558   : > { %v1717_v39 = vsel %vm1302_vm3, %v4443_v6, -inf }
 0x559   : > { %3351 = vpow2.f32 %v1587_v8 }
 0x55c   : > { %v1584_v62 = vpop.xlane.xlu2 %1583 }
 0x55d   : > { %v1586_v20 = vsub.f32 %v4293_v43, %v1584_v62  ;;  %v1714_v46 = vpop.f32.mrf.mxu2 }
 0x55e   : > { %v4453_v24 = vadd.f32 %v1714_v46, %v1692_v52 }
 0x55f   : > { %v4436_v1 = vpop.eup %3351  ;;  %v1589_v7 = vmul.f32 1.442695, %v1586_v20 }
 0x560   : > { %v1591_v28 = vsel %vm1302_vm3, %v4436_v1, 0.0  ;;  %v1720_v2 = vsel %vm1302_vm3, %v4453_v24, -inf }
 0x561   : > { %3353 = vpow2.f32 %v1589_v7  ;;  %1592 = vadd.xlane.f32.xlu1 %v1591_v28 }
 0x564   : > { %v1885_v29 = vpop.xlane.xlu2 %1884 }
 0x565   : > { %v1889_v43 = vsub.f32 %v4346_v10, %v1885_v29 }
 0x567   : > { %v4446_v19 = vpop.eup %3353  ;;  %v1891_v33 = vmul.f32 1.442695, %v1889_v43 }
 0x568   : > { %v1594_v14 = vsel %vm1302_vm3, %v4446_v19, 0.0 }
 0x569   : > { %3355 = vpow2.f32 %v1891_v33  ;;  %1595 = vadd.xlane.f32.xlu0 %v1594_v14  ;;  %1718 = vmax.xlane.f32.xlu1 %v1717_v39 }
 0x56c   : > { %v1888_v61 = vpop.xlane.xlu1 %1887  ;;  %v4504_v11 = vpop.xlane.xlu2 %1319 }
 0x56d   : > { %v1890_v10 = vsub.f32 %v4382_v15, %v1888_v61  ;;  %v1995_v15 = vpop.f32.mrf.mxu2  ;;  %vm1341_vm11 = vweird.f32 %v4504_v11 }
 0x56e   : > { %v4477_v30 = vadd.f32 %v1995_v15, %v1974_v36 }
 0x56f   : > { %v4456_v27 = vpop.eup %3355  ;;  %v1893_v54 = vmul.f32 1.442695, %v1890_v10 }
 0x570   : > { %v1895_v58 = vsel %vm1302_vm3, %v4456_v27, 0.0 }
 0x571   : > { %3357 = vpow2.f32 %v1893_v54  ;;  %1896 = vadd.xlane.f32.xlu2 %v1895_v58  ;;  %1721 = vmax.xlane.f32.xlu0 %v1720_v2 }
 0x574   : > { %v2119_v16 = vpop.xlane.xlu1 %2118 }
 0x575   : > { %v1997_v35 = vpop.f32.mrf.mxu2  ;;  %v2123_v59 = vsub.f32 %v4398_v49, %v2119_v16 }
 0x576   : > { %v4479_v63 = vadd.f32 %v1997_v35, %v1975_v42 }
 0x577   : > { %v4462_v4 = vpop.eup %3357  ;;  %v2125_v60 = vmul.f32 1.442695, %v2123_v59 }
 0x578   : > { %v1898_v40 = vsel %vm1302_vm3, %v4462_v4, 0.0  ;;  %v2003_v47 = vsel %vm1302_vm3, %v4479_v63, -inf }
 0x579   : > { %1899 = vadd.xlane.f32.xlu1 %v1898_v40  ;;  %3359 = vpow2.f32 %v2125_v60 }
 0x57c   : > { %v2122_v3 = vpop.xlane.xlu0 %2121 }
 0x57d   : > { %v2229_v44 = vpop.f32.mrf.mxu2  ;;  %v2124_v49 = vsub.f32 %v4404_v53, %v2122_v3 }
 0x57e   : > { %v4496_v31 = vadd.f32 %v2229_v44, %v4378_v41 }
 0x57f   : > { %v4486_v38 = vpop.eup %3359  ;;  %v2127_v57 = vmul.f32 1.442695, %v2124_v49 }
 0x580   : > { %v2129_v5 = vsel %vm1302_vm3, %v4486_v38, 0.0  ;;  %v2234_v9 = vsel %vm1302_vm3, %v4496_v31, -inf }
 0x581   : > { %3361 = vpow2.f32 %v2127_v57 }
 0x582   : > { %3363 = vrcp.f32 %v4504_v11 }
 0x584   : > { %v4506_v12 = vpop.xlane.xlu0 %1316 }
 0x585   : > { %1352 = vrot.lane.b32.xlu0 %v3855_v22, %s3547_s30  ;;  %v2231_v0 = vpop.f32.mrf.mxu2  ;;  %v1332_v49 = vand.u32 2147483648, %v4506_v12  ;;  %vm1326_vm9 = vweird.f32 %v4506_v12 }
 0x586   : > { %v4489_v48 = vadd.f32 %v2231_v0, %v4396_v37 }
 0x587   : > { %v4498_v53 = vpop.eup %3361 }
 0x588   : > { %v2237_v8 = vsel %vm1302_vm3, %v4489_v48, -inf  ;;  %v2132_v37 = vsel %vm1302_vm3, %v4498_v53, 0.0  ;;  %v4510_v41 = vpop.eup %3363 }
 0x589   : > { %1628 = vrot.lane.b32.xlu2 %v3855_v22, %s3548_s6  ;;  %v1337_v7 = vmul.f32 %v4510_v41, %v4504_v11  ;;  %vm1342_vm2 = vweird.f32 %v4510_v41 }
 0x58b   : > { %v1338_v34 = vsub.f32 1.0, %v1337_v7 }
 0x58d   : > { %v1339_v46 = vmul.f32 %v4510_v41, %v1338_v34 }
 0x58f   : > { %v1340_v42 = vadd.f32 %v4510_v41, %v1339_v46 }
 0x592   : > { %1766 = vrot.lane.b32.xlu1 %v3855_v22, %s3549_s19  ;;  %v2000_v22 = vsel %vm1302_vm3, %v4477_v30, -inf }
 0x5af   : > { %2001 = vmax.xlane.f32.xlu0 %v2000_v22 }
 0x5b2   : > { %2004 = vmax.xlane.f32.xlu2 %v2003_v47 }
 0x5ba   : > { %2130 = vadd.xlane.f32.xlu2 %v2129_v5 }
 0x5bc   : > { %2238 = vmax.xlane.f32.xlu1 %v2237_v8 }
 0x5c2   : > { %2235 = vmax.xlane.f32.xlu2 %v2234_v9 }
 0x5c4   : > { %2133 = vadd.xlane.f32.xlu1 %v2132_v37 }
 0x5d4   : > { %v1593_v51 = vpop.xlane.xlu1 %1592 }
 0x5d5   : > { %3365 = vrcp.f32 %v1593_v51  ;;  %vm1602_vm15 = vweird.f32 %v1593_v51  ;;  %v1606_v40 = vand.u32 2147483647, %v1593_v51 }
 0x5d6   : > { %3367 = vrcp.f32 %v4506_v12 }
 0x5d7   : > { %vm1607_vm7 = vcmp.eq.f32.partialorder %v1606_v40, 8.507059e+37 }
 0x5db   : > { %v3366_v56 = vpop.eup %3365 }
 0x5dc   : > { %v4512_v17 = vpop.eup %3367  ;;  %v1598_v62 = vmul.f32 %v3366_v56, %v1593_v51  ;;  %v1719_v20 = vpop.xlane.xlu1 %1718  ;;  %vm1603_vm14 = vweird.f32 %v3366_v56 }
 0x5dd   : > { %v1596_v23 = vpop.xlane.xlu0 %1595  ;;  %v1723_v32 = vsub.f32 %v4443_v6, %v1719_v20  ;;  %v1322_v50 = vmul.f32 %v4512_v17, %v4506_v12  ;;  %v1608_v6 = vand.u32 2147483648, %v1593_v51  ;;  %vm4527_vm0 = vmor %vm1602_vm15, %vm1603_vm14  ;;  %vm1327_vm6 = vweird.f32 %v4512_v17 }
 0x5de   : > { %3369 = vrcp.f32 %v1596_v23  ;;  %v1599_v26 = vsub.f32 1.0, %v1598_v62  ;;  %v1623_v15 = vand.u32 2147483648, %v1596_v23  ;;  %v1621_v44 = vand.u32 2147483647, %v1596_v23  ;;  %vm4557_vm13 = vmor %vm1326_vm9, %vm1327_vm6 }
 0x5df   : > { %v1725_v28 = vmul.f32 1.442695, %v1723_v32  ;;  %v1323_v33 = vsub.f32 1.0, %v1322_v50  ;;  %v1609_v60 = vor.u32 1.1754944e-38, %v1608_v6  ;;  %vm1617_vm5 = vweird.f32 %v1596_v23  ;;  %vm4571_vm14 = vmor %vm1341_vm11, %vm1342_vm2 }
 0x5e0   : > { %v1600_v29 = vmul.f32 %v3366_v56, %v1599_v26  ;;  %v1624_v5 = vor.u32 1.1754944e-38, %v1623_v15  ;;  %vm1622_vm10 = vcmp.eq.f32.partialorder %v1621_v44, 8.507059e+37  ;;  %v1347_v62 = vand.u32 2147483648, %v4504_v11 }
 0x5e1   : > { %3371 = vpow2.f32 %v1725_v28  ;;  %v1324_v2 = vmul.f32 %v4512_v17, %v1323_v33  ;;  %v1345_v32 = vand.u32 2147483647, %v4504_v11  ;;  %v1344_v11 = vsel %vm4571_vm14, %v4510_v41, %v1340_v42 }
 0x5e2   : > { %v1601_v61 = vadd.f32 %v3366_v56, %v1600_v29  ;;  %v1333_v29 = vor.u32 1.1754944e-38, %v1332_v49 }
 0x5e3   : > { %v1325_v47 = vadd.f32 %v4512_v17, %v1324_v2 }
 0x5e4   : > { %v3370_v43 = vpop.eup %3369  ;;  %v4519_v14 = vpop.xlane.xlu2 %1896 }
 0x5e5   : > { %v1613_v52 = vmul.f32 %v3370_v43, %v1596_v23  ;;  %v1722_v39 = vpop.xlane.xlu0 %1721  ;;  %3373 = vrcp.f32 %v4519_v14  ;;  %vm1618_vm1 = vweird.f32 %v3370_v43  ;;  %v1912_v41 = vand.u32 2147483648, %v4519_v14 }
 0x5e6   : > { %v1724_v54 = vsub.f32 %v4453_v24, %v1722_v39  ;;  %v1605_v24 = vsel %vm4527_vm0, %v3366_v56, %v1601_v61  ;;  %vm4543_vm8 = vmor %vm1617_vm5, %vm1618_vm1  ;;  %v1330_v56 = vand.u32 2147483647, %v4506_v12  ;;  %v1329_v12 = vsel %vm4557_vm13, %v4512_v17, %v1325_v47 }
 0x5e7   : > { %v1614_v10 = vsub.f32 1.0, %v1613_v52  ;;  %v4524_v58 = vpop.eup %3371  ;;  %v1610_v51 = vsel %vm1607_vm7, %v1609_v60, %v1605_v24  ;;  %v1348_v17 = vor.u32 1.1754944e-38, %v1347_v62  ;;  %vm1346_vm0 = vcmp.eq.f32.partialorder %v1345_v32, 8.507059e+37 }
 0x5e8   : > { %v1727_v36 = vmul.f32 1.442695, %v1724_v54  ;;  %v1729_v59 = vsel %vm1302_vm3, %v4524_v58, 0.0  ;;  %v1611_v26 = vmul.f32 %v4436_v1, %v1610_v51  ;;  %vm1331_vm15 = vcmp.eq.f32.partialorder %v1330_v56, 8.507059e+37 }
 0x5e9   : > { %v1615_v16 = vmul.f32 %v3370_v43, %v1614_v10  ;;  %1730 = vadd.xlane.f32.xlu2 %v1729_v59  ;;  %v1334_v33 = vsel %vm1331_vm15, %v1333_v29, %v1329_v12  ;;  %v1349_v61 = vsel %vm1346_vm0, %v1348_v17, %v1344_v11  ;;  %vm1906_vm2 = vweird.f32 %v4519_v14 }
 0x5ea   : > { %3375 = vpow2.f32 %v1727_v36  ;;  %v1335_v6 = vmul.f32 %v4408_v18, %v1334_v33  ;;  %v1910_v10 = vand.u32 2147483647, %v4519_v14  ;;  %v1350_v15 = vmul.f32 %v4373_v45, %v1349_v61 }
 0x5eb   : > { %v1616_v22 = vadd.f32 %v3370_v43, %v1615_v16  ;;  %v4537_v3 = vpop.eup %3373  ;;  %v1913_v59 = vor.u32 1.1754944e-38, %v1912_v41 }
 0x5ec   : > { %v1902_v8 = vmul.f32 %v4537_v3, %v4519_v14  ;;  %v1629_v9 = vpop.permute.xlu2 %1628  ;;  %v1900_v37 = vpop.xlane.xlu1 %1899  ;;  %vm1907_vm1 = vweird.f32 %v4537_v3  ;;  %v1351_v42 = vpack.c.bf16 %v1350_v15, %v1335_v6  ;;  %vm1911_vm7 = vcmp.eq.f32.partialorder %v1910_v10, 8.507059e+37 }
 0x5ed   : > { %v1620_v57 = vsel %vm4543_vm8, %v3370_v43, %v1616_v22  ;;  %3377 = vrcp.f32 %v1900_v37  ;;  %1641 = vmatpush.bf16.msrb.mxu3 %v1629_v9  ;;  %vm1908_vm5 = vmor %vm1906_vm2, %vm1907_vm1  ;;  %v1927_v2 = vand.u32 2147483648, %v1900_v37  ;;  %v1925_v36 = vand.u32 2147483647, %v1900_v37 }
 0x5ee   : > { %v1903_v23 = vsub.f32 1.0, %v1902_v8  ;;  %v1625_v7 = vsel %vm1622_vm10, %v1624_v5, %v1620_v57  ;;  %vm1921_vm8 = vweird.f32 %v1900_v37 }
 0x5ef   : > { %v1626_v50 = vmul.f32 %v4446_v19, %v1625_v7  ;;  %v1928_v14 = vor.u32 1.1754944e-38, %v1927_v2  ;;  %vm1926_vm10 = vcmp.eq.f32.partialorder %v1925_v36, 8.507059e+37 }
 0x5f0   : > { %v4567_v28 = vpop.eup %3375  ;;  %v1904_v43 = vmul.f32 %v4537_v3, %v1903_v23 }
 0x5f1   : > { %v1732_v1 = vsel %vm1302_vm3, %v4567_v28, 0.0  ;;  %v1627_v19 = vpack.c.bf16 %v1626_v50, %v1611_v26 }
 0x5f2   : > { %1733 = vadd.xlane.f32.xlu1 %v1732_v1  ;;  %v1905_v39 = vadd.f32 %v4537_v3, %v1904_v43 }
 0x5f3   : > { %v3378_v52 = vpop.eup %3377  ;;  %3110 = vmatmul.msk.bf16.vlgmr.msrb.gmra.mxu3 %vm1302_vm3, %v1627_v19 }
 0x5f4   : > { %v1917_v46 = vmul.f32 %v3378_v52, %v1900_v37  ;;  %v1909_v35 = vsel %vm1908_vm5, %v4537_v3, %v1905_v39  ;;  %vm1922_vm6 = vweird.f32 %v3378_v52 }
 0x5f5   : > { %v1914_v24 = vsel %vm1911_vm7, %v1913_v59, %v1909_v35  ;;  %vm1923_vm9 = vmor %vm1921_vm8, %vm1922_vm6 }
 0x5f6   : > { %v1918_v54 = vsub.f32 1.0, %v1917_v46  ;;  %v4592_v45 = vmul.f32 %v4456_v27, %v1914_v24 }
 0x5f7   : > { %v1353_v40 = vpop.permute.xlu0 %1352 }
 0x5f8   : > { %v1919_v16 = vmul.f32 %v3378_v52, %v1918_v54  ;;  %1365 = vmatpush.bf16.msrb.mxu0 %v1353_v40 }
 0x5fa   : > { %v1920_v18 = vadd.f32 %v3378_v52, %v1919_v16 }
 0x5fb   : > { %3106 = vmatmul.msk.bf16.vlgmr.msrb.gmra.mxu0 %vm1302_vm3, %v1351_v42 }
 0x5fc   : > { %v1924_v44 = vsel %vm1923_vm9, %v3378_v52, %v1920_v18 }
 0x5fd   : > { %v1929_v60 = vsel %vm1926_vm10, %v1928_v14, %v1924_v44 }
 0x5fe   : > { %v4595_v22 = vmul.f32 %v4462_v4, %v1929_v60 }
 0x600   : > { %v1931_v3 = vpack.c.bf16 %v4595_v22, %v4592_v45 }
 0x604   : > { %v1767_v47 = vpop.permute.xlu1 %1766 }
 0x605   : > { %1779 = vmatpush.bf16.msra.mxu0 %v1767_v47 }
 0x622   : > { %v2002_v49 = vpop.xlane.xlu0 %2001 }
 0x623   : > { %v2006_v0 = vsub.f32 %v4477_v30, %v2002_v49 }
 0x625   : > { %v2008_v57 = vmul.f32 1.442695, %v2006_v0  ;;  %v2005_v5 = vpop.xlane.xlu2 %2004 }
 0x626   : > { %v2007_v8 = vsub.f32 %v4479_v63, %v2005_v5 }
 0x627   : > { %3379 = vpow2.f32 %v2008_v57 }
 0x628   : > { %v2010_v9 = vmul.f32 1.442695, %v2007_v8 }
 0x62a   : > { %3381 = vpow2.f32 %v2010_v9 }
 0x62d   : > { %v4601_v27 = vpop.eup %3379  ;;  %v2131_v37 = vpop.xlane.xlu2 %2130 }
 0x62e   : > { %3383 = vrcp.f32 %v2131_v37  ;;  %v2012_v51 = vsel %vm1302_vm3, %v4601_v27, 0.0  ;;  %v2146_v11 = vand.u32 2147483648, %v2131_v37  ;;  %vm2140_vm13 = vweird.f32 %v2131_v37 }
 0x62f   : > { %v2239_v4 = vpop.xlane.xlu1 %2238  ;;  %2013 = vadd.xlane.f32.xlu1 %v2012_v51  ;;  %v2144_v1 = vand.u32 2147483647, %v2131_v37 }
 0x630   : > { %v4605_v56 = vpop.eup %3381  ;;  %v2147_v46 = vor.u32 1.1754944e-38, %v2146_v11  ;;  %v2241_v35 = vsub.f32 %v4489_v48, %v2239_v4 }
 0x631   : > { %v2015_v30 = vsel %vm1302_vm3, %v4605_v56, 0.0  ;;  %vm2145_vm0 = vcmp.eq.f32.partialorder %v2144_v1, 8.507059e+37 }
 0x632   : > { %2016 = vadd.xlane.f32.xlu0 %v2015_v30 }
 0x634   : > { %v3384_v62 = vpop.eup %3383 }
 0x635   : > { %v2136_v63 = vmul.f32 %v3384_v62, %v2131_v37  ;;  %v2236_v20 = vpop.xlane.xlu2 %2235  ;;  %vm2141_vm11 = vweird.f32 %v3384_v62 }
 0x636   : > { %v2240_v23 = vsub.f32 %v4496_v31, %v2236_v20  ;;  %vm2142_vm14 = vmor %vm2140_vm13, %vm2141_vm11 }
 0x637   : > { %v2137_v7 = vsub.f32 1.0, %v2136_v63  ;;  %v2134_v32 = vpop.xlane.xlu1 %2133 }
 0x638   : > { %v2242_v12 = vmul.f32 1.442695, %v2240_v23  ;;  %3385 = vrcp.f32 %v2134_v32  ;;  %v2161_v31 = vand.u32 2147483648, %v2134_v32  ;;  %v2159_v39 = vand.u32 2147483647, %v2134_v32 }
 0x639   : > { %v2138_v26 = vmul.f32 %v3384_v62, %v2137_v7  ;;  %vm2155_vm1 = vweird.f32 %v2134_v32 }
 0x63a   : > { %3387 = vpow2.f32 %v2242_v12  ;;  %v2162_v6 = vor.u32 1.1754944e-38, %v2161_v31  ;;  %vm2160_vm5 = vcmp.eq.f32.partialorder %v2159_v39, 8.507059e+37 }
 0x63b   : > { %v2139_v34 = vadd.f32 %v3384_v62, %v2138_v26 }
 0x63d   : > { %v2143_v33 = vsel %vm2142_vm14, %v3384_v62, %v2139_v34 }
 0x63e   : > { %v3386_v50 = vpop.eup %3385  ;;  %v2148_v41 = vsel %vm2145_vm0, %v2147_v46, %v2143_v33 }
 0x63f   : > { %v2151_v29 = vmul.f32 %v3386_v50, %v2134_v32  ;;  %vm2156_vm15 = vweird.f32 %v3386_v50  ;;  %v4617_v2 = vmul.f32 %v4486_v38, %v2148_v41 }
 0x640   : > { %v4610_v43 = vpop.eup %3387  ;;  %vm2157_vm2 = vmor %vm2155_vm1, %vm2156_vm15 }
 0x641   : > { %v2152_v19 = vsub.f32 1.0, %v2151_v29  ;;  %v2246_v17 = vsel %vm1302_vm3, %v4610_v43, 0.0 }
 0x642   : > { %2247 = vadd.xlane.f32.xlu2 %v2246_v17 }
 0x643   : > { %v2153_v52 = vmul.f32 %v3386_v50, %v2152_v19 }
 0x645   : > { %v2154_v61 = vadd.f32 %v3386_v50, %v2153_v52 }
 0x646   : > { %1932 = vrot.lane.b32.xlu0 %v4017_v55, %s3547_s30  ;;  %s4943_s30 = scalar_lea.vmem %s4859_s18, %s3720_s26 }
 0x647   : > { %v2158_v10 = vsel %vm2157_vm2, %v3386_v50, %v2154_v61 }
 0x648   : > { %v2163_v54 = vsel %vm2160_vm5, %v2162_v6, %v2158_v10  ;;  %2166 = vrot.lane.b32.xlu1 %v4017_v55, %s3548_s6 }
 0x649   : > { %v4620_v40 = vmul.f32 %v4498_v53, %v2163_v54  ;;  %v2244_v53 = vmul.f32 1.442695, %v2241_v35 }
 0x64b   : > { %v2165_v15 = vpack.c.bf16 %v4620_v40, %v4617_v2 }
 0x650   : > { %3292 = vrot.lane.b32.xlu1 %v3291_v13, %s3550_s7 }
 0x65a   : > { %2049 = vrot.lane.b32.xlu2 %v4017_v55, %s3544_s8  ;;  %s3551_s8 = smov 16  }
 0x65c   : > { %v1731_v38 = vpop.xlane.xlu2 %1730 }
 0x65d   : > { %3389 = vrcp.f32 %v1731_v38  ;;  %v1746_v14 = vand.u32 2147483648, %v1731_v38  ;;  %vm1740_vm7 = vweird.f32 %v1731_v38  ;;  %v1744_v48 = vand.u32 2147483647, %v1731_v38 }
 0x65e   : > { %3391 = vpow2.f32 %v2244_v53 }
 0x65f   : > { %v1747_v57 = vor.u32 1.1754944e-38, %v1746_v14  ;;  %vm1745_vm10 = vcmp.eq.f32.partialorder %v1744_v48, 8.507059e+37 }
 0x662   : > { %2283 = vrot.lane.b32.xlu2 %v4017_v55, %s3549_s19 }
 0x663   : > { %v3390_v16 = vpop.eup %3389 }
 0x664   : > { %v1736_v36 = vmul.f32 %v3390_v16, %v1731_v38  ;;  %v4635_v21 = vpop.eup %3391  ;;  %vm1741_vm6 = vweird.f32 %v3390_v16 }
 0x665   : > { %v1734_v59 = vpop.xlane.xlu1 %1733  ;;  %v2249_v55 = vsel %vm1302_vm3, %v4635_v21, 0.0  ;;  %vm1742_vm8 = vmor %vm1740_vm7, %vm1741_vm6 }
 0x666   : > { %v1737_v42 = vsub.f32 1.0, %v1736_v36  ;;  %3393 = vrcp.f32 %v1734_v59  ;;  %v1761_v60 = vand.u32 2147483648, %v1734_v59  ;;  %v1759_v0 = vand.u32 2147483647, %v1734_v59 }
 0x667   : > { %vm1755_vm11 = vweird.f32 %v1734_v59 }
 0x668   : > { %v1738_v18 = vmul.f32 %v3390_v16, %v1737_v42  ;;  %v1762_v9 = vor.u32 1.1754944e-38, %v1761_v60  ;;  %vm1760_vm14 = vcmp.eq.f32.partialorder %v1759_v0, 8.507059e+37 }
 0x66a   : > { %v1739_v13 = vadd.f32 %v3390_v16, %v1738_v18 }
 0x66c   : > { %v3394_v25 = vpop.eup %3393  ;;  %v1743_v47 = vsel %vm1742_vm8, %v3390_v16, %v1739_v13 }
 0x66d   : > { %v1751_v24 = vmul.f32 %v3394_v25, %v1734_v59  ;;  %vm1756_vm9 = vweird.f32 %v3394_v25  ;;  %v1748_v8 = vsel %vm1745_vm10, %v1747_v57, %v1743_v47 }
 0x66e   : > { %vm1757_vm13 = vmor %vm1755_vm11, %vm1756_vm9  ;;  %v1749_v30 = vmul.f32 %v4524_v58, %v1748_v8 }
 0x66f   : > { %v1752_v44 = vsub.f32 1.0, %v1751_v24 }
 0x670   : > { %2250 = vadd.xlane.f32.xlu0 %v2249_v55 }
 0x671   : > { %v1753_v49 = vmul.f32 %v3394_v25, %v1752_v44 }
 0x673   : > { %v1754_v5 = vadd.f32 %v3394_v25, %v1753_v49 }
 0x675   : > { %v1758_v37 = vsel %vm1757_vm13, %v3394_v25, %v1754_v5 }
 0x676   : > { %v1763_v4 = vsel %vm1760_vm14, %v1762_v9, %v1758_v37  ;;  %v1643_v51 = vpop.f32.mrf.mxu3 }
 0x677   : > { %v1764_v62 = vmul.f32 %v4567_v28, %v1763_v4 }
 0x678   : > { %v1367_v45 = vpop.f32.mrf.mxu0 }
 0x679   : > { %v1765_v63 = vpack.c.bf16 %v1764_v62, %v1749_v30 }
 0x67b   : > { %3112 = vmatmul.msk.bf16.vlgmr.msra.gmra.mxu0 %vm1302_vm3, %v1765_v63  ;;  %v3205_v63 = vld [vmem:[%s3743_s22 + $0x8] sm:$0xff] }
 0x67c   : > { %2367 = vmatpush.bf16.msra.mxu1 %v3205_v63  ;;  %v3421_v63 = vld [vmem:[#allocation2 + $0x10] sm:$0xff] }
 0x67e   : > { %v1645_v20 = vpop.f32.mrf.mxu3 }
 0x67f   : > { %v3296_v23 = vpack.i.bf16 %v1645_v20, %v1643_v51 }
 0x680   : > { %v1369_v60 = vpop.f32.mrf.mxu0 }
 0x681   : > { %3297 = vrot.lane.b32.xlu2 %v3296_v23, %s3551_s8 }
 0x6a2   : > { %v2014_v7 = vpop.xlane.xlu1 %2013 }
 0x6a3   : > { %3395 = vrcp.f32 %v2014_v7  ;;  %v2029_v33 = vand.u32 2147483648, %v2014_v7  ;;  %vm2023_vm5 = vweird.f32 %v2014_v7  ;;  %v2027_v52 = vand.u32 2147483647, %v2014_v7 }
 0x6a5   : > { %v2017_v32 = vpop.xlane.xlu0 %2016  ;;  %v2030_v6 = vor.u32 1.1754944e-38, %v2029_v33  ;;  %vm2028_vm8 = vcmp.eq.f32.partialorder %v2027_v52, 8.507059e+37 }
 0x6a6   : > { %3397 = vrcp.f32 %v2017_v32  ;;  %vm2038_vm0 = vweird.f32 %v2017_v32  ;;  %v2044_v1 = vand.u32 2147483648, %v2017_v32  ;;  %v2042_v31 = vand.u32 2147483647, %v2017_v32 }
 0x6a8   : > { %v2045_v61 = vor.u32 1.1754944e-38, %v2044_v1  ;;  %vm2043_vm7 = vcmp.eq.f32.partialorder %v2042_v31, 8.507059e+37 }
 0x6a9   : > { %v3396_v12 = vpop.eup %3395 }
 0x6aa   : > { %v2019_v26 = vmul.f32 %v3396_v12, %v2014_v7  ;;  %vm2024_vm1 = vweird.f32 %v3396_v12 }
 0x6ab   : > { %vm2025_vm6 = vmor %vm2023_vm5, %vm2024_vm1 }
 0x6ac   : > { %v3398_v50 = vpop.eup %3397  ;;  %v2020_v34 = vsub.f32 1.0, %v2019_v26 }
 0x6ad   : > { %v2034_v29 = vmul.f32 %v3398_v50, %v2017_v32  ;;  %vm2039_vm15 = vweird.f32 %v3398_v50 }
 0x6ae   : > { %v2021_v58 = vmul.f32 %v3396_v12, %v2020_v34  ;;  %vm2040_vm2 = vmor %vm2038_vm0, %vm2039_vm15 }
 0x6af   : > { %v2035_v11 = vsub.f32 1.0, %v2034_v29 }
 0x6b0   : > { %v2022_v19 = vadd.f32 %v3396_v12, %v2021_v58 }
 0x6b1   : > { %v2036_v28 = vmul.f32 %v3398_v50, %v2035_v11 }
 0x6b2   : > { %v2026_v41 = vsel %vm2025_vm6, %v3396_v12, %v2022_v19 }
 0x6b3   : > { %v2037_v17 = vadd.f32 %v3398_v50, %v2036_v28  ;;  %v2031_v38 = vsel %vm2028_vm8, %v2030_v6, %v2026_v41 }
 0x6b4   : > { %v2032_v16 = vmul.f32 %v4601_v27, %v2031_v38 }
 0x6b5   : > { %v2041_v39 = vsel %vm2040_vm2, %v3398_v50, %v2037_v17  ;;  %v2248_v46 = vpop.xlane.xlu2 %2247  ;;  %vm1814_vm2 = vcmask 195584  }
 0x6b6   : > { %v2046_v10 = vsel %vm2043_vm7, %v2045_v61, %v2041_v39  ;;  %3399 = vrcp.f32 %v2248_v46  ;;  %v2263_v14 = vand.u32 2147483648, %v2248_v46  ;;  %vm2257_vm10 = vweird.f32 %v2248_v46 }
 0x6b7   : > { %v2047_v35 = vmul.f32 %v4605_v56, %v2046_v10  ;;  %v2261_v48 = vand.u32 2147483647, %v2248_v46 }
 0x6b8   : > { %v1933_v54 = vpop.permute.xlu0 %1932  ;;  %v2264_v47 = vor.u32 1.1754944e-38, %v2263_v14 }
 0x6b9   : > { %1945 = vmatpush.bf16.msra.mxu3 %v1933_v54  ;;  %v2048_v59 = vpack.c.bf16 %v2047_v35, %v2032_v16  ;;  %vm2262_vm14 = vcmp.eq.f32.partialorder %v2261_v48, 8.507059e+37 }
 0x6ba   : > { %v2167_v53 = vpop.permute.xlu1 %2166 }
 0x6bc   : > { %3126 = vmatmul.msk.bf16.vlgmr.msra.gmra.mxu3 %vm1302_vm3, %v1931_v3  ;;  %v3400_v56 = vpop.eup %3399 }
 0x6bd   : > { %2179 = vmatpush.bf16.msrb.mxu3 %v2167_v53  ;;  %v2050_v36 = vpop.permute.xlu2 %2049  ;;  %v2253_v27 = vmul.f32 %v3400_v56, %v2248_v46  ;;  %vm2258_vm9 = vweird.f32 %v3400_v56 }
 0x6be   : > { %2062 = vmatpush.bf16.msrb.mxu0 %v2050_v36  ;;  %vm2259_vm11 = vmor %vm2257_vm10, %vm2258_vm9 }
 0x6bf   : > { %v2254_v18 = vsub.f32 1.0, %v2253_v27 }
 0x6c1   : > { %3128 = vmatmul.msk.bf16.vlgmr.msrb.gmra.mxu0 %vm1302_vm3, %v2048_v59  ;;  %v2255_v22 = vmul.f32 %v3400_v56, %v2254_v18 }
 0x6c2   : > { %v3293_v34 = vpop.permute.xlu1 %3292 }
 0x6c3   : > { %v2256_v13 = vadd.f32 %v3400_v56, %v2255_v22  ;;  %v3295_v58 = vunpack.i.h.bf16 %v3293_v34  ;;  %v3294_v11 = vunpack.i.l.bf16 %v3293_v34  ;;  %v3324_v22 = vld [vmem:[%s4938_s1] ss:$0 sm:$0xff] }
 0x6c5   : > { %v2284_v42 = vpop.permute.xlu2 %2283  ;;  %v2260_v40 = vsel %vm2259_vm11, %v3400_v56, %v2256_v13  ;;  %v1811_v17 = vsel %vm1281_vm12, %v1369_v60, %v3295_v58  ;;  %v1810_v31 = vsel %vm1281_vm12, %v1367_v45, %v3294_v11 }
 0x6c6   : > { %2296 = vmatpush.bf16.msra.mxu0 %v2284_v42  ;;  %v2265_v0 = vsel %vm2262_vm14, %v2264_v47, %v2260_v40  ;;  %v3419_v40 = vld [vmem:[#allocation2] sm:$0xff] }
 0x6c7   : > { %v2266_v9 = vmul.f32 %v4610_v43, %v2265_v0 }
 0x6cc   : > { %3130 = vmatmul.msk.bf16.vlgmr.msrb.gmra.mxu3 %vm1302_vm3, %v2165_v15 }
 0x6db   : > { %v3298_v29 = vpop.permute.xlu2 %3297 }
 0x6dc   : > { %v3300_v28 = vunpack.i.h.bf16 %v3298_v29  ;;  %v3299_v1 = vunpack.i.l.bf16 %v3298_v29 }
 0x6de   : > { %v1812_v46 = vsel %vm1302_vm3, %v1810_v31, %v3299_v1  ;;  %v1813_v61 = vsel %vm1302_vm3, %v1811_v17, %v3300_v28 }
 0x6e3   : > { %v2251_v25 = vpop.xlane.xlu0 %2250 }
 0x6e4   : > { %3401 = vrcp.f32 %v2251_v25  ;;  %v2278_v2 = vand.u32 2147483648, %v2251_v25  ;;  %v2276_v55 = vand.u32 2147483647, %v2251_v25  ;;  %vm2272_vm15 = vweird.f32 %v2251_v25 }
 0x6e6   : > { %v2279_v57 = vor.u32 1.1754944e-38, %v2278_v2  ;;  %vm2277_vm1 = vcmp.eq.f32.partialorder %v2276_v55, 8.507059e+37 }
 0x6ea   : > { %v3402_v3 = vpop.eup %3401 }
 0x6eb   : > { %v2268_v24 = vmul.f32 %v3402_v3, %v2251_v25  ;;  %vm2273_vm13 = vweird.f32 %v3402_v3 }
 0x6ec   : > { %vm2274_vm0 = vmor %vm2272_vm15, %vm2273_vm13 }
 0x6ed   : > { %v2269_v44 = vsub.f32 1.0, %v2268_v24 }
 0x6ef   : > { %v2270_v15 = vmul.f32 %v3402_v3, %v2269_v44 }
 0x6f1   : > { %v2271_v49 = vadd.f32 %v3402_v3, %v2270_v15 }
 0x6f3   : > { %v2275_v5 = vsel %vm2274_vm0, %v3402_v3, %v2271_v49  ;;  %v3420_v49 = vld [vmem:[#allocation2 + $0x8] sm:$0xff]  ;;  %vm2609_vm0 = vcmask 523264  }
 0x6f4   : > { %v2280_v8 = vsel %vm2277_vm1, %v2279_v57, %v2275_v5 }
 0x6f5   : > { %v2281_v37 = vmul.f32 %v4635_v21, %v2280_v8  ;;  %v3204_v21 = vld [vmem:[%s3743_s22] sm:$0xff]  ;;  %s4945_s22 = sld [smem:[#allocation30_spill]] (!%p3171_p9) }
 0x6f6   : > { %2368 = vmatpush.bf16.msra.mxu1 %v3204_v21  ;;  %v4939_v8 = vld [vmem:[#allocation15_spill] sm:$0xff]  ;;  %v3422_v21 = vld [vmem:[#allocation2 + $0x18] sm:$0xff] }
 0x6f7   : > { %v2282_v4 = vpack.c.bf16 %v2281_v37, %v2266_v9 }
 0x6f8   : > { %v1781_v51 = vpop.f32.mrf.mxu0 }
 0x6f9   : > { %3132 = vmatmul.msk.bf16.vlgmr.msra.gmra.mxu0 %vm1302_vm3, %v2282_v4 }
 0x700   : > { %v1783_v30 = vpop.f32.mrf.mxu0 }
 0x701   : > { %v3301_v62 = vpack.i.bf16 %v1783_v30, %v1781_v51 }
 0x703   : > { %3302 = vrot.lane.b32.xlu1 %v3301_v62, %s3552_s23 }
 0x73e   : > { %v2064_v20 = vpop.f32.mrf.mxu0 }
 0x73f   : > { %v1947_v23 = vpop.f32.mrf.mxu3 }
 0x746   : > { %v2066_v7 = vpop.f32.mrf.mxu0 }
 0x747   : > { %v3306_v32 = vpack.i.bf16 %v2066_v7, %v2064_v20  ;;  %v1949_v12 = vpop.f32.mrf.mxu3 }
 0x749   : > { %3307 = vrot.lane.b32.xlu0 %v3306_v32, %s3550_s7 }
 0x74f   : > { %v2181_v43 = vpop.f32.mrf.mxu3 }
 0x757   : > { %v2183_v26 = vpop.f32.mrf.mxu3 }
 0x758   : > { %v3311_v50 = vpack.i.bf16 %v2183_v26, %v2181_v43 }
 0x75a   : > { %3312 = vrot.lane.b32.xlu2 %v3311_v50, %s3551_s8 }
 0x775   : > { %v3303_v19 = vpop.permute.xlu1 %3302 }
 0x776   : > { %v3305_v33 = vunpack.i.h.bf16 %v3303_v19  ;;  %v3304_v52 = vunpack.i.l.bf16 %v3303_v19  ;;  %v2298_v39 = vpop.f32.mrf.mxu0 }
 0x778   : > { %v1815_v41 = vsel %vm1814_vm2, %v1812_v46, %v3304_v52  ;;  %v1816_v6 = vsel %vm1814_vm2, %v1813_v61, %v3305_v33  ;;  %v3207_v46 = vld [vmem:[%s3760_s9 + $0x8] sm:$0xff] }
 0x779   : > { %v2333_v10 = vpack.c.bf16 %v1816_v6, %v1815_v41  ;;  %2522 = vmatpush.bf16.msra.mxu3 %v3207_v46  ;;  %v3211_v46 = vld [vmem:[%s3770_s27 + $0x18] sm:$0xff] }
 0x77a   : > { %2620 = vmatpush.bf16.msra.mxu2 %v3211_v46 }
 0x77b   : > { %3141 = vmatmul.msk.bf16.vlgmr.msra.gmra.mxu1 %vm1052_vm4, %v2333_v10  ;;  %v3206_v10 = vld [vmem:[%s3760_s9] sm:$0xff]  ;;  %s4946_s9 = sld [smem:[#allocation31_spill]] (!%p3171_p9) }
 0x77d   : > { %2523 = vmatpush.bf16.msra.mxu3 %v3206_v10  ;;  %v3208_v10 = vld [vmem:[%s3770_s27] sm:$0xff] }
 0x77e   : > { %v2300_v54 = vpop.f32.mrf.mxu0 }
 0x77f   : > { %v3316_v38 = vpack.i.bf16 %v2300_v54, %v2298_v39 }
 0x781   : > { %3317 = vrot.lane.b32.xlu1 %v3316_v38, %s3552_s23 }
 0x7b4   : > { %v3313_v36 = vpop.permute.xlu2 %3312 }
 0x7b5   : > { %v3315_v56 = vunpack.i.h.bf16 %v3313_v36  ;;  %v3314_v27 = vunpack.i.l.bf16 %v3313_v36 }
 0x7bb   : > { %v3308_v35 = vpop.permute.xlu0 %3307 }
 0x7bc   : > { %v3310_v53 = vunpack.i.h.bf16 %v3308_v35  ;;  %v3309_v16 = vunpack.i.l.bf16 %v3308_v35 }
 0x7be   : > { %v2328_v59 = vsel %vm1281_vm12, %v1949_v12, %v3310_v53  ;;  %v2327_v42 = vsel %vm1281_vm12, %v1947_v23, %v3309_v16 }
 0x7bf   : > { %v2329_v3 = vsel %vm1302_vm3, %v2327_v42, %v3314_v27  ;;  %v2330_v13 = vsel %vm1302_vm3, %v2328_v59, %v3315_v56 }
 0x7f3   : > { %v3318_v18 = vpop.permute.xlu1 %3317 }
 0x7f4   : > { %v3320_v25 = vunpack.i.h.bf16 %v3318_v18  ;;  %v3319_v45 = vunpack.i.l.bf16 %v3318_v18 }
 0x7f6   : > { %v2331_v24 = vsel %vm1814_vm2, %v2329_v3, %v3319_v45  ;;  %v2332_v14 = vsel %vm1814_vm2, %v2330_v13, %v3320_v25 }
 0x7f7   : > { %v2334_v48 = vpack.c.bf16 %v2332_v14, %v2331_v24  ;;  %v3325_v24 = vld [vmem:[%s4940_s29] ss:$0 sm:$0xff] }
 0x7f8   : > { %v2370_v44 = vpop.f32.mrf.mxu1 }
 0x7f9   : > { %v2371_v2 = vadd.f32 %v3324_v22, %v2370_v44  ;;  %3142 = vmatmul.msk.bf16.gmra.mxu1 %vm1052_vm4, %v2334_v48 }
 0x7fb   : > { %v4682_v15 = vadd.f32 %v3419_v40, %v2371_v2  ;;  %v3326_v2 = vld [vmem:[%s4941_s0] ss:$0 sm:$0xff] }
 0x7fd   : > { %v2386_v55 = vsel %vm1052_vm4, %v4682_v15, 0.0 }
 0x7fe   : > { %2387 = vadd.xlane.f32.xlu2 %v2386_v55 }
 0x800   : > { %v2372_v60 = vpop.f32.mrf.mxu1 }
 0x801   : > { %v2373_v47 = vadd.f32 %v3324_v22, %v2372_v60 }
 0x803   : > { %v4686_v0 = vadd.f32 %v3420_v49, %v2373_v47 }
 0x805   : > { %v2389_v57 = vsel %vm1052_vm4, %v4686_v0, 0.0 }
 0x806   : > { %2390 = vadd.xlane.f32.xlu1 %v2389_v57 }
 0x871   : > { %v2388_v5 = vpop.xlane.xlu2 %2387 }
 0x872   : > { %v2398_v9 = vmul.f32 %v2388_v5, %v4939_v8 }
 0x874   : > { %v4692_v37 = vsub.f32 %v4682_v15, %v2398_v9 }
 0x876   : > { %v2375_v4 = vpop.f32.mrf.mxu1  ;;  %v2406_v51 = vmul.f32 %v4692_v37, %v4692_v37 }
 0x877   : > { %v2376_v30 = vadd.f32 %v3324_v22, %v2375_v4 }
 0x878   : > { %v2410_v62 = vsel %vm1052_vm4, %v2406_v51, 0.0 }
 0x879   : > { %v4697_v20 = vadd.f32 %v3421_v63, %v2376_v30  ;;  %2411 = vadd.xlane.f32.xlu1 %v2410_v62  ;;  %v2391_v7 = vpop.xlane.xlu1 %2390 }
 0x87a   : > { %v2399_v12 = vmul.f32 %v2391_v7, %v4939_v8 }
 0x87b   : > { %v2392_v23 = vsel %vm1052_vm4, %v4697_v20, 0.0 }
 0x87c   : > { %2393 = vadd.xlane.f32.xlu0 %v2392_v23  ;;  %v2403_v50 = vsub.f32 %v4686_v0, %v2399_v12 }
 0x87e   : > { %v2377_v32 = vpop.f32.mrf.mxu1  ;;  %v2407_v29 = vmul.f32 %v2403_v50, %v2403_v50 }
 0x87f   : > { %v2378_v43 = vadd.f32 %v3324_v22, %v2377_v32 }
 0x880   : > { %v2413_v58 = vsel %vm1052_vm4, %v2407_v29, 0.0 }
 0x881   : > { %v4702_v26 = vadd.f32 %v3422_v21, %v2378_v43 }
 0x883   : > { %v2395_v34 = vsel %vm1052_vm4, %v4702_v26, 0.0 }
 0x884   : > { %2396 = vadd.xlane.f32.xlu2 %v2395_v34 }
 0x88c   : > { %2414 = vadd.xlane.f32.xlu2 %v2413_v58 }
 0x8ec   : > { %v2412_v11 = vpop.xlane.xlu1 %2411 }
 0x8ed   : > { %v2422_v28 = vmul.f32 %v2412_v11, %v4939_v8 }
 0x8ef   : > { %v2426_v1 = vadd.f32 1e-05, %v2422_v28  ;;  %v2394_v19 = vpop.xlane.xlu0 %2393 }
 0x8f0   : > { %v2400_v17 = vmul.f32 %v2394_v19, %v4939_v8 }
 0x8f1   : > { %3403 = vrsqrt.f32 %v2426_v1  ;;  %vm2436_vm3 = vweird.f32 %v2426_v1 }
 0x8f2   : > { %v4711_v31 = vsub.f32 %v4697_v20, %v2400_v17 }
 0x8f4   : > { %v2408_v33 = vmul.f32 %v4711_v31, %v4711_v31 }
 0x8f6   : > { %v2416_v52 = vsel %vm1052_vm4, %v2408_v33, 0.0 }
 0x8f7   : > { %v2397_v39 = vpop.xlane.xlu2 %2396  ;;  %2417 = vadd.xlane.f32.xlu0 %v2416_v52  ;;  %v3404_v61 = vpop.eup %3403 }
 0x8f8   : > { %v2401_v41 = vmul.f32 %v2397_v39, %v4939_v8  ;;  %v2431_v54 = vmul.f32 %v3404_v61, %v2426_v1  ;;  %vm2437_vm12 = vweird.f32 %v3404_v61 }
 0x8f9   : > { %vm2438_vm5 = vmor %vm2436_vm3, %vm2437_vm12 }
 0x8fa   : > { %v4719_v6 = vsub.f32 %v4702_v26, %v2401_v41  ;;  %v2432_v53 = vmul.f32 %v3404_v61, %v2431_v54  ;;  %v3327_v41 = vld [vmem:[%s4942_s2] ss:$0 sm:$0xff] }
 0x8fc   : > { %v2409_v38 = vmul.f32 %v4719_v6, %v4719_v6  ;;  %v2433_v42 = vmul.f32 0.5, %v2432_v53 }
 0x8fe   : > { %v2419_v35 = vsel %vm1052_vm4, %v2409_v38, 0.0  ;;  %v2434_v56 = vsub.f32 1.5, %v2433_v42 }
 0x8ff   : > { %2420 = vadd.xlane.f32.xlu1 %v2419_v35  ;;  %v2415_v16 = vpop.xlane.xlu2 %2414 }
 0x900   : > { %v2423_v36 = vmul.f32 %v2415_v16, %v4939_v8  ;;  %v2435_v18 = vmul.f32 %v3404_v61, %v2434_v56 }
 0x902   : > { %v2427_v59 = vadd.f32 1e-05, %v2423_v36  ;;  %v2439_v22 = vsel %vm2438_vm5, %v3404_v61, %v2435_v18  ;;  %v3210_v61 = vld [vmem:[%s3770_s27 + $0x10] sm:$0xff] }
 0x903   : > { %v2470_v14 = vmul.f32 %v2439_v22, %v4692_v37  ;;  %2621 = vmatpush.bf16.msra.mxu2 %v3210_v61 }
 0x904   : > { %3405 = vrsqrt.f32 %v2427_v59  ;;  %vm2446_vm7 = vweird.f32 %v2427_v59 }
 0x905   : > { %v2477_v40 = vmul.f32 %v3325_v24, %v2470_v14 }
 0x907   : > { %v2484_v47 = vadd.f32 %v3326_v2, %v2477_v40 }
 0x90a   : > { %v3406_v27 = vpop.eup %3405 }
 0x90b   : > { %v2441_v25 = vmul.f32 %v3406_v27, %v2427_v59  ;;  %vm2447_vm6 = vweird.f32 %v3406_v27 }
 0x90c   : > { %vm2448_vm8 = vmor %vm2446_vm7, %vm2447_vm6 }
 0x90d   : > { %v2442_v45 = vmul.f32 %v3406_v27, %v2441_v25 }
 0x90f   : > { %v2443_v3 = vmul.f32 0.5, %v2442_v45 }
 0x911   : > { %v2444_v13 = vsub.f32 1.5, %v2443_v3 }
 0x913   : > { %v2445_v48 = vmul.f32 %v3406_v27, %v2444_v13 }
 0x915   : > { %v2449_v44 = vsel %vm2448_vm8, %v3406_v27, %v2445_v48 }
 0x916   : > { %v2471_v55 = vmul.f32 %v2449_v44, %v2403_v50 }
 0x918   : > { %v2478_v60 = vmul.f32 %v3325_v24, %v2471_v55 }
 0x91a   : > { %v2485_v49 = vadd.f32 %v3326_v2, %v2478_v60 }
 0x91c   : > { %v2488_v57 = vpack.c.bf16 %v2485_v49, %v2484_v47 }
 0x91e   : > { %3151 = vmatmul.msk.bf16.vlgmr.msra.gmra.mxu3 %vm1052_vm4, %v2488_v57 }
 0x96a   : > { %v2418_v5 = vpop.xlane.xlu0 %2417 }
 0x96b   : > { %v2424_v9 = vmul.f32 %v2418_v5, %v4939_v8 }
 0x96d   : > { %v2428_v37 = vadd.f32 1e-05, %v2424_v9 }
 0x96f   : > { %3407 = vrsqrt.f32 %v2428_v37  ;;  %vm2456_vm10 = vweird.f32 %v2428_v37 }
 0x972   : > { %v2421_v4 = vpop.xlane.xlu1 %2420 }
 0x973   : > { %v2425_v51 = vmul.f32 %v2421_v4, %v4939_v8 }
 0x975   : > { %v3408_v30 = vpop.eup %3407  ;;  %v2429_v62 = vadd.f32 1e-05, %v2425_v51 }
 0x976   : > { %v2451_v63 = vmul.f32 %v3408_v30, %v2428_v37  ;;  %vm2457_vm9 = vweird.f32 %v3408_v30 }
 0x977   : > { %3409 = vrsqrt.f32 %v2429_v62  ;;  %vm2458_vm11 = vmor %vm2456_vm10, %vm2457_vm9  ;;  %vm2466_vm14 = vweird.f32 %v2429_v62 }
 0x978   : > { %v2452_v23 = vmul.f32 %v3408_v30, %v2451_v63 }
 0x97a   : > { %v2453_v7 = vmul.f32 0.5, %v2452_v23 }
 0x97c   : > { %v2454_v32 = vsub.f32 1.5, %v2453_v7 }
 0x97d   : > { %v3410_v12 = vpop.eup %3409 }
 0x97e   : > { %v2455_v43 = vmul.f32 %v3408_v30, %v2454_v32  ;;  %v2461_v21 = vmul.f32 %v3410_v12, %v2429_v62  ;;  %vm2467_vm13 = vweird.f32 %v3410_v12 }
 0x97f   : > { %vm2468_vm15 = vmor %vm2466_vm14, %vm2467_vm13 }
 0x980   : > { %v2462_v50 = vmul.f32 %v3410_v12, %v2461_v21  ;;  %v2459_v34 = vsel %vm2458_vm11, %v3408_v30, %v2455_v43 }
 0x981   : > { %v2472_v8 = vmul.f32 %v2459_v34, %v4711_v31  ;;  %v3209_v31 = vld [vmem:[%s3770_s27 + $0x8] sm:$0xff] }
 0x982   : > { %v2463_v29 = vmul.f32 0.5, %v2462_v50  ;;  %2622 = vmatpush.bf16.msra.mxu2 %v3209_v31 }
 0x983   : > { %v2479_v19 = vmul.f32 %v3325_v24, %v2472_v8  ;;  %v3328_v8 = vld [vmem:[%s4943_s30] ss:$0 sm:$0xff] }
 0x984   : > { %v2464_v58 = vsub.f32 1.5, %v2463_v29 }
 0x985   : > { %v2486_v33 = vadd.f32 %v3326_v2, %v2479_v19 }
 0x986   : > { %v2465_v11 = vmul.f32 %v3410_v12, %v2464_v58  ;;  %2623 = vmatpush.bf16.msra.mxu2 %v3208_v10 }
 0x988   : > { %v2469_v28 = vsel %vm2468_vm15, %v3410_v12, %v2465_v11 }
 0x989   : > { %v2473_v1 = vmul.f32 %v2469_v28, %v4719_v6 }
 0x98b   : > { %v2480_v17 = vmul.f32 %v3325_v24, %v2473_v1 }
 0x98d   : > { %v2487_v52 = vadd.f32 %v3326_v2, %v2480_v17 }
 0x98f   : > { %v2489_v39 = vpack.c.bf16 %v2487_v52, %v2486_v33 }
 0x991   : > { %3152 = vmatmul.msk.bf16.gmra.mxu3 %vm1052_vm4, %v2489_v39 }
 0x9a1   : > { %v2525_v6 = vpop.f32.mrf.mxu3 }
 0x9a2   : > { %v2526_v54 = vadd.f32 %v3327_v41, %v2525_v6 }
 0x9a4   : > { %v2539_v38 = vmul.f32 0.044715, %v2526_v54  ;;  %v2535_v24 = vmul.f32 0.5, %v2526_v54 }
 0x9a6   : > { %v2543_v35 = vmul.f32 %v2539_v38, %v2526_v54 }
 0x9a8   : > { %v2547_v53 = vmul.f32 %v2543_v35, %v2526_v54 }
 0x9a9   : > { %v2527_v16 = vpop.f32.mrf.mxu3 }
 0x9aa   : > { %v2551_v36 = vadd.f32 %v2547_v53, %v2526_v54  ;;  %v2528_v59 = vadd.f32 %v3327_v41, %v2527_v16 }
 0x9ac   : > { %v2540_v42 = vmul.f32 0.044715, %v2528_v59  ;;  %v2555_v56 = vmul.f32 0.7978846, %v2551_v36  ;;  %v2536_v14 = vmul.f32 0.5, %v2528_v59 }
 0x9ae   : > { %v2544_v27 = vmul.f32 %v2540_v42, %v2528_v59  ;;  %3411 = vtanh.f32 %v2555_v56 }
 0x9b0   : > { %v2548_v18 = vmul.f32 %v2544_v27, %v2528_v59 }
 0x9b2   : > { %v2552_v25 = vadd.f32 %v2548_v18, %v2528_v59 }
 0x9b4   : > { %v2556_v45 = vmul.f32 0.7978846, %v2552_v25  ;;  %v3412_v22 = vpop.eup %3411 }
 0x9b5   : > { %v2563_v3 = vadd.f32 1.0, %v3412_v22 }
 0x9b6   : > { %3413 = vtanh.f32 %v2556_v45 }
 0x9b7   : > { %v2567_v44 = vmul.f32 %v2563_v3, %v2535_v24 }
 0x9bc   : > { %v3414_v13 = vpop.eup %3413 }
 0x9bd   : > { %v2564_v48 = vadd.f32 1.0, %v3414_v13 }
 0x9bf   : > { %v2568_v2 = vmul.f32 %v2564_v48, %v2536_v14 }
 0x9c1   : > { %v2571_v40 = vpack.c.bf16 %v2568_v2, %v2567_v44 }
 0x9c3   : > { %3169 = vmatmul.msk.bf16.vlgmr.msra.gmra.mxu2 %vm2609_vm0, %v2571_v40 }
 0xa14   : > { %v2530_v55 = vpop.f32.mrf.mxu3 }
 0xa15   : > { %v2531_v60 = vadd.f32 %v3327_v41, %v2530_v55 }
 0xa17   : > { %v2541_v47 = vmul.f32 0.044715, %v2531_v60  ;;  %v2537_v43 = vmul.f32 0.5, %v2531_v60 }
 0xa19   : > { %v2545_v49 = vmul.f32 %v2541_v47, %v2531_v60 }
 0xa1b   : > { %v2549_v57 = vmul.f32 %v2545_v49, %v2531_v60 }
 0xa1c   : > { %v2532_v5 = vpop.f32.mrf.mxu3 }
 0xa1d   : > { %v2533_v9 = vadd.f32 %v3327_v41, %v2532_v5  ;;  %v2553_v37 = vadd.f32 %v2549_v57, %v2531_v60 }
 0xa1f   : > { %v2542_v4 = vmul.f32 0.044715, %v2533_v9  ;;  %v2557_v30 = vmul.f32 0.7978846, %v2553_v37  ;;  %v2538_v21 = vmul.f32 0.5, %v2533_v9 }
 0xa21   : > { %v2546_v51 = vmul.f32 %v2542_v4, %v2533_v9  ;;  %3415 = vtanh.f32 %v2557_v30 }
 0xa23   : > { %v2550_v62 = vmul.f32 %v2546_v51, %v2533_v9 }
 0xa25   : > { %v2554_v63 = vadd.f32 %v2550_v62, %v2533_v9 }
 0xa27   : > { %v2558_v23 = vmul.f32 0.7978846, %v2554_v63  ;;  %v3416_v7 = vpop.eup %3415 }
 0xa28   : > { %v2565_v32 = vadd.f32 1.0, %v3416_v7 }
 0xa29   : > { %3417 = vtanh.f32 %v2558_v23 }
 0xa2a   : > { %v2569_v34 = vmul.f32 %v2565_v32, %v2537_v43 }
 0xa2f   : > { %v3418_v12 = vpop.eup %3417 }
 0xa30   : > { %v2566_v50 = vadd.f32 1.0, %v3418_v12 }
 0xa32   : > { %v2570_v29 = vmul.f32 %v2566_v50, %v2538_v21 }
 0xa34   : > { %v2572_v58 = vpack.c.bf16 %v2570_v29, %v2569_v34 }
 0xa36   : > { %3170 = vmatmul.msk.bf16.gmra.mxu2 %vm2609_vm0, %v2572_v58 }
 0xa46   : > { %v2625_v11 = vpop.f32.mrf.mxu2 }
 0xa47   : > { %v2626_v28 = vadd.f32 %v3328_v8, %v2625_v11 }
 0xa49   : > { %v2635_v1 = vadd.f32 %v2626_v28, %v4682_v15 }
 0xa4b   : > { %2639 = vst.msk [vmem:[#allocation2] sm:$0xff] %vm1052_vm4, %v2635_v1 }
 0xa4e   : > { %v2627_v19 = vpop.f32.mrf.mxu2 }
 0xa4f   : > { %v2628_v17 = vadd.f32 %v3328_v8, %v2627_v19 }
 0xa51   : > { %v2636_v33 = vadd.f32 %v2628_v17, %v4686_v0 }
 0xa53   : > { %2640 = vst.msk [vmem:[#allocation2 + $0x8] sm:$0xff] %vm1052_vm4, %v2636_v33 }
 0xab9   : > { %v2630_v52 = vpop.f32.mrf.mxu2 }
 0xaba   : > { %v2631_v39 = vadd.f32 %v3328_v8, %v2630_v52 }
 0xabc   : > { %v2637_v46 = vadd.f32 %v2631_v39, %v4697_v20 }
 0xabe   : > { %2641 = vst.msk [vmem:[#allocation2 + $0x10] sm:$0xff] %vm1052_vm4, %v2637_v46 }
 0xac1   : > { %v2632_v61 = vpop.f32.mrf.mxu2 }
 0xac2   : > { %v2633_v31 = vadd.f32 %v3328_v8, %v2632_v61  ;;  %2646 = sbr.rel (%p3171_p9) target bundleno = 3423 (0xd5f), region = 128 }
 0xac4   : > { %v2638_v41 = vadd.f32 %v2633_v31, %v4702_v26 }
 0xac6   : > { %2642 = vst.msk [vmem:[#allocation2 + $0x18] sm:$0xff] %vm1052_vm4, %v2638_v41 }
 0xac7   : > { %v2655_v15 = vsel %vm1052_vm4, %v2637_v46, 0.0  ;;  %v2649_v0 = vsel %vm1052_vm4, %v2635_v1, 0.0  ;;  %v2658_v10 = vsel %vm1052_vm4, %v2638_v41, 0.0  ;;  %v2652_v20 = vsel %vm1052_vm4, %v2636_v33, 0.0  ;;  %v4944_v26 = vld [vmem:[#allocation15_spill] sm:$0xff] }
 0xac8   : > { %2656 = vadd.xlane.f32.xlu1 %v2655_v15  ;;  %2650 = vadd.xlane.f32.xlu0 %v2649_v0  ;;  %v3213_v44 = vld [vmem:[%s4862_s21 + $0x8] sm:$0xff]  ;;  %v3212_v2 = vld [vmem:[%s4862_s21] sm:$0xff]  ;;  %vm2796_vm14 = vcmask 80896  }
 0xac9   : > { %2785 = vmatpush.bf16.msra.mxu0 %v3213_v44  ;;  %3219 = vmatpush.bf16.msra.mxu1 %v3213_v44 }
 0xacd   : > { %2786 = vmatpush.bf16.msra.mxu0 %v3212_v2  ;;  %3220 = vmatpush.bf16.msra.mxu1 %v3212_v2 }
 0xad0   : > { %2659 = vadd.xlane.f32.xlu1 %v2658_v10  ;;  %2653 = vadd.xlane.f32.xlu0 %v2652_v20 }
 0xb3b   : > { %v2657_v6 = vpop.xlane.xlu1 %2656  ;;  %v2651_v54 = vpop.xlane.xlu0 %2650 }
 0xb3c   : > { %v2663_v38 = vmul.f32 %v2657_v6, %v4944_v26  ;;  %v2661_v35 = vmul.f32 %v2651_v54, %v4944_v26 }
 0xb3e   : > { %v4774_v53 = vsub.f32 %v2637_v46, %v2663_v38  ;;  %v4776_v16 = vsub.f32 %v2635_v1, %v2661_v35 }
 0xb40   : > { %v2671_v36 = vmul.f32 %v4774_v53, %v4774_v53  ;;  %v2669_v59 = vmul.f32 %v4776_v16, %v4776_v16 }
 0xb42   : > { %v2679_v42 = vsel %vm1052_vm4, %v2671_v36, 0.0  ;;  %v2673_v56 = vsel %vm1052_vm4, %v2669_v59, 0.0 }
 0xb43   : > { %v2660_v27 = vpop.xlane.xlu1 %2659  ;;  %2680 = vadd.xlane.f32.xlu0 %v2679_v42  ;;  %2674 = vadd.xlane.f32.xlu2 %v2673_v56  ;;  %v2654_v18 = vpop.xlane.xlu0 %2653 }
 0xb44   : > { %v2664_v25 = vmul.f32 %v2660_v27, %v4944_v26  ;;  %v2662_v45 = vmul.f32 %v2654_v18, %v4944_v26 }
 0xb46   : > { %v4786_v22 = vsub.f32 %v2638_v41, %v2664_v25  ;;  %v4788_v3 = vsub.f32 %v2636_v33, %v2662_v45  ;;  %v3423_v41 = vld [vmem:[%s4945_s22] ss:$0 sm:$0xff] }
 0xb48   : > { %v2672_v13 = vmul.f32 %v4786_v22, %v4786_v22  ;;  %v2670_v24 = vmul.f32 %v4788_v3, %v4788_v3 }
 0xb4a   : > { %v2682_v14 = vsel %vm1052_vm4, %v2672_v13, 0.0  ;;  %v2676_v48 = vsel %vm1052_vm4, %v2670_v24, 0.0 }
 0xb4b   : > { %2683 = vadd.xlane.f32.xlu1 %v2682_v14  ;;  %2677 = vadd.xlane.f32.xlu2 %v2676_v48 }
 0xbb6   : > { %v2675_v40 = vpop.xlane.xlu2 %2674  ;;  %v2681_v55 = vpop.xlane.xlu0 %2680 }
 0xbb7   : > { %v2685_v60 = vmul.f32 %v2675_v40, %v4944_v26  ;;  %v2687_v47 = vmul.f32 %v2681_v55, %v4944_v26 }
 0xbb9   : > { %v2689_v49 = vadd.f32 1e-05, %v2685_v60  ;;  %v2691_v57 = vadd.f32 1e-05, %v2687_v47 }
 0xbbb   : > { %3426 = vrsqrt.f32 %v2689_v49  ;;  %vm2719_vm12 = vweird.f32 %v2691_v57  ;;  %vm2699_vm3 = vweird.f32 %v2689_v49 }
 0xbbc   : > { %3428 = vrsqrt.f32 %v2691_v57 }
 0xbbe   : > { %v2684_v5 = vpop.xlane.xlu1 %2683  ;;  %v2678_v9 = vpop.xlane.xlu2 %2677 }
 0xbbf   : > { %v2688_v37 = vmul.f32 %v2684_v5, %v4944_v26  ;;  %v2686_v4 = vmul.f32 %v2678_v9, %v4944_v26  ;;  %v3424_v26 = vld [vmem:[%s4946_s9] ss:$0 sm:$0xff] }
 0xbc1   : > { %v3427_v51 = vpop.eup %3426  ;;  %v2692_v30 = vadd.f32 1e-05, %v2688_v37  ;;  %v2690_v62 = vadd.f32 1e-05, %v2686_v4 }
 0xbc2   : > { %v3429_v63 = vpop.eup %3428  ;;  %v2694_v23 = vmul.f32 %v3427_v51, %v2689_v49  ;;  %vm2700_vm2 = vweird.f32 %v3427_v51 }
 0xbc3   : > { %v2714_v7 = vmul.f32 %v3429_v63, %v2691_v57  ;;  %3430 = vrsqrt.f32 %v2692_v30  ;;  %vm2720_vm1 = vweird.f32 %v3429_v63  ;;  %vm2701_vm6 = vmor %vm2699_vm3, %vm2700_vm2  ;;  %vm2729_vm9 = vweird.f32 %v2692_v30 }
 0xbc4   : > { %v2695_v32 = vmul.f32 %v3427_v51, %v2694_v23  ;;  %3432 = vrsqrt.f32 %v2690_v62  ;;  %vm2721_vm5 = vmor %vm2719_vm12, %vm2720_vm1  ;;  %vm2709_vm11 = vweird.f32 %v2690_v62 }
 0xbc5   : > { %v2715_v12 = vmul.f32 %v3429_v63, %v2714_v7 }
 0xbc6   : > { %v2696_v43 = vmul.f32 0.5, %v2695_v32 }
 0xbc7   : > { %v2716_v21 = vmul.f32 0.5, %v2715_v12 }
 0xbc8   : > { %v2697_v50 = vsub.f32 1.5, %v2696_v43 }
 0xbc9   : > { %v3431_v34 = vpop.eup %3430  ;;  %v2717_v29 = vsub.f32 1.5, %v2716_v21 }
 0xbca   : > { %v3433_v58 = vpop.eup %3432  ;;  %v2724_v8 = vmul.f32 %v3431_v34, %v2692_v30  ;;  %v2698_v11 = vmul.f32 %v3427_v51, %v2697_v50  ;;  %vm2730_vm7 = vweird.f32 %v3431_v34 }
 0xbcb   : > { %v2718_v28 = vmul.f32 %v3429_v63, %v2717_v29  ;;  %v2704_v1 = vmul.f32 %v3433_v58, %v2690_v62  ;;  %vm2710_vm8 = vweird.f32 %v3433_v58  ;;  %vm2731_vm10 = vmor %vm2729_vm9, %vm2730_vm7 }
 0xbcc   : > { %v2725_v19 = vmul.f32 %v3431_v34, %v2724_v8  ;;  %v2702_v46 = vsel %vm2701_vm6, %v3427_v51, %v2698_v11  ;;  %vm2711_vm13 = vmor %vm2709_vm11, %vm2710_vm8 }
 0xbcd   : > { %v2705_v17 = vmul.f32 %v3433_v58, %v2704_v1  ;;  %v2722_v52 = vsel %vm2721_vm5, %v3429_v63, %v2718_v28  ;;  %v2733_v10 = vmul.f32 %v2702_v46, %v4776_v16 }
 0xbce   : > { %v2726_v33 = vmul.f32 0.5, %v2725_v19  ;;  %v2735_v15 = vmul.f32 %v2722_v52, %v4774_v53 }
 0xbcf   : > { %v2706_v39 = vmul.f32 0.5, %v2705_v17  ;;  %v2740_v53 = vmul.f32 %v3423_v41, %v2733_v10 }
 0xbd0   : > { %v2727_v61 = vsub.f32 1.5, %v2726_v33  ;;  %v2742_v35 = vmul.f32 %v3423_v41, %v2735_v15 }
 0xbd1   : > { %v2707_v31 = vsub.f32 1.5, %v2706_v39  ;;  %v2747_v27 = vadd.f32 %v3424_v26, %v2740_v53 }
 0xbd2   : > { %v2728_v0 = vmul.f32 %v3431_v34, %v2727_v61  ;;  %v2749_v56 = vadd.f32 %v3424_v26, %v2742_v35 }
 0xbd3   : > { %v2708_v20 = vmul.f32 %v3433_v58, %v2707_v31 }
 0xbd4   : > { %v2732_v6 = vsel %vm2731_vm10, %v3431_v34, %v2728_v0 }
 0xbd5   : > { %v2712_v54 = vsel %vm2711_vm13, %v3433_v58, %v2708_v20  ;;  %v2736_v38 = vmul.f32 %v2732_v6, %v4786_v22  ;;  %v3425_v22 = vld [vmem:[%s4947_s20] ss:$0 sm:$0xff] }
 0xbd6   : > { %v2734_v36 = vmul.f32 %v2712_v54, %v4788_v3 }
 0xbd7   : > { %v2743_v59 = vmul.f32 %v3423_v41, %v2736_v38 }
 0xbd8   : > { %v2741_v42 = vmul.f32 %v3423_v41, %v2734_v36 }
 0xbd9   : > { %v2750_v16 = vadd.f32 %v3424_v26, %v2743_v59 }
 0xbda   : > { %v2748_v18 = vadd.f32 %v3424_v26, %v2741_v42 }
 0xbdb   : > { %v2752_v25 = vpack.c.bf16 %v2750_v16, %v2749_v56 }
 0xbdc   : > { %v2751_v45 = vpack.c.bf16 %v2748_v18, %v2747_v27 }
 0xbdd   : > { %3181 = vmatmul.msk.bf16.vlgmr.msra.gmra.mxu1 %vm1052_vm4, %v2752_v25 }
 0xbde   : > { %3180 = vmatmul.msk.bf16.vlgmr.msra.gmra.mxu0 %vm1052_vm4, %v2751_v45  ;;  %vm2821_vm4 = vcmask 73728  }
 0xc5a   : > { %v2792_v13 = vpop.f32.mrf.mxu1 }
 0xc5b   : > { %v2788_v3 = vpop.f32.mrf.mxu0  ;;  %v2793_v24 = vadd.f32 %v3425_v22, %v2792_v13 }
 0xc5c   : > { %v2789_v14 = vadd.f32 %v3425_v22, %v2788_v3 }
 0xc5d   : > { %v2800_v48 = vsel %vm2796_vm14, %v2793_v24, -inf }
 0xc5e   : > { %2801 = vmax.xlane.f32.xlu0 %v2800_v48  ;;  %v2797_v44 = vsel %vm2796_vm14, %v2789_v14, -inf }
 0xc5f   : > { %2798 = vmax.xlane.f32.xlu2 %v2797_v44 }
 0xc62   : > { %v2794_v2 = vpop.f32.mrf.mxu1 }
 0xc63   : > { %v2790_v40 = vpop.f32.mrf.mxu0 }
 0xcd1   : > { %v2802_v55 = vpop.xlane.xlu0 %2801 }
 0xcd2   : > { %v2804_v60 = vsub.f32 %v2793_v24, %v2802_v55  ;;  %v2799_v47 = vpop.xlane.xlu2 %2798 }
 0xcd3   : > { %v2803_v49 = vsub.f32 %v2789_v14, %v2799_v47 }
 0xcd4   : > { %v2807_v57 = vmul.f32 1.442695, %v2804_v60 }
 0xcd5   : > { %v2805_v5 = vmul.f32 1.442695, %v2803_v49 }
 0xcd6   : > { %3434 = vpow2.f32 %v2807_v57 }
 0xcd7   : > { %3436 = vpow2.f32 %v2805_v5 }
 0xcdc   : > { %v3435_v9 = vpop.eup %3434 }
 0xcdd   : > { %v3437_v37 = vpop.eup %3436  ;;  %v2812_v4 = vsel %vm2796_vm14, %v3435_v9, 0.0 }
 0xcde   : > { %2813 = vadd.xlane.f32.xlu2 %v2812_v4  ;;  %v2809_v51 = vsel %vm2796_vm14, %v3437_v37, 0.0 }
 0xcdf   : > { %2810 = vadd.xlane.f32.xlu1 %v2809_v51 }
 0xd51   : > { %v2814_v30 = vpop.xlane.xlu2 %2813 }
 0xd52   : > { %v2811_v62 = vpop.xlane.xlu1 %2810  ;;  %3438 = vlog2.f32 %v2814_v30 }
 0xd53   : > { %3440 = vlog2.f32 %v2811_v62 }
 0xd58   : > { %v3439_v63 = vpop.eup %3438 }
 0xd59   : > { %v3441_v23 = vpop.eup %3440  ;;  %v2818_v7 = vmul.f32 0.6931472, %v3439_v63 }
 0xd5a   : > { %v2816_v32 = vmul.f32 0.6931472, %v3441_v23 }
 0xd5b   : > { %v2820_v12 = vsub.f32 %v2804_v60, %v2818_v7 }
 0xd5c   : > { %v2819_v43 = vsub.f32 %v2803_v49, %v2816_v32 }
 0xd5d   : > { %2824 = vst.msk [vmem:[#allocation8 + $0x1] sm:$0x1] %vm2821_vm4, %v2820_v12 }
 0xd5e   : > { %2822 = vst.msk [vmem:[#allocation8] sm:$0x1] %vm2821_vm4, %v2819_v43 }
 0xd5f PF: > { %s4948_s24 = sld [smem:[#allocation13_spill]]  ;;  %s3553_s10 = smov [#allocation8]  }
 0xd60   : > { %s4950_s2 = sld [smem:[#allocation33_spill]]  ;;  %s2832_s30 = sshll.u32 %s3553_s10, 4  ;;  %s2833_s30 = int_to_ptr.vmem [resolvable:$true] %s2832_s30 }
 0xd61   : > { %s3554_s4 = smov 1  }
 0xd65   : > { %s4949_s0 = sadd.s32 4294967295, %s4948_s24  }
 0xd66   : > { %p3244_p10 = scmp.eq.s32.totalorder %s4949_s0, 1  ;;  %s2834_s27 = sshll.u32 %s4950_s2, 4  ;;  %s2835_s27 = int_to_ptr.hbm [resolvable:$true] %s2834_s27 }
 0xd68   : > { %3230 = dma.vmem_to_hbm [thread:$0]  (%p3244_p10), %s2833_s30, 32, %s2835_s27, [#allocation4], %s3551_s8, %s3551_s8, %s3554_s4  }
 0xd69   : > { %3521 = dma.done.wait (%p3244_p10), [#allocation4], 32  }
 0xd6a   : > { %3523 = vsyncadd (%p3244_p10), [#allocation4], 4294967264 }
 0xd6b PF: > { %s4951_s26 = sld [smem:[#allocation13_spill]] }
 0xd6c   : > { %s4952_s4 = sld [smem:[#allocation12_spill]] }
 0xd6d   : > { %s4953_s30 = sld [smem:[#allocation14_spill]] }
 0xd71   : > { %s36_s24 = sadd.s32 1, %s4951_s26  }
 0xd72   : > { %p33_p11 = scmp.ge.s32.totalorder %s36_s24, 4  }
 0xd74   :  { %35 = sbr.rel (!%p33_p11) target bundleno = 23 (0x17), region = 209 }
 0xd79   :  { %2851 = vsyncpa [#allocation4], 1 }
 0xd7a   :  { %2853 = vsyncpa [#allocation4 + $0x1], 1 }
 0xd7b   :  { %2854 = vsyncpa [#allocation5], 1 }
 0xd7c   :  { %2856 = vsyncpa [#allocation5 + $0x1], 1 }
 0xd7d   :  { %2857 = vsyncpa [#allocation7], 1 }

</bundles_post_ra>
